<compile_context>
chip_gen: v5e
topology: v5e:2x2
jax: 0.10.0
libtpu: 0.0.40
codegen_flags: <defaults>
</compile_context>

<pallas_src>
import functools

import jax
import jax.numpy as jnp
from jax import lax
from jax.experimental import pallas as pl
from jax.experimental.pallas import tpu as pltpu

DIM_FEEDFORWARD = 2048          # nn.Transformer default
LN_EPS = 1e-5                   # nn.Transformer default layer_norm_eps

_VMEM_LIMIT_CACHE = None


def _vmem_limit():
    """Chip-aware VMEM budget: ~3/4 of physical, capped at 100 MiB."""
    global _VMEM_LIMIT_CACHE
    if _VMEM_LIMIT_CACHE is None:
        try:
            cap = pltpu.get_tpu_info().vmem_capacity_bytes
        except Exception:
            cap = 64 * 1024 * 1024
        _VMEM_LIMIT_CACHE = int(max(32 * 1024 * 1024,
                                    min(cap * 3 // 4, 100 * 1024 * 1024)))
    return _VMEM_LIMIT_CACHE


def _tile(dim, cap):
    """Return (tile, padded_dim) with tile <= cap and padded_dim % tile == 0."""
    if dim <= cap:
        return dim, dim
    if dim % cap == 0:
        return cap, dim
    return cap, ((dim + cap - 1) // cap) * cap


def _ln(y, g, b):
    mu = jnp.mean(y, axis=-1, keepdims=True)
    var = jnp.mean(jnp.square(y - mu), axis=-1, keepdims=True)
    return (y - mu) * lax.rsqrt(var + LN_EPS) * g + b


# --------------------------------------------------------------------------
# Embedding: blocked row gather. ids are scalar-prefetched to SMEM, the table
# stays in HBM (pl.ANY) and `rows` rows are fetched per grid step with manual
# async copies so the per-step grid overhead is amortized.
# --------------------------------------------------------------------------
def _embed_kernel(ids_ref, emb_hbm, o_ref, sem, *, rows):
    base = pl.program_id(0) * rows
    for r in range(rows):
        pltpu.make_async_copy(emb_hbm.at[ids_ref[base + r]],
                              o_ref.at[r], sem.at[r]).start()
    for r in range(rows):
        pltpu.make_async_copy(emb_hbm.at[ids_ref[base + r]],
                              o_ref.at[r], sem.at[r]).wait()


def pallas_embedding(ids_flat, emb):
    m = ids_flat.shape[0]
    _, e = emb.shape
    rows, m_p = _tile(m, 64)
    ids = ids_flat.astype(jnp.int32)
    if m_p != m:
        ids = jnp.pad(ids, (0, m_p - m))
    out = pl.pallas_call(
        functools.partial(_embed_kernel, rows=rows),
        out_shape=jax.ShapeDtypeStruct((m_p, e), jnp.float32),
        grid_spec=pltpu.PrefetchScalarGridSpec(
            num_scalar_prefetch=1,
            grid=(m_p // rows,),
            in_specs=[pl.BlockSpec(memory_space=pl.ANY)],
            out_specs=pl.BlockSpec((rows, e), lambda i, ids: (i, 0)),
            scratch_shapes=[pltpu.SemaphoreType.DMA((rows,))],
        ),
        compiler_params=pltpu.CompilerParams(
            dimension_semantics=("arbitrary",)),
    )(ids, emb)
    return out[:m] if m_p != m else out


# --------------------------------------------------------------------------
# Fused multi-head-attention sub-layer:
#   QKV projections + batched-head attention + single out-proj + residual + LN.
# Grid = (batch, query-tiles), both "parallel".
# --------------------------------------------------------------------------
def _mha_kernel(xq_ref, xkv_ref, wq_ref, bq_ref, wkv_ref, bkv_ref,
                wo_ref, bo_ref, g_ref, b_ref, o_ref, *, num_heads, scale):
    e = xq_ref.shape[-1]
    d = e // num_heads
    tq = xq_ref.shape[1]
    s = xkv_ref.shape[1]

    xq = xq_ref[0]                                           # (tq, e) f32
    q = jnp.dot(xq.astype(jnp.bfloat16), wq_ref[...],
                preferred_element_type=jnp.float32) + bq_ref[...]
    kv = jnp.dot(xkv_ref[0].astype(jnp.bfloat16), wkv_ref[...],
                 preferred_element_type=jnp.float32) + bkv_ref[...]
    k = kv[:, :e]
    v = kv[:, e:]

    # heads as an explicit batch dim -> batched MXU matmuls, no lane slicing
    qh = jnp.transpose((q * scale).astype(jnp.bfloat16).reshape(tq, num_heads, d),
                       (1, 0, 2))                            # (H, tq, d)
    kh = jnp.transpose(k.astype(jnp.bfloat16).reshape(s, num_heads, d),
                       (1, 0, 2))                            # (H, s, d)
    vh = jnp.transpose(v.astype(jnp.bfloat16).reshape(s, num_heads, d),
                       (1, 0, 2))                            # (H, s, d)

    sc = jnp.einsum('hqd,hkd->hqk', qh, kh,
                    preferred_element_type=jnp.float32)      # (H, tq, s)
    sc = sc - jnp.max(sc, axis=-1, keepdims=True)
    p = jnp.exp(sc)
    p = p / jnp.sum(p, axis=-1, keepdims=True)
    ctx = jnp.einsum('hqk,hkd->hqd', p.astype(jnp.bfloat16), vh,
                     preferred_element_type=jnp.float32)     # (H, tq, d)
    ctx = jnp.transpose(ctx, (1, 0, 2)).reshape(tq, e)       # concat heads

    # single full-K output projection + bias + residual + LayerNorm
    y = jnp.dot(ctx.astype(jnp.bfloat16), wo_ref[...],
                preferred_element_type=jnp.float32) + bo_ref[...] + xq
    o_ref[0] = _ln(y, g_ref[...], b_ref[...])


def pallas_mha_block(x_q, x_kv, p, num_heads):
    # x_q: (N, T, E), x_kv: (N, S, E)   (batch-major)
    n, t, e = x_q.shape
    s = x_kv.shape[1]
    tq, t_p = _tile(t, 256)
    xq_in = x_q if t_p == t else jnp.pad(x_q, ((0, 0), (0, t_p - t), (0, 0)))
    scale = 1.0 / float(e // num_heads) ** 0.5
    kern = functools.partial(_mha_kernel, num_heads=num_heads, scale=scale)
    out = pl.pallas_call(
        kern,
        out_shape=jax.ShapeDtypeStruct((n, t_p, e), jnp.float32),
        grid=(n, t_p // tq),
        in_specs=[
            pl.BlockSpec((1, tq, e), lambda b, qi: (b, qi, 0)),
            pl.BlockSpec((1, s, e), lambda b, qi: (b, 0, 0)),
            pl.BlockSpec((e, e), lambda b, qi: (0, 0)),
            pl.BlockSpec((1, e), lambda b, qi: (0, 0)),
            pl.BlockSpec((e, 2 * e), lambda b, qi: (0, 0)),
            pl.BlockSpec((1, 2 * e), lambda b, qi: (0, 0)),
            pl.BlockSpec((e, e), lambda b, qi: (0, 0)),
            pl.BlockSpec((1, e), lambda b, qi: (0, 0)),
            pl.BlockSpec((1, e), lambda b, qi: (0, 0)),
            pl.BlockSpec((1, e), lambda b, qi: (0, 0)),
        ],
        out_specs=pl.BlockSpec((1, tq, e), lambda b, qi: (b, qi, 0)),
        compiler_params=pltpu.CompilerParams(
            dimension_semantics=("parallel", "parallel"),
            vmem_limit_bytes=_vmem_limit()),
    )(xq_in, x_kv, p['wq'], p['bq'], p['wkv'], p['bkv'],
      p['wo'], p['bo'], p['ln_g'], p['ln_b'])
    return out[:, :t] if t_p != t else out


# --------------------------------------------------------------------------
# Fused FFN sub-layer: linear(E->F) -> ReLU -> linear(F->E) -> +res -> LN.
# F is an "arbitrary" reduction axis; the f32 output block is the accumulator.
# Optionally fuses the stack-final LayerNorm (encoder_norm / decoder_norm).
# --------------------------------------------------------------------------
def _ffn_kernel(*refs, final_ln):
    if final_ln:
        (x_ref, w1_ref, b1_ref, w2_ref, b2_ref, g_ref, b_ref,
         g2_ref, bn2_ref, o_ref) = refs
    else:
        x_ref, w1_ref, b1_ref, w2_ref, b2_ref, g_ref, b_ref, o_ref = refs
        g2_ref = bn2_ref = None

    j = pl.program_id(1)

    @pl.when(j == 0)
    def _():
        o_ref[...] = jnp.zeros_like(o_ref)

    h = jnp.dot(x_ref[...].astype(jnp.bfloat16), w1_ref[...],
                preferred_element_type=jnp.float32) + b1_ref[...]
    h = jnp.maximum(h, 0.0)                      # ReLU (nn.Transformer default)
    o_ref[...] += jnp.dot(h.astype(jnp.bfloat16), w2_ref[...],
                          preferred_element_type=jnp.float32)

    @pl.when(j == pl.num_programs(1) - 1)
    def _():
        y = o_ref[...] + b2_ref[...] + x_ref[...]     # bias + residual
        y = _ln(y, g_ref[...], b_ref[...])
        if final_ln:                                  # fused stack-final LN
            y = _ln(y, g2_ref[...], bn2_ref[...])
        o_ref[...] = y


def pallas_ffn_block(x2d, p, final_ln=None):
    m, e = x2d.shape
    f = p['w1'].shape[1]
    tm, m_p = _tile(m, 256)
    tf, f_p = _tile(f, 1024)
    x_in = x2d if m_p == m else jnp.pad(x2d, ((0, m_p - m), (0, 0)))
    w1, b1, w2 = p['w1'], p['b1'], p['w2']
    if f_p != f:
        w1 = jnp.pad(w1, ((0, 0), (0, f_p - f)))
        b1 = jnp.pad(b1, ((0, 0), (0, f_p - f)))
        w2 = jnp.pad(w2, ((0, f_p - f), (0, 0)))

    operands = [x_in, w1, b1, w2, p['b2'], p['ln_g'], p['ln_b']]
    in_specs = [
        pl.BlockSpec((tm, e), lambda i, j: (i, 0)),
        pl.BlockSpec((e, tf), lambda i, j: (0, j)),
        pl.BlockSpec((1, tf), lambda i, j: (0, j)),
        pl.BlockSpec((tf, e), lambda i, j: (j, 0)),
        pl.BlockSpec((1, e), lambda i, j: (0, 0)),
        pl.BlockSpec((1, e), lambda i, j: (0, 0)),
        pl.BlockSpec((1, e), lambda i, j: (0, 0)),
    ]
    if final_ln is not None:
        operands += [final_ln[0], final_ln[1]]
        in_specs += [pl.BlockSpec((1, e), lambda i, j: (0, 0)),
                     pl.BlockSpec((1, e), lambda i, j: (0, 0))]

    out = pl.pallas_call(
        functools.partial(_ffn_kernel, final_ln=final_ln is not None),
        out_shape=jax.ShapeDtypeStruct((m_p, e), jnp.float32),
        grid=(m_p // tm, f_p // tf),
        in_specs=in_specs,
        out_specs=pl.BlockSpec((tm, e), lambda i, j: (i, 0)),
        compiler_params=pltpu.CompilerParams(
            dimension_semantics=("parallel", "arbitrary"),
            vmem_limit_bytes=_vmem_limit()),
    )(*operands)
    return out[:m] if m_p != m else out


# --------------------------------------------------------------------------
# Final vocab projection: consumes batch-major (N, S, E) activations and
# writes the (S, N, vocab) PyTorch layout directly via the out BlockSpec.
# --------------------------------------------------------------------------
def _linear_kernel(x_ref, w_ref, b_ref, o_ref):
    kk = pl.program_id(2)

    @pl.when(kk == 0)
    def _():
        o_ref[...] = jnp.zeros_like(o_ref)

    n, ts, tk = x_ref.shape
    x2 = x_ref[...].astype(jnp.bfloat16).reshape(n * ts, tk)
    z = jnp.dot(x2, w_ref[...], preferred_element_type=jnp.float32)
    o_ref[...] += jnp.transpose(z.reshape(n, ts, -1), (1, 0, 2))

    @pl.when(kk == pl.num_programs(2) - 1)
    def _():
        o_ref[...] += b_ref[...]


def pallas_linear_to_seqmajor(x3d, w, b2d):
    n, s, e = x3d.shape
    v = w.shape[1]
    ts, s_p = _tile(s, 128)
    tn, v_p = _tile(v, 512)
    tk, e_p = _tile(e, 512)
    if s_p != s or e_p != e:
        x3d = jnp.pad(x3d, ((0, 0), (0, s_p - s), (0, e_p - e)))
    if e_p != e or v_p != v:
        w = jnp.pad(w, ((0, e_p - e), (0, v_p - v)))
    if v_p != v:
        b2d = jnp.pad(b2d, ((0, 0), (0, v_p - v)))

    out = pl.pallas_call(
        _linear_kernel,
        out_shape=jax.ShapeDtypeStruct((s_p, n, v_p), jnp.float32),
        grid=(s_p // ts, v_p // tn, e_p // tk),
        in_specs=[
            pl.BlockSpec((n, ts, tk), lambda si, j, kk: (0, si, kk)),
            pl.BlockSpec((tk, tn), lambda si, j, kk: (kk, j)),
            pl.BlockSpec((1, tn), lambda si, j, kk: (0, j)),
        ],
        out_specs=pl.BlockSpec((ts, n, tn), lambda si, j, kk: (si, 0, j)),
        compiler_params=pltpu.CompilerParams(
            dimension_semantics=("parallel", "parallel", "arbitrary"),
            vmem_limit_bytes=_vmem_limit()),
    )(x3d, w, b2d)
    if s_p != s or v_p != v:
        out = out[:s, :, :v]
    return out


# --------------------------------------------------------------------------
# Transformer glue (batch-major (N, S, E) activations internally).
# --------------------------------------------------------------------------
def transformer_forward(params, src, num_heads):
    # src: (S, N) int32 token ids (PyTorch nn.Transformer seq-first layout).
    s, n = src.shape
    e = params['embedding'].shape[1]

    ids_bm = src.T.reshape(-1)                                   # batch-major
    x = pallas_embedding(ids_bm, params['embedding']).reshape(n, s, e)

    # encoder stack (final encoder LayerNorm fused into last layer's FFN)
    mem = x
    n_enc = len(params['enc_layers'])
    for li, lp in enumerate(params['enc_layers']):
        mem = pallas_mha_block(mem, mem, lp['self_attn'], num_heads)
        fin = ((params['enc_norm_g'], params['enc_norm_b'])
               if li == n_enc - 1 else None)
        mem = pallas_ffn_block(mem.reshape(n * s, e), lp['ffn'],
                               final_ln=fin).reshape(n, s, e)

    # decoder stack on tgt == embedded src (as the PyTorch forward does)
    y = x
    n_dec = len(params['dec_layers'])
    for li, lp in enumerate(params['dec_layers']):
        y = pallas_mha_block(y, y, lp['self_attn'], num_heads)
        y = pallas_mha_block(y, mem, lp['cross_attn'], num_heads)
        fin = ((params['dec_norm_g'], params['dec_norm_b'])
               if li == n_dec - 1 else None)
        y = pallas_ffn_block(y.reshape(n * s, e), lp['ffn'],
                             final_ln=fin).reshape(n, s, e)

    # (S, N, vocab) written directly — no XLA transpose of the logits.
    return pallas_linear_to_seqmajor(y, params['fc_w'], params['fc_b'])


# --------------------------------------------------------------------------
# Deterministic parameter init (shapes follow the torch module); matmul
# weights stored bf16, biases / LN params / embedding table stored f32.
# --------------------------------------------------------------------------
class _KeyGen:
    def __init__(self, key):
        self._key = key

    def __call__(self):
        self._key, sub = jax.random.split(self._key)
        return sub


def _w(kg, shape, scale=0.02, dtype=jnp.bfloat16):
    return (scale * jax.random.normal(kg(), shape, dtype=jnp.float32)).astype(dtype)


def _init_mha(kg, e):
    return dict(
        wq=_w(kg, (e, e)), bq=jnp.zeros((1, e), jnp.float32),
        wkv=_w(kg, (e, 2 * e)), bkv=jnp.zeros((1, 2 * e), jnp.float32),
        wo=_w(kg, (e, e)), bo=jnp.zeros((1, e), jnp.float32),
        ln_g=jnp.ones((1, e), jnp.float32), ln_b=jnp.zeros((1, e), jnp.float32),
    )


def _init_ffn(kg, e, f):
    return dict(
        w1=_w(kg, (e, f)), b1=jnp.zeros((1, f), jnp.float32),
        w2=_w(kg, (f, e)), b2=jnp.zeros((1, e), jnp.float32),
        ln_g=jnp.ones((1, e), jnp.float32), ln_b=jnp.zeros((1, e), jnp.float32),
    )


def _init_enc_layer(kg, e, f):
    return dict(self_attn=_init_mha(kg, e), ffn=_init_ffn(kg, e, f))


def _init_dec_layer(kg, e, f):
    return dict(self_attn=_init_mha(kg, e), cross_attn=_init_mha(kg, e),
                ffn=_init_ffn(kg, e, f))


def init_params(key, vocab_size, embed_dim, num_layers,
                dim_feedforward=DIM_FEEDFORWARD):
    kg = _KeyGen(key)
    return dict(
        embedding=_w(kg, (vocab_size, embed_dim), scale=1.0, dtype=jnp.float32),
        enc_layers=[_init_enc_layer(kg, embed_dim, dim_feedforward)
                    for _ in range(num_layers)],
        enc_norm_g=jnp.ones((1, embed_dim), jnp.float32),
        enc_norm_b=jnp.zeros((1, embed_dim), jnp.float32),
        dec_layers=[_init_dec_layer(kg, embed_dim, dim_feedforward)
                    for _ in range(num_layers)],
        dec_norm_g=jnp.ones((1, embed_dim), jnp.float32),
        dec_norm_b=jnp.zeros((1, embed_dim), jnp.float32),
        fc_w=_w(kg, (embed_dim, vocab_size)),
        fc_b=jnp.zeros((1, vocab_size), jnp.float32),
    )


# --------------------------------------------------------------------------
if __name__ == "__main__":
    vocab_size, embed_dim, num_heads, num_layers = 50, 32, 4, 2
    seq_len, batch = 8, 2
    assert embed_dim % num_heads == 0

    key = jax.random.PRNGKey(0)
    pkey, dkey = jax.random.split(key)

    params = init_params(pkey, vocab_size, embed_dim, num_layers)
    src = jax.random.randint(dkey, (seq_len, batch), 0, vocab_size,
                             dtype=jnp.int32)

    fwd = jax.jit(functools.partial(transformer_forward, num_heads=num_heads))
    out = fwd(params, src)
    jax.block_until_ready(out)

    assert out.shape == (seq_len, batch, vocab_size), out.shape
    assert out.dtype == jnp.float32
    assert bool(jnp.all(jnp.isfinite(out)))
    print("KERNEL_OK")
</pallas_src>

<mosaic_0001>
module attributes {stable_mosaic.version = 11 : i64} {
  func.func @_mha_kernel(%arg0: i32, %arg1: i32, %arg2: memref<1x8x32xf32, #tpu.memory_space<vmem>>, %arg3: memref<1x8x32xf32, #tpu.memory_space<vmem>>, %arg4: memref<32x32xbf16, #tpu.memory_space<vmem>>, %arg5: memref<1x32xf32, #tpu.memory_space<vmem>>, %arg6: memref<32x64xbf16, #tpu.memory_space<vmem>>, %arg7: memref<1x64xf32, #tpu.memory_space<vmem>>, %arg8: memref<32x32xbf16, #tpu.memory_space<vmem>>, %arg9: memref<1x32xf32, #tpu.memory_space<vmem>>, %arg10: memref<1x32xf32, #tpu.memory_space<vmem>>, %arg11: memref<1x32xf32, #tpu.memory_space<vmem>>, %arg12: memref<1x8x32xf32, #tpu.memory_space<vmem>>) attributes {dimension_semantics = [#tpu.dimension_semantics<parallel>, #tpu.dimension_semantics<parallel>], iteration_bounds = array<i64: 2, 1>, scalar_prefetch = 0 : i64, scratch_operands = 0 : i64, tpu.core_type = #tpu.core_type<tc>, window_params = [{transform_indices = @transform_0, window_bounds = array<i64: 1, 8, 32>}, {transform_indices = @transform_1, window_bounds = array<i64: 1, 8, 32>}, {pipeline_mode = #tpu.pipeline_mode<synchronous>, transform_indices = @transform_2, window_bounds = array<i64: 32, 32>}, {pipeline_mode = #tpu.pipeline_mode<synchronous>, transform_indices = @transform_3, window_bounds = array<i64: 1, 32>}, {pipeline_mode = #tpu.pipeline_mode<synchronous>, transform_indices = @transform_4, window_bounds = array<i64: 32, 64>}, {pipeline_mode = #tpu.pipeline_mode<synchronous>, transform_indices = @transform_5, window_bounds = array<i64: 1, 64>}, {pipeline_mode = #tpu.pipeline_mode<synchronous>, transform_indices = @transform_6, window_bounds = array<i64: 32, 32>}, {pipeline_mode = #tpu.pipeline_mode<synchronous>, transform_indices = @transform_7, window_bounds = array<i64: 1, 32>}, {pipeline_mode = #tpu.pipeline_mode<synchronous>, transform_indices = @transform_8, window_bounds = array<i64: 1, 32>}, {pipeline_mode = #tpu.pipeline_mode<synchronous>, transform_indices = @transform_9, window_bounds = array<i64: 1, 32>}, {transform_indices = @transform_10, window_bounds = array<i64: 1, 8, 32>}]} {
    %c0 = arith.constant 0 : index
    %c0_0 = arith.constant 0 : index
    %c0_1 = arith.constant 0 : index
    %0 = vector.load %arg2[%c0, %c0_0, %c0_1] : memref<1x8x32xf32, #tpu.memory_space<vmem>>, vector<1x8x32xf32>
    %1 = vector.shape_cast %0 : vector<1x8x32xf32> to vector<8x32xf32>
    %2 = arith.truncf %1 : vector<8x32xf32> to vector<8x32xbf16>
    %c0_2 = arith.constant 0 : index
    %c0_3 = arith.constant 0 : index
    %3 = vector.load %arg4[%c0_2, %c0_3] : memref<32x32xbf16, #tpu.memory_space<vmem>>, vector<32x32xbf16>
    %cst = arith.constant dense<0.000000e+00> : vector<8x32xf32>
    %4 = tpu.matmul %2, %3, %cst {dimension_numbers = #tpu.dot_dimension_numbers<[1], [0], [0], [1], [0, 0, 1, 1], [], []>} : vector<8x32xbf16>, vector<32x32xbf16>, vector<8x32xf32> -> vector<8x32xf32>
    %c0_4 = arith.constant 0 : index
    %c0_5 = arith.constant 0 : index
    %5 = vector.load %arg5[%c0_4, %c0_5] : memref<1x32xf32, #tpu.memory_space<vmem>>, vector<1x32xf32>
    %6 = vector.broadcast %5 : vector<1x32xf32> to vector<8x32xf32>
    %7 = arith.addf %4, %6 : vector<8x32xf32>
    %c0_6 = arith.constant 0 : index
    %c0_7 = arith.constant 0 : index
    %c0_8 = arith.constant 0 : index
    %8 = vector.load %arg3[%c0_6, %c0_7, %c0_8] : memref<1x8x32xf32, #tpu.memory_space<vmem>>, vector<1x8x32xf32>
    %9 = vector.shape_cast %8 : vector<1x8x32xf32> to vector<8x32xf32>
    %10 = arith.truncf %9 : vector<8x32xf32> to vector<8x32xbf16>
    %c0_9 = arith.constant 0 : index
    %c0_10 = arith.constant 0 : index
    %11 = vector.load %arg6[%c0_9, %c0_10] : memref<32x64xbf16, #tpu.memory_space<vmem>>, vector<32x64xbf16>
    %cst_11 = arith.constant dense<0.000000e+00> : vector<8x64xf32>
    %12 = tpu.matmul %10, %11, %cst_11 {dimension_numbers = #tpu.dot_dimension_numbers<[1], [0], [0], [1], [0, 0, 1, 1], [], []>} : vector<8x32xbf16>, vector<32x64xbf16>, vector<8x64xf32> -> vector<8x64xf32>
    %c0_12 = arith.constant 0 : index
    %c0_13 = arith.constant 0 : index
    %13 = vector.load %arg7[%c0_12, %c0_13] : memref<1x64xf32, #tpu.memory_space<vmem>>, vector<1x64xf32>
    %14 = vector.broadcast %13 : vector<1x64xf32> to vector<8x64xf32>
    %15 = arith.addf %12, %14 : vector<8x64xf32>
    %16 = vector.extract_strided_slice %15 {offsets = [0, 0], sizes = [8, 32], strides = [1, 1]} : vector<8x64xf32> to vector<8x32xf32>
    %17 = vector.extract_strided_slice %15 {offsets = [0, 32], sizes = [8, 32], strides = [1, 1]} : vector<8x64xf32> to vector<8x32xf32>
    %cst_14 = arith.constant 0.353553385 : f32
    %18 = vector.broadcast %cst_14 : f32 to vector<8x32xf32>
    %19 = arith.mulf %7, %18 : vector<8x32xf32>
    %20 = arith.truncf %19 : vector<8x32xf32> to vector<8x32xbf16>
    %21 = vector.shape_cast %20 : vector<8x32xbf16> to vector<8x4x8xbf16>
    %22 = tpu.transpose %21, [1, 0, 2] : vector<8x4x8xbf16> -> vector<4x8x8xbf16>
    %23 = arith.truncf %16 : vector<8x32xf32> to vector<8x32xbf16>
    %24 = vector.shape_cast %23 : vector<8x32xbf16> to vector<8x4x8xbf16>
    %25 = tpu.transpose %24, [1, 0, 2] : vector<8x4x8xbf16> -> vector<4x8x8xbf16>
    %26 = arith.truncf %17 : vector<8x32xf32> to vector<8x32xbf16>
    %27 = vector.shape_cast %26 : vector<8x32xbf16> to vector<8x4x8xbf16>
    %28 = tpu.transpose %27, [1, 0, 2] : vector<8x4x8xbf16> -> vector<4x8x8xbf16>
    "tpu.trace_start"() <{level = 10 : i32, message = "hqd,hkd->hqk"}> : () -> ()
    %cst_15 = arith.constant dense<0.000000e+00> : vector<4x8x8xf32>
    %29 = tpu.matmul %22, %25, %cst_15 {dimension_numbers = #tpu.dot_dimension_numbers<[2], [2], [1], [1], [0, 0, 0, 1, 1, 1], [0], [0]>} : vector<4x8x8xbf16>, vector<4x8x8xbf16>, vector<4x8x8xf32> -> vector<4x8x8xf32>
    "tpu.trace_stop"() : () -> ()
    %cst_16 = arith.constant dense<0xFF800000> : vector<4x8xf32>
    %30 = vector.multi_reduction <maximumf>, %29, %cst_16 [2] : vector<4x8x8xf32> to vector<4x8xf32>
    %31 = vector.shape_cast %30 : vector<4x8xf32> to vector<4x8x1xf32>
    %32 = vector.broadcast %31 : vector<4x8x1xf32> to vector<4x8x8xf32>
    %33 = arith.subf %29, %32 : vector<4x8x8xf32>
    %34 = math.exp %33 : vector<4x8x8xf32>
    %cst_17 = arith.constant dense<0.000000e+00> : vector<4x8xf32>
    %35 = vector.multi_reduction <add>, %34, %cst_17 [2] : vector<4x8x8xf32> to vector<4x8xf32>
    %36 = vector.shape_cast %35 : vector<4x8xf32> to vector<4x8x1xf32>
    %37 = vector.broadcast %36 : vector<4x8x1xf32> to vector<4x8x8xf32>
    %38 = arith.divf %34, %37 : vector<4x8x8xf32>
    %39 = arith.truncf %38 : vector<4x8x8xf32> to vector<4x8x8xbf16>
    "tpu.trace_start"() <{level = 10 : i32, message = "hqk,hkd->hqd"}> : () -> ()
    %cst_18 = arith.constant dense<0.000000e+00> : vector<4x8x8xf32>
    %40 = tpu.matmul %39, %28, %cst_18 {dimension_numbers = #tpu.dot_dimension_numbers<[2], [1], [1], [2], [0, 0, 0, 1, 1, 2], [0], [0]>} : vector<4x8x8xbf16>, vector<4x8x8xbf16>, vector<4x8x8xf32> -> vector<4x8x8xf32>
    "tpu.trace_stop"() : () -> ()
    %41 = tpu.transpose %40, [1, 0, 2] : vector<4x8x8xf32> -> vector<8x4x8xf32>
    %42 = vector.shape_cast %41 : vector<8x4x8xf32> to vector<8x32xf32>
    %43 = arith.truncf %42 : vector<8x32xf32> to vector<8x32xbf16>
    %c0_19 = arith.constant 0 : index
    %c0_20 = arith.constant 0 : index
    %44 = vector.load %arg8[%c0_19, %c0_20] : memref<32x32xbf16, #tpu.memory_space<vmem>>, vector<32x32xbf16>
    %cst_21 = arith.constant dense<0.000000e+00> : vector<8x32xf32>
    %45 = tpu.matmul %43, %44, %cst_21 {dimension_numbers = #tpu.dot_dimension_numbers<[1], [0], [0], [1], [0, 0, 1, 1], [], []>} : vector<8x32xbf16>, vector<32x32xbf16>, vector<8x32xf32> -> vector<8x32xf32>
    %c0_22 = arith.constant 0 : index
    %c0_23 = arith.constant 0 : index
    %46 = vector.load %arg9[%c0_22, %c0_23] : memref<1x32xf32, #tpu.memory_space<vmem>>, vector<1x32xf32>
    %47 = vector.broadcast %46 : vector<1x32xf32> to vector<8x32xf32>
    %48 = arith.addf %45, %47 : vector<8x32xf32>
    %49 = arith.addf %48, %1 : vector<8x32xf32>
    %c0_24 = arith.constant 0 : index
    %c0_25 = arith.constant 0 : index
    %50 = vector.load %arg10[%c0_24, %c0_25] : memref<1x32xf32, #tpu.memory_space<vmem>>, vector<1x32xf32>
    %c0_26 = arith.constant 0 : index
    %c0_27 = arith.constant 0 : index
    %51 = vector.load %arg11[%c0_26, %c0_27] : memref<1x32xf32, #tpu.memory_space<vmem>>, vector<1x32xf32>
    %cst_28 = arith.constant dense<0.000000e+00> : vector<8xf32>
    %52 = vector.multi_reduction <add>, %49, %cst_28 [1] : vector<8x32xf32> to vector<8xf32>
    %53 = vector.shape_cast %52 : vector<8xf32> to vector<8x1xf32>
    %cst_29 = arith.constant 3.200000e+01 : f32
    %54 = vector.broadcast %cst_29 : f32 to vector<8x1xf32>
    %55 = arith.divf %53, %54 : vector<8x1xf32>
    %56 = vector.broadcast %55 : vector<8x1xf32> to vector<8x32xf32>
    %57 = arith.subf %49, %56 : vector<8x32xf32>
    %58 = arith.mulf %57, %57 : vector<8x32xf32>
    %cst_30 = arith.constant dense<0.000000e+00> : vector<8xf32>
    %59 = vector.multi_reduction <add>, %58, %cst_30 [1] : vector<8x32xf32> to vector<8xf32>
    %60 = vector.shape_cast %59 : vector<8xf32> to vector<8x1xf32>
    %cst_31 = arith.constant 3.200000e+01 : f32
    %61 = vector.broadcast %cst_31 : f32 to vector<8x1xf32>
    %62 = arith.divf %60, %61 : vector<8x1xf32>
    %63 = vector.broadcast %55 : vector<8x1xf32> to vector<8x32xf32>
    %64 = arith.subf %49, %63 : vector<8x32xf32>
    %cst_32 = arith.constant 9.99999974E-6 : f32
    %65 = vector.broadcast %cst_32 : f32 to vector<8x1xf32>
    %66 = arith.addf %62, %65 : vector<8x1xf32>
    %67 = math.rsqrt %66 : vector<8x1xf32>
    %68 = vector.broadcast %67 : vector<8x1xf32> to vector<8x32xf32>
    %69 = arith.mulf %64, %68 : vector<8x32xf32>
    %70 = vector.broadcast %50 : vector<1x32xf32> to vector<8x32xf32>
    %71 = arith.mulf %69, %70 : vector<8x32xf32>
    %72 = vector.broadcast %51 : vector<1x32xf32> to vector<8x32xf32>
    %73 = arith.addf %71, %72 : vector<8x32xf32>
    %c0_33 = arith.constant 0 : index
    %c0_34 = arith.constant 0 : index
    %c0_35 = arith.constant 0 : index
    %74 = vector.load %arg12[%c0_33, %c0_34, %c0_35] : memref<1x8x32xf32, #tpu.memory_space<vmem>>, vector<1x8x32xf32>
    %75 = vector.shape_cast %74 : vector<1x8x32xf32> to vector<8x32xf32>
    %76 = vector.shape_cast %73 : vector<8x32xf32> to vector<1x8x32xf32>
    tpu.vector_store %arg12[%c0_33, %c0_34, %c0_35], %76 {strides = array<i32>} : memref<1x8x32xf32, #tpu.memory_space<vmem>>, vector<1x8x32xf32>,
    return
  }
  func.func @transform_0(%arg0: i32, %arg1: i32) -> (i32, i32, i32) {
    %c0_i32 = arith.constant 0 : i32
    %c0_i32_0 = arith.constant 0 : i32
    return %arg0, %arg1, %c0_i32 : i32, i32, i32
  }
  func.func @transform_1(%arg0: i32, %arg1: i32) -> (i32, i32, i32) {
    %c0_i32 = arith.constant 0 : i32
    %c0_i32_0 = arith.constant 0 : i32
    %c0_i32_1 = arith.constant 0 : i32
    return %arg0, %c0_i32, %c0_i32_0 : i32, i32, i32
  }
  func.func @transform_2(%arg0: i32, %arg1: i32) -> (i32, i32) {
    %c0_i32 = arith.constant 0 : i32
    %c0_i32_0 = arith.constant 0 : i32
    %c0_i32_1 = arith.constant 0 : i32
    return %c0_i32, %c0_i32_0 : i32, i32
  }
  func.func @transform_3(%arg0: i32, %arg1: i32) -> (i32, i32) {
    %c0_i32 = arith.constant 0 : i32
    %c0_i32_0 = arith.constant 0 : i32
    %c0_i32_1 = arith.constant 0 : i32
    return %c0_i32, %c0_i32_0 : i32, i32
  }
  func.func @transform_4(%arg0: i32, %arg1: i32) -> (i32, i32) {
    %c0_i32 = arith.constant 0 : i32
    %c0_i32_0 = arith.constant 0 : i32
    %c0_i32_1 = arith.constant 0 : i32
    return %c0_i32, %c0_i32_0 : i32, i32
  }
  func.func @transform_5(%arg0: i32, %arg1: i32) -> (i32, i32) {
    %c0_i32 = arith.constant 0 : i32
    %c0_i32_0 = arith.constant 0 : i32
    %c0_i32_1 = arith.constant 0 : i32
    return %c0_i32, %c0_i32_0 : i32, i32
  }
  func.func @transform_6(%arg0: i32, %arg1: i32) -> (i32, i32) {
    %c0_i32 = arith.constant 0 : i32
    %c0_i32_0 = arith.constant 0 : i32
    %c0_i32_1 = arith.constant 0 : i32
    return %c0_i32, %c0_i32_0 : i32, i32
  }
  func.func @transform_7(%arg0: i32, %arg1: i32) -> (i32, i32) {
    %c0_i32 = arith.constant 0 : i32
    %c0_i32_0 = arith.constant 0 : i32
    %c0_i32_1 = arith.constant 0 : i32
    return %c0_i32, %c0_i32_0 : i32, i32
  }
  func.func @transform_8(%arg0: i32, %arg1: i32) -> (i32, i32) {
    %c0_i32 = arith.constant 0 : i32
    %c0_i32_0 = arith.constant 0 : i32
    %c0_i32_1 = arith.constant 0 : i32
    return %c0_i32, %c0_i32_0 : i32, i32
  }
  func.func @transform_9(%arg0: i32, %arg1: i32) -> (i32, i32) {
    %c0_i32 = arith.constant 0 : i32
    %c0_i32_0 = arith.constant 0 : i32
    %c0_i32_1 = arith.constant 0 : i32
    return %c0_i32, %c0_i32_0 : i32, i32
  }
  func.func @transform_10(%arg0: i32, %arg1: i32) -> (i32, i32, i32) {
    %c0_i32 = arith.constant 0 : i32
    %c0_i32_0 = arith.constant 0 : i32
    return %arg0, %arg1, %c0_i32 : i32, i32, i32
  }
}

module attributes {stable_mosaic.version = 11 : i64} {
  func.func @_embed_kernel(%arg0: i32, %arg1: memref<16xi32, #tpu.memory_space<smem>>, %arg2: memref<50x32xf32, #tpu.memory_space<any>>, %arg3: memref<16x32xf32, #tpu.memory_space<vmem>>, %arg4: memref<16x!tpu.dma_semaphore, #tpu.memory_space<semaphore_mem>>) attributes {dimension_semantics = [#tpu.dimension_semantics<arbitrary>], iteration_bounds = array<i64: 1>, scalar_prefetch = 1 : i64, scratch_operands = 1 : i64, tpu.core_type = #tpu.core_type<tc>, window_params = [{}, {transform_indices = @transform_1, window_bounds = array<i64: 16, 32>}]} {
    %c16_i32 = arith.constant 16 : i32
    %0 = arith.muli %arg0, %c16_i32 : i32
    %c0_i32 = arith.constant 0 : i32
    %1 = arith.addi %0, %c0_i32 : i32
    %2 = arith.index_cast %1 : i32 to index
    %3 = memref.load %arg1[%2] : memref<16xi32, #tpu.memory_space<smem>>
    %c0_i32_0 = arith.constant 0 : i32
    %c0_i32_1 = arith.constant 0 : i32
    %c0_i32_2 = arith.constant 0 : i32
    %4 = tpu.memref_slice %arg2[%3, %c0_i32_2] : memref<50x32xf32, #tpu.memory_space<any>> -> memref<1x32xf32, #tpu.memory_space<any>>
    %5 = tpu.memref_squeeze %4 : memref<1x32xf32, #tpu.memory_space<any>> -> memref<32xf32, #tpu.memory_space<any>>
    %c0_i32_3 = arith.constant 0 : i32
    %6 = tpu.memref_slice %arg3[%c0_i32_0, %c0_i32_3] : memref<16x32xf32, #tpu.memory_space<vmem>> -> memref<1x32xf32, #tpu.memory_space<vmem>>
    %7 = tpu.memref_squeeze %6 : memref<1x32xf32, #tpu.memory_space<vmem>> -> memref<32xf32, #tpu.memory_space<vmem>>
    %8 = tpu.memref_slice %arg4[%c0_i32_1] : memref<16x!tpu.dma_semaphore, #tpu.memory_space<semaphore_mem>> -> memref<1x!tpu.dma_semaphore, #tpu.memory_space<semaphore_mem>>
    %9 = tpu.memref_squeeze %8 : memref<1x!tpu.dma_semaphore, #tpu.memory_space<semaphore_mem>> -> memref<!tpu.dma_semaphore, #tpu.memory_space<semaphore_mem>>
    tpu.enqueue_dma source(%5 : memref<32xf32, #tpu.memory_space<any>>) target(%7 : memref<32xf32, #tpu.memory_space<vmem>>) target_semaphore(%9 : memref<!tpu.dma_semaphore, #tpu.memory_space<semaphore_mem>>)
    %c1_i32 = arith.constant 1 : i32
    %10 = arith.addi %0, %c1_i32 : i32
    %11 = arith.index_cast %10 : i32 to index
    %12 = memref.load %arg1[%11] : memref<16xi32, #tpu.memory_space<smem>>
    %c1_i32_4 = arith.constant 1 : i32
    %c1_i32_5 = arith.constant 1 : i32
    %c0_i32_6 = arith.constant 0 : i32
    %13 = tpu.memref_slice %arg2[%12, %c0_i32_6] : memref<50x32xf32, #tpu.memory_space<any>> -> memref<1x32xf32, #tpu.memory_space<any>>
    %14 = tpu.memref_squeeze %13 : memref<1x32xf32, #tpu.memory_space<any>> -> memref<32xf32, #tpu.memory_space<any>>
    %c0_i32_7 = arith.constant 0 : i32
    %15 = tpu.memref_slice %arg3[%c1_i32_4, %c0_i32_7] : memref<16x32xf32, #tpu.memory_space<vmem>> -> memref<1x32xf32, #tpu.memory_space<vmem>>
    %16 = tpu.memref_squeeze %15 : memref<1x32xf32, #tpu.memory_space<vmem>> -> memref<32xf32, #tpu.memory_space<vmem>>
    %17 = tpu.memref_slice %arg4[%c1_i32_5] : memref<16x!tpu.dma_semaphore, #tpu.memory_space<semaphore_mem>> -> memref<1x!tpu.dma_semaphore, #tpu.memory_space<semaphore_mem>>
    %18 = tpu.memref_squeeze %17 : memref<1x!tpu.dma_semaphore, #tpu.memory_space<semaphore_mem>> -> memref<!tpu.dma_semaphore, #tpu.memory_space<semaphore_mem>>
    tpu.enqueue_dma source(%14 : memref<32xf32, #tpu.memory_space<any>>) target(%16 : memref<32xf32, #tpu.memory_space<vmem>>) target_semaphore(%18 : memref<!tpu.dma_semaphore, #tpu.memory_space<semaphore_mem>>)
    %c2_i32 = arith.constant 2 : i32
    %19 = arith.addi %0, %c2_i32 : i32
    %20 = arith.index_cast %19 : i32 to index
    %21 = memref.load %arg1[%20] : memref<16xi32, #tpu.memory_space<smem>>
    %c2_i32_8 = arith.constant 2 : i32
    %c2_i32_9 = arith.constant 2 : i32
    %c0_i32_10 = arith.constant 0 : i32
    %22 = tpu.memref_slice %arg2[%21, %c0_i32_10] : memref<50x32xf32, #tpu.memory_space<any>> -> memref<1x32xf32, #tpu.memory_space<any>>
    %23 = tpu.memref_squeeze %22 : memref<1x32xf32, #tpu.memory_space<any>> -> memref<32xf32, #tpu.memory_space<any>>
    %c0_i32_11 = arith.constant 0 : i32
    %24 = tpu.memref_slice %arg3[%c2_i32_8, %c0_i32_11] : memref<16x32xf32, #tpu.memory_space<vmem>> -> memref<1x32xf32, #tpu.memory_space<vmem>>
    %25 = tpu.memref_squeeze %24 : memref<1x32xf32, #tpu.memory_space<vmem>> -> memref<32xf32, #tpu.memory_space<vmem>>
    %26 = tpu.memref_slice %arg4[%c2_i32_9] : memref<16x!tpu.dma_semaphore, #tpu.memory_space<semaphore_mem>> -> memref<1x!tpu.dma_semaphore, #tpu.memory_space<semaphore_mem>>
    %27 = tpu.memref_squeeze %26 : memref<1x!tpu.dma_semaphore, #tpu.memory_space<semaphore_mem>> -> memref<!tpu.dma_semaphore, #tpu.memory_space<semaphore_mem>>
    tpu.enqueue_dma source(%23 : memref<32xf32, #tpu.memory_space<any>>) target(%25 : memref<32xf32, #tpu.memory_space<vmem>>) target_semaphore(%27 : memref<!tpu.dma_semaphore, #tpu.memory_space<semaphore_mem>>)
    %c3_i32 = arith.constant 3 : i32
    %28 = arith.addi %0, %c3_i32 : i32
    %29 = arith.index_cast %28 : i32 to index
    %30 = memref.load %arg1[%29] : memref<16xi32, #tpu.memory_space<smem>>
    %c3_i32_12 = arith.constant 3 : i32
    %c3_i32_13 = arith.constant 3 : i32
    %c0_i32_14 = arith.constant 0 : i32
    %31 = tpu.memref_slice %arg2[%30, %c0_i32_14] : memref<50x32xf32, #tpu.memory_space<any>> -> memref<1x32xf32, #tpu.memory_space<any>>
    %32 = tpu.memref_squeeze %31 : memref<1x32xf32, #tpu.memory_space<any>> -> memref<32xf32, #tpu.memory_space<any>>
    %c0_i32_15 = arith.constant 0 : i32
    %33 = tpu.memref_slice %arg3[%c3_i32_12, %c0_i32_15] : memref<16x32xf32, #tpu.memory_space<vmem>> -> memref<1x32xf32, #tpu.memory_space<vmem>>
    %34 = tpu.memref_squeeze %33 : memref<1x32xf32, #tpu.memory_space<vmem>> -> memref<32xf32, #tpu.memory_space<vmem>>
    %35 = tpu.memref_slice %arg4[%c3_i32_13] : memref<16x!tpu.dma_semaphore, #tpu.memory_space<semaphore_mem>> -> memref<1x!tpu.dma_semaphore, #tpu.memory_space<semaphore_mem>>
    %36 = tpu.memref_squeeze %35 : memref<1x!tpu.dma_semaphore, #tpu.memory_space<semaphore_mem>> -> memref<!tpu.dma_semaphore, #tpu.memory_space<semaphore_mem>>
    tpu.enqueue_dma source(%32 : memref<32xf32, #tpu.memory_space<any>>) target(%34 : memref<32xf32, #tpu.memory_space<vmem>>) target_semaphore(%36 : memref<!tpu.dma_semaphore, #tpu.memory_space<semaphore_mem>>)
    %c4_i32 = arith.constant 4 : i32
    %37 = arith.addi %0, %c4_i32 : i32
    %38 = arith.index_cast %37 : i32 to index
    %39 = memref.load %arg1[%38] : memref<16xi32, #tpu.memory_space<smem>>
    %c4_i32_16 = arith.constant 4 : i32
    %c4_i32_17 = arith.constant 4 : i32
    %c0_i32_18 = arith.constant 0 : i32
    %40 = tpu.memref_slice %arg2[%39, %c0_i32_18] : memref<50x32xf32, #tpu.memory_space<any>> -> memref<1x32xf32, #tpu.memory_space<any>>
    %41 = tpu.memref_squeeze %40 : memref<1x32xf32, #tpu.memory_space<any>> -> memref<32xf32, #tpu.memory_space<any>>
    %c0_i32_19 = arith.constant 0 : i32
    %42 = tpu.memref_slice %arg3[%c4_i32_16, %c0_i32_19] : memref<16x32xf32, #tpu.memory_space<vmem>> -> memref<1x32xf32, #tpu.memory_space<vmem>>
    %43 = tpu.memref_squeeze %42 : memref<1x32xf32, #tpu.memory_space<vmem>> -> memref<32xf32, #tpu.memory_space<vmem>>
    %44 = tpu.memref_slice %arg4[%c4_i32_17] : memref<16x!tpu.dma_semaphore, #tpu.memory_space<semaphore_mem>> -> memref<1x!tpu.dma_semaphore, #tpu.memory_space<semaphore_mem>>
    %45 = tpu.memref_squeeze %44 : memref<1x!tpu.dma_semaphore, #tpu.memory_space<semaphore_mem>> -> memref<!tpu.dma_semaphore, #tpu.memory_space<semaphore_mem>>
    tpu.enqueue_dma source(%41 : memref<32xf32, #tpu.memory_space<any>>) target(%43 : memref<32xf32, #tpu.memory_space<vmem>>) target_semaphore(%45 : memref<!tpu.dma_semaphore, #tpu.memory_space<semaphore_mem>>)
    %c5_i32 = arith.constant 5 : i32
    %46 = arith.addi %0, %c5_i32 : i32
    %47 = arith.index_cast %46 : i32 to index
    %48 = memref.load %arg1[%47] : memref<16xi32, #tpu.memory_space<smem>>
    %c5_i32_20 = arith.constant 5 : i32
    %c5_i32_21 = arith.constant 5 : i32
    %c0_i32_22 = arith.constant 0 : i32
    %49 = tpu.memref_slice %arg2[%48, %c0_i32_22] : memref<50x32xf32, #tpu.memory_space<any>> -> memref<1x32xf32, #tpu.memory_space<any>>
    %50 = tpu.memref_squeeze %49 : memref<1x32xf32, #tpu.memory_space<any>> -> memref<32xf32, #tpu.memory_space<any>>
    %c0_i32_23 = arith.constant 0 : i32
    %51 = tpu.memref_slice %arg3[%c5_i32_20, %c0_i32_23] : memref<16x32xf32, #tpu.memory_space<vmem>> -> memref<1x32xf32, #tpu.memory_space<vmem>>
    %52 = tpu.memref_squeeze %51 : memref<1x32xf32, #tpu.memory_space<vmem>> -> memref<32xf32, #tpu.memory_space<vmem>>
    %53 = tpu.memref_slice %arg4[%c5_i32_21] : memref<16x!tpu.dma_semaphore, #tpu.memory_space<semaphore_mem>> -> memref<1x!tpu.dma_semaphore, #tpu.memory_space<semaphore_mem>>
    %54 = tpu.memref_squeeze %53 : memref<1x!tpu.dma_semaphore, #tpu.memory_space<semaphore_mem>> -> memref<!tpu.dma_semaphore, #tpu.memory_space<semaphore_mem>>
    tpu.enqueue_dma source(%50 : memref<32xf32, #tpu.memory_space<any>>) target(%52 : memref<32xf32, #tpu.memory_space<vmem>>) target_semaphore(%54 : memref<!tpu.dma_semaphore, #tpu.memory_space<semaphore_mem>>)
    %c6_i32 = arith.constant 6 : i32
    %55 = arith.addi %0, %c6_i32 : i32
    %56 = arith.index_cast %55 : i32 to index
    %57 = memref.load %arg1[%56] : memref<16xi32, #tpu.memory_space<smem>>
    %c6_i32_24 = arith.constant 6 : i32
    %c6_i32_25 = arith.constant 6 : i32
    %c0_i32_26 = arith.constant 0 : i32
    %58 = tpu.memref_slice %arg2[%57, %c0_i32_26] : memref<50x32xf32, #tpu.memory_space<any>> -> memref<1x32xf32, #tpu.memory_space<any>>
    %59 = tpu.memref_squeeze %58 : memref<1x32xf32, #tpu.memory_space<any>> -> memref<32xf32, #tpu.memory_space<any>>
    %c0_i32_27 = arith.constant 0 : i32
    %60 = tpu.memref_slice %arg3[%c6_i32_24, %c0_i32_27] : memref<16x32xf32, #tpu.memory_space<vmem>> -> memref<1x32xf32, #tpu.memory_space<vmem>>
    %61 = tpu.memref_squeeze %60 : memref<1x32xf32, #tpu.memory_space<vmem>> -> memref<32xf32, #tpu.memory_space<vmem>>
    %62 = tpu.memref_slice %arg4[%c6_i32_25] : memref<16x!tpu.dma_semaphore, #tpu.memory_space<semaphore_mem>> -> memref<1x!tpu.dma_semaphore, #tpu.memory_space<semaphore_mem>>
    %63 = tpu.memref_squeeze %62 : memref<1x!tpu.dma_semaphore, #tpu.memory_space<semaphore_mem>> -> memref<!tpu.dma_semaphore, #tpu.memory_space<semaphore_mem>>
    tpu.enqueue_dma source(%59 : memref<32xf32, #tpu.memory_space<any>>) target(%61 : memref<32xf32, #tpu.memory_space<vmem>>) target_semaphore(%63 : memref<!tpu.dma_semaphore, #tpu.memory_space<semaphore_mem>>)
    %c7_i32 = arith.constant 7 : i32
    %64 = arith.addi %0, %c7_i32 : i32
    %65 = arith.index_cast %64 : i32 to index
    %66 = memref.load %arg1[%65] : memref<16xi32, #tpu.memory_space<smem>>
    %c7_i32_28 = arith.constant 7 : i32
    %c7_i32_29 = arith.constant 7 : i32
    %c0_i32_30 = arith.constant 0 : i32
    %67 = tpu.memref_slice %arg2[%66, %c0_i32_30] : memref<50x32xf32, #tpu.memory_space<any>> -> memref<1x32xf32, #tpu.memory_space<any>>
    %68 = tpu.memref_squeeze %67 : memref<1x32xf32, #tpu.memory_space<any>> -> memref<32xf32, #tpu.memory_space<any>>
    %c0_i32_31 = arith.constant 0 : i32
    %69 = tpu.memref_slice %arg3[%c7_i32_28, %c0_i32_31] : memref<16x32xf32, #tpu.memory_space<vmem>> -> memref<1x32xf32, #tpu.memory_space<vmem>>
    %70 = tpu.memref_squeeze %69 : memref<1x32xf32, #tpu.memory_space<vmem>> -> memref<32xf32, #tpu.memory_space<vmem>>
    %71 = tpu.memref_slice %arg4[%c7_i32_29] : memref<16x!tpu.dma_semaphore, #tpu.memory_space<semaphore_mem>> -> memref<1x!tpu.dma_semaphore, #tpu.memory_space<semaphore_mem>>
    %72 = tpu.memref_squeeze %71 : memref<1x!tpu.dma_semaphore, #tpu.memory_space<semaphore_mem>> -> memref<!tpu.dma_semaphore, #tpu.memory_space<semaphore_mem>>
    tpu.enqueue_dma source(%68 : memref<32xf32, #tpu.memory_space<any>>) target(%70 : memref<32xf32, #tpu.memory_space<vmem>>) target_semaphore(%72 : memref<!tpu.dma_semaphore, #tpu.memory_space<semaphore_mem>>)
    %c8_i32 = arith.constant 8 : i32
    %73 = arith.addi %0, %c8_i32 : i32
    %74 = arith.index_cast %73 : i32 to index
    %75 = memref.load %arg1[%74] : memref<16xi32, #tpu.memory_space<smem>>
    %c8_i32_32 = arith.constant 8 : i32
    %c8_i32_33 = arith.constant 8 : i32
    %c0_i32_34 = arith.constant 0 : i32
    %76 = tpu.memref_slice %arg2[%75, %c0_i32_34] : memref<50x32xf32, #tpu.memory_space<any>> -> memref<1x32xf32, #tpu.memory_space<any>>
    %77 = tpu.memref_squeeze %76 : memref<1x32xf32, #tpu.memory_space<any>> -> memref<32xf32, #tpu.memory_space<any>>
    %c0_i32_35 = arith.constant 0 : i32
    %78 = tpu.memref_slice %arg3[%c8_i32_32, %c0_i32_35] : memref<16x32xf32, #tpu.memory_space<vmem>> -> memref<1x32xf32, #tpu.memory_space<vmem>>
    %79 = tpu.memref_squeeze %78 : memref<1x32xf32, #tpu.memory_space<vmem>> -> memref<32xf32, #tpu.memory_space<vmem>>
    %80 = tpu.memref_slice %arg4[%c8_i32_33] : memref<16x!tpu.dma_semaphore, #tpu.memory_space<semaphore_mem>> -> memref<1x!tpu.dma_semaphore, #tpu.memory_space<semaphore_mem>>
    %81 = tpu.memref_squeeze %80 : memref<1x!tpu.dma_semaphore, #tpu.memory_space<semaphore_mem>> -> memref<!tpu.dma_semaphore, #tpu.memory_space<semaphore_mem>>
    tpu.enqueue_dma source(%77 : memref<32xf32, #tpu.memory_space<any>>) target(%79 : memref<32xf32, #tpu.memory_space<vmem>>) target_semaphore(%81 : memref<!tpu.dma_semaphore, #tpu.memory_space<semaphore_mem>>)
    %c9_i32 = arith.constant 9 : i32
    %82 = arith.addi %0, %c9_i32 : i32
    %83 = arith.index_cast %82 : i32 to index
    %84 = memref.load %arg1[%83] : memref<16xi32, #tpu.memory_space<smem>>
    %c9_i32_36 = arith.constant 9 : i32
    %c9_i32_37 = arith.constant 9 : i32
    %c0_i32_38 = arith.constant 0 : i32
    %85 = tpu.memref_slice %arg2[%84, %c0_i32_38] : memref<50x32xf32, #tpu.memory_space<any>> -> memref<1x32xf32, #tpu.memory_space<any>>
    %86 = tpu.memref_squeeze %85 : memref<1x32xf32, #tpu.memory_space<any>> -> memref<32xf32, #tpu.memory_space<any>>
    %c0_i32_39 = arith.constant 0 : i32
    %87 = tpu.memref_slice %arg3[%c9_i32_36, %c0_i32_39] : memref<16x32xf32, #tpu.memory_space<vmem>> -> memref<1x32xf32, #tpu.memory_space<vmem>>
    %88 = tpu.memref_squeeze %87 : memref<1x32xf32, #tpu.memory_space<vmem>> -> memref<32xf32, #tpu.memory_space<vmem>>
    %89 = tpu.memref_slice %arg4[%c9_i32_37] : memref<16x!tpu.dma_semaphore, #tpu.memory_space<semaphore_mem>> -> memref<1x!tpu.dma_semaphore, #tpu.memory_space<semaphore_mem>>
    %90 = tpu.memref_squeeze %89 : memref<1x!tpu.dma_semaphore, #tpu.memory_space<semaphore_mem>> -> memref<!tpu.dma_semaphore, #tpu.memory_space<semaphore_mem>>
    tpu.enqueue_dma source(%86 : memref<32xf32, #tpu.memory_space<any>>) target(%88 : memref<32xf32, #tpu.memory_space<vmem>>) target_semaphore(%90 : memref<!tpu.dma_semaphore, #tpu.memory_space<semaphore_mem>>)
    %c10_i32 = arith.constant 10 : i32
    %91 = arith.addi %0, %c10_i32 : i32
    %92 = arith.index_cast %91 : i32 to index
    %93 = memref.load %arg1[%92] : memref<16xi32, #tpu.memory_space<smem>>
    %c10_i32_40 = arith.constant 10 : i32
    %c10_i32_41 = arith.constant 10 : i32
    %c0_i32_42 = arith.constant 0 : i32
    %94 = tpu.memref_slice %arg2[%93, %c0_i32_42] : memref<50x32xf32, #tpu.memory_space<any>> -> memref<1x32xf32, #tpu.memory_space<any>>
    %95 = tpu.memref_squeeze %94 : memref<1x32xf32, #tpu.memory_space<any>> -> memref<32xf32, #tpu.memory_space<any>>
    %c0_i32_43 = arith.constant 0 : i32
    %96 = tpu.memref_slice %arg3[%c10_i32_40, %c0_i32_43] : memref<16x32xf32, #tpu.memory_space<vmem>> -> memref<1x32xf32, #tpu.memory_space<vmem>>
    %97 = tpu.memref_squeeze %96 : memref<1x32xf32, #tpu.memory_space<vmem>> -> memref<32xf32, #tpu.memory_space<vmem>>
    %98 = tpu.memref_slice %arg4[%c10_i32_41] : memref<16x!tpu.dma_semaphore, #tpu.memory_space<semaphore_mem>> -> memref<1x!tpu.dma_semaphore, #tpu.memory_space<semaphore_mem>>
    %99 = tpu.memref_squeeze %98 : memref<1x!tpu.dma_semaphore, #tpu.memory_space<semaphore_mem>> -> memref<!tpu.dma_semaphore, #tpu.memory_space<semaphore_mem>>
    tpu.enqueue_dma source(%95 : memref<32xf32, #tpu.memory_space<any>>) target(%97 : memref<32xf32, #tpu.memory_space<vmem>>) target_semaphore(%99 : memref<!tpu.dma_semaphore, #tpu.memory_space<semaphore_mem>>)
    %c11_i32 = arith.constant 11 : i32
    %100 = arith.addi %0, %c11_i32 : i32
    %101 = arith.index_cast %100 : i32 to index
    %102 = memref.load %arg1[%101] : memref<16xi32, #tpu.memory_space<smem>>
    %c11_i32_44 = arith.constant 11 : i32
    %c11_i32_45 = arith.constant 11 : i32
    %c0_i32_46 = arith.constant 0 : i32
    %103 = tpu.memref_slice %arg2[%102, %c0_i32_46] : memref<50x32xf32, #tpu.memory_space<any>> -> memref<1x32xf32, #tpu.memory_space<any>>
    %104 = tpu.memref_squeeze %103 : memref<1x32xf32, #tpu.memory_space<any>> -> memref<32xf32, #tpu.memory_space<any>>
    %c0_i32_47 = arith.constant 0 : i32
    %105 = tpu.memref_slice %arg3[%c11_i32_44, %c0_i32_47] : memref<16x32xf32, #tpu.memory_space<vmem>> -> memref<1x32xf32, #tpu.memory_space<vmem>>
    %106 = tpu.memref_squeeze %105 : memref<1x32xf32, #tpu.memory_space<vmem>> -> memref<32xf32, #tpu.memory_space<vmem>>
    %107 = tpu.memref_slice %arg4[%c11_i32_45] : memref<16x!tpu.dma_semaphore, #tpu.memory_space<semaphore_mem>> -> memref<1x!tpu.dma_semaphore, #tpu.memory_space<semaphore_mem>>
    %108 = tpu.memref_squeeze %107 : memref<1x!tpu.dma_semaphore, #tpu.memory_space<semaphore_mem>> -> memref<!tpu.dma_semaphore, #tpu.memory_space<semaphore_mem>>
    tpu.enqueue_dma source(%104 : memref<32xf32, #tpu.memory_space<any>>) target(%106 : memref<32xf32, #tpu.memory_space<vmem>>) target_semaphore(%108 : memref<!tpu.dma_semaphore, #tpu.memory_space<semaphore_mem>>)
    %c12_i32 = arith.constant 12 : i32
    %109 = arith.addi %0, %c12_i32 : i32
    %110 = arith.index_cast %109 : i32 to index
    %111 = memref.load %arg1[%110] : memref<16xi32, #tpu.memory_space<smem>>
    %c12_i32_48 = arith.constant 12 : i32
    %c12_i32_49 = arith.constant 12 : i32
    %c0_i32_50 = arith.constant 0 : i32
    %112 = tpu.memref_slice %arg2[%111, %c0_i32_50] : memref<50x32xf32, #tpu.memory_space<any>> -> memref<1x32xf32, #tpu.memory_space<any>>
    %113 = tpu.memref_squeeze %112 : memref<1x32xf32, #tpu.memory_space<any>> -> memref<32xf32, #tpu.memory_space<any>>
    %c0_i32_51 = arith.constant 0 : i32
    %114 = tpu.memref_slice %arg3[%c12_i32_48, %c0_i32_51] : memref<16x32xf32, #tpu.memory_space<vmem>> -> memref<1x32xf32, #tpu.memory_space<vmem>>
    %115 = tpu.memref_squeeze %114 : memref<1x32xf32, #tpu.memory_space<vmem>> -> memref<32xf32, #tpu.memory_space<vmem>>
    %116 = tpu.memref_slice %arg4[%c12_i32_49] : memref<16x!tpu.dma_semaphore, #tpu.memory_space<semaphore_mem>> -> memref<1x!tpu.dma_semaphore, #tpu.memory_space<semaphore_mem>>
    %117 = tpu.memref_squeeze %116 : memref<1x!tpu.dma_semaphore, #tpu.memory_space<semaphore_mem>> -> memref<!tpu.dma_semaphore, #tpu.memory_space<semaphore_mem>>
    tpu.enqueue_dma source(%113 : memref<32xf32, #tpu.memory_space<any>>) target(%115 : memref<32xf32, #tpu.memory_space<vmem>>) target_semaphore(%117 : memref<!tpu.dma_semaphore, #tpu.memory_space<semaphore_mem>>)
    %c13_i32 = arith.constant 13 : i32
    %118 = arith.addi %0, %c13_i32 : i32
    %119 = arith.index_cast %118 : i32 to index
    %120 = memref.load %arg1[%119] : memref<16xi32, #tpu.memory_space<smem>>
    %c13_i32_52 = arith.constant 13 : i32
    %c13_i32_53 = arith.constant 13 : i32
    %c0_i32_54 = arith.constant 0 : i32
    %121 = tpu.memref_slice %arg2[%120, %c0_i32_54] : memref<50x32xf32, #tpu.memory_space<any>> -> memref<1x32xf32, #tpu.memory_space<any>>
    %122 = tpu.memref_squeeze %121 : memref<1x32xf32, #tpu.memory_space<any>> -> memref<32xf32, #tpu.memory_space<any>>
    %c0_i32_55 = arith.constant 0 : i32
    %123 = tpu.memref_slice %arg3[%c13_i32_52, %c0_i32_55] : memref<16x32xf32, #tpu.memory_space<vmem>> -> memref<1x32xf32, #tpu.memory_space<vmem>>
    %124 = tpu.memref_squeeze %123 : memref<1x32xf32, #tpu.memory_space<vmem>> -> memref<32xf32, #tpu.memory_space<vmem>>
    %125 = tpu.memref_slice %arg4[%c13_i32_53] : memref<16x!tpu.dma_semaphore, #tpu.memory_space<semaphore_mem>> -> memref<1x!tpu.dma_semaphore, #tpu.memory_space<semaphore_mem>>
    %126 = tpu.memref_squeeze %125 : memref<1x!tpu.dma_semaphore, #tpu.memory_space<semaphore_mem>> -> memref<!tpu.dma_semaphore, #tpu.memory_space<semaphore_mem>>
    tpu.enqueue_dma source(%122 : memref<32xf32, #tpu.memory_space<any>>) target(%124 : memref<32xf32, #tpu.memory_space<vmem>>) target_semaphore(%126 : memref<!tpu.dma_semaphore, #tpu.memory_space<semaphore_mem>>)
    %c14_i32 = arith.constant 14 : i32
    %127 = arith.addi %0, %c14_i32 : i32
    %128 = arith.index_cast %127 : i32 to index
    %129 = memref.load %arg1[%128] : memref<16xi32, #tpu.memory_space<smem>>
    %c14_i32_56 = arith.constant 14 : i32
    %c14_i32_57 = arith.constant 14 : i32
    %c0_i32_58 = arith.constant 0 : i32
    %130 = tpu.memref_slice %arg2[%129, %c0_i32_58] : memref<50x32xf32, #tpu.memory_space<any>> -> memref<1x32xf32, #tpu.memory_space<any>>
    %131 = tpu.memref_squeeze %130 : memref<1x32xf32, #tpu.memory_space<any>> -> memref<32xf32, #tpu.memory_space<any>>
    %c0_i32_59 = arith.constant 0 : i32
    %132 = tpu.memref_slice %arg3[%c14_i32_56, %c0_i32_59] : memref<16x32xf32, #tpu.memory_space<vmem>> -> memref<1x32xf32, #tpu.memory_space<vmem>>
    %133 = tpu.memref_squeeze %132 : memref<1x32xf32, #tpu.memory_space<vmem>> -> memref<32xf32, #tpu.memory_space<vmem>>
    %134 = tpu.memref_slice %arg4[%c14_i32_57] : memref<16x!tpu.dma_semaphore, #tpu.memory_space<semaphore_mem>> -> memref<1x!tpu.dma_semaphore, #tpu.memory_space<semaphore_mem>>
    %135 = tpu.memref_squeeze %134 : memref<1x!tpu.dma_semaphore, #tpu.memory_space<semaphore_mem>> -> memref<!tpu.dma_semaphore, #tpu.memory_space<semaphore_mem>>
    tpu.enqueue_dma source(%131 : memref<32xf32, #tpu.memory_space<any>>) target(%133 : memref<32xf32, #tpu.memory_space<vmem>>) target_semaphore(%135 : memref<!tpu.dma_semaphore, #tpu.memory_space<semaphore_mem>>)
    %c15_i32 = arith.constant 15 : i32
    %136 = arith.addi %0, %c15_i32 : i32
    %137 = arith.index_cast %136 : i32 to index
    %138 = memref.load %arg1[%137] : memref<16xi32, #tpu.memory_space<smem>>
    %c15_i32_60 = arith.constant 15 : i32
    %c15_i32_61 = arith.constant 15 : i32
    %c0_i32_62 = arith.constant 0 : i32
    %139 = tpu.memref_slice %arg2[%138, %c0_i32_62] : memref<50x32xf32, #tpu.memory_space<any>> -> memref<1x32xf32, #tpu.memory_space<any>>
    %140 = tpu.memref_squeeze %139 : memref<1x32xf32, #tpu.memory_space<any>> -> memref<32xf32, #tpu.memory_space<any>>
    %c0_i32_63 = arith.constant 0 : i32
    %141 = tpu.memref_slice %arg3[%c15_i32_60, %c0_i32_63] : memref<16x32xf32, #tpu.memory_space<vmem>> -> memref<1x32xf32, #tpu.memory_space<vmem>>
    %142 = tpu.memref_squeeze %141 : memref<1x32xf32, #tpu.memory_space<vmem>> -> memref<32xf32, #tpu.memory_space<vmem>>
    %143 = tpu.memref_slice %arg4[%c15_i32_61] : memref<16x!tpu.dma_semaphore, #tpu.memory_space<semaphore_mem>> -> memref<1x!tpu.dma_semaphore, #tpu.memory_space<semaphore_mem>>
    %144 = tpu.memref_squeeze %143 : memref<1x!tpu.dma_semaphore, #tpu.memory_space<semaphore_mem>> -> memref<!tpu.dma_semaphore, #tpu.memory_space<semaphore_mem>>
    tpu.enqueue_dma source(%140 : memref<32xf32, #tpu.memory_space<any>>) target(%142 : memref<32xf32, #tpu.memory_space<vmem>>) target_semaphore(%144 : memref<!tpu.dma_semaphore, #tpu.memory_space<semaphore_mem>>)
    %c0_i32_64 = arith.constant 0 : i32
    %145 = arith.addi %0, %c0_i32_64 : i32
    %146 = arith.index_cast %145 : i32 to index
    %147 = memref.load %arg1[%146] : memref<16xi32, #tpu.memory_space<smem>>
    %c0_i32_65 = arith.constant 0 : i32
    %c0_i32_66 = arith.constant 0 : i32
    %c0_i32_67 = arith.constant 0 : i32
    %148 = tpu.memref_slice %arg2[%147, %c0_i32_67] : memref<50x32xf32, #tpu.memory_space<any>> -> memref<1x32xf32, #tpu.memory_space<any>>
    %149 = tpu.memref_squeeze %148 : memref<1x32xf32, #tpu.memory_space<any>> -> memref<32xf32, #tpu.memory_space<any>>
    %c0_i32_68 = arith.constant 0 : i32
    %150 = tpu.memref_slice %arg3[%c0_i32_65, %c0_i32_68] : memref<16x32xf32, #tpu.memory_space<vmem>> -> memref<1x32xf32, #tpu.memory_space<vmem>>
    %151 = tpu.memref_squeeze %150 : memref<1x32xf32, #tpu.memory_space<vmem>> -> memref<32xf32, #tpu.memory_space<vmem>>
    %152 = tpu.memref_slice %arg4[%c0_i32_66] : memref<16x!tpu.dma_semaphore, #tpu.memory_space<semaphore_mem>> -> memref<1x!tpu.dma_semaphore, #tpu.memory_space<semaphore_mem>>
    %153 = tpu.memref_squeeze %152 : memref<1x!tpu.dma_semaphore, #tpu.memory_space<semaphore_mem>> -> memref<!tpu.dma_semaphore, #tpu.memory_space<semaphore_mem>>
    tpu.wait_dma2 semaphore(%153 : memref<!tpu.dma_semaphore, #tpu.memory_space<semaphore_mem>>) src(%149 : memref<32xf32, #tpu.memory_space<any>>) dst(%151 : memref<32xf32, #tpu.memory_space<vmem>>)
    %c1_i32_69 = arith.constant 1 : i32
    %154 = arith.addi %0, %c1_i32_69 : i32
    %155 = arith.index_cast %154 : i32 to index
    %156 = memref.load %arg1[%155] : memref<16xi32, #tpu.memory_space<smem>>
    %c1_i32_70 = arith.constant 1 : i32
    %c1_i32_71 = arith.constant 1 : i32
    %c0_i32_72 = arith.constant 0 : i32
    %157 = tpu.memref_slice %arg2[%156, %c0_i32_72] : memref<50x32xf32, #tpu.memory_space<any>> -> memref<1x32xf32, #tpu.memory_space<any>>
    %158 = tpu.memref_squeeze %157 : memref<1x32xf32, #tpu.memory_space<any>> -> memref<32xf32, #tpu.memory_space<any>>
    %c0_i32_73 = arith.constant 0 : i32
    %159 = tpu.memref_slice %arg3[%c1_i32_70, %c0_i32_73] : memref<16x32xf32, #tpu.memory_space<vmem>> -> memref<1x32xf32, #tpu.memory_space<vmem>>
    %160 = tpu.memref_squeeze %159 : memref<1x32xf32, #tpu.memory_space<vmem>> -> memref<32xf32, #tpu.memory_space<vmem>>
    %161 = tpu.memref_slice %arg4[%c1_i32_71] : memref<16x!tpu.dma_semaphore, #tpu.memory_space<semaphore_mem>> -> memref<1x!tpu.dma_semaphore, #tpu.memory_space<semaphore_mem>>
    %162 = tpu.memref_squeeze %161 : memref<1x!tpu.dma_semaphore, #tpu.memory_space<semaphore_mem>> -> memref<!tpu.dma_semaphore, #tpu.memory_space<semaphore_mem>>
    tpu.wait_dma2 semaphore(%162 : memref<!tpu.dma_semaphore, #tpu.memory_space<semaphore_mem>>) src(%158 : memref<32xf32, #tpu.memory_space<any>>) dst(%160 : memref<32xf32, #tpu.memory_space<vmem>>)
    %c2_i32_74 = arith.constant 2 : i32
    %163 = arith.addi %0, %c2_i32_74 : i32
    %164 = arith.index_cast %163 : i32 to index
    %165 = memref.load %arg1[%164] : memref<16xi32, #tpu.memory_space<smem>>
    %c2_i32_75 = arith.constant 2 : i32
    %c2_i32_76 = arith.constant 2 : i32
    %c0_i32_77 = arith.constant 0 : i32
    %166 = tpu.memref_slice %arg2[%165, %c0_i32_77] : memref<50x32xf32, #tpu.memory_space<any>> -> memref<1x32xf32, #tpu.memory_space<any>>
    %167 = tpu.memref_squeeze %166 : memref<1x32xf32, #tpu.memory_space<any>> -> memref<32xf32, #tpu.memory_space<any>>
    %c0_i32_78 = arith.constant 0 : i32
    %168 = tpu.memref_slice %arg3[%c2_i32_75, %c0_i32_78] : memref<16x32xf32, #tpu.memory_space<vmem>> -> memref<1x32xf32, #tpu.memory_space<vmem>>
    %169 = tpu.memref_squeeze %168 : memref<1x32xf32, #tpu.memory_space<vmem>> -> memref<32xf32, #tpu.memory_space<vmem>>
    %170 = tpu.memref_slice %arg4[%c2_i32_76] : memref<16x!tpu.dma_semaphore, #tpu.memory_space<semaphore_mem>> -> memref<1x!tpu.dma_semaphore, #tpu.memory_space<semaphore_mem>>
    %171 = tpu.memref_squeeze %170 : memref<1x!tpu.dma_semaphore, #tpu.memory_space<semaphore_mem>> -> memref<!tpu.dma_semaphore, #tpu.memory_space<semaphore_mem>>
    tpu.wait_dma2 semaphore(%171 : memref<!tpu.dma_semaphore, #tpu.memory_space<semaphore_mem>>) src(%167 : memref<32xf32, #tpu.memory_space<any>>) dst(%169 : memref<32xf32, #tpu.memory_space<vmem>>)
    %c3_i32_79 = arith.constant 3 : i32
    %172 = arith.addi %0, %c3_i32_79 : i32
    %173 = arith.index_cast %172 : i32 to index
    %174 = memref.load %arg1[%173] : memref<16xi32, #tpu.memory_space<smem>>
    %c3_i32_80 = arith.constant 3 : i32
    %c3_i32_81 = arith.constant 3 : i32
    %c0_i32_82 = arith.constant 0 : i32
    %175 = tpu.memref_slice %arg2[%174, %c0_i32_82] : memref<50x32xf32, #tpu.memory_space<any>> -> memref<1x32xf32, #tpu.memory_space<any>>
    %176 = tpu.memref_squeeze %175 : memref<1x32xf32, #tpu.memory_space<any>> -> memref<32xf32, #tpu.memory_space<any>>
    %c0_i32_83 = arith.constant 0 : i32
    %177 = tpu.memref_slice %arg3[%c3_i32_80, %c0_i32_83] : memref<16x32xf32, #tpu.memory_space<vmem>> -> memref<1x32xf32, #tpu.memory_space<vmem>>
    %178 = tpu.memref_squeeze %177 : memref<1x32xf32, #tpu.memory_space<vmem>> -> memref<32xf32, #tpu.memory_space<vmem>>
    %179 = tpu.memref_slice %arg4[%c3_i32_81] : memref<16x!tpu.dma_semaphore, #tpu.memory_space<semaphore_mem>> -> memref<1x!tpu.dma_semaphore, #tpu.memory_space<semaphore_mem>>
    %180 = tpu.memref_squeeze %179 : memref<1x!tpu.dma_semaphore, #tpu.memory_space<semaphore_mem>> -> memref<!tpu.dma_semaphore, #tpu.memory_space<semaphore_mem>>
    tpu.wait_dma2 semaphore(%180 : memref<!tpu.dma_semaphore, #tpu.memory_space<semaphore_mem>>) src(%176 : memref<32xf32, #tpu.memory_space<any>>) dst(%178 : memref<32xf32, #tpu.memory_space<vmem>>)
    %c4_i32_84 = arith.constant 4 : i32
    %181 = arith.addi %0, %c4_i32_84 : i32
    %182 = arith.index_cast %181 : i32 to index
    %183 = memref.load %arg1[%182] : memref<16xi32, #tpu.memory_space<smem>>
    %c4_i32_85 = arith.constant 4 : i32
    %c4_i32_86 = arith.constant 4 : i32
    %c0_i32_87 = arith.constant 0 : i32
    %184 = tpu.memref_slice %arg2[%183, %c0_i32_87] : memref<50x32xf32, #tpu.memory_space<any>> -> memref<1x32xf32, #tpu.memory_space<any>>
    %185 = tpu.memref_squeeze %184 : memref<1x32xf32, #tpu.memory_space<any>> -> memref<32xf32, #tpu.memory_space<any>>
    %c0_i32_88 = arith.constant 0 : i32
    %186 = tpu.memref_slice %arg3[%c4_i32_85, %c0_i32_88] : memref<16x32xf32, #tpu.memory_space<vmem>> -> memref<1x32xf32, #tpu.memory_space<vmem>>
    %187 = tpu.memref_squeeze %186 : memref<1x32xf32, #tpu.memory_space<vmem>> -> memref<32xf32, #tpu.memory_space<vmem>>
    %188 = tpu.memref_slice %arg4[%c4_i32_86] : memref<16x!tpu.dma_semaphore, #tpu.memory_space<semaphore_mem>> -> memref<1x!tpu.dma_semaphore, #tpu.memory_space<semaphore_mem>>
    %189 = tpu.memref_squeeze %188 : memref<1x!tpu.dma_semaphore, #tpu.memory_space<semaphore_mem>> -> memref<!tpu.dma_semaphore, #tpu.memory_space<semaphore_mem>>
    tpu.wait_dma2 semaphore(%189 : memref<!tpu.dma_semaphore, #tpu.memory_space<semaphore_mem>>) src(%185 : memref<32xf32, #tpu.memory_space<any>>) dst(%187 : memref<32xf32, #tpu.memory_space<vmem>>)
    %c5_i32_89 = arith.constant 5 : i32
    %190 = arith.addi %0, %c5_i32_89 : i32
    %191 = arith.index_cast %190 : i32 to index
    %192 = memref.load %arg1[%191] : memref<16xi32, #tpu.memory_space<smem>>
    %c5_i32_90 = arith.constant 5 : i32
    %c5_i32_91 = arith.constant 5 : i32
    %c0_i32_92 = arith.constant 0 : i32
    %193 = tpu.memref_slice %arg2[%192, %c0_i32_92] : memref<50x32xf32, #tpu.memory_space<any>> -> memref<1x32xf32, #tpu.memory_space<any>>
    %194 = tpu.memref_squeeze %193 : memref<1x32xf32, #tpu.memory_space<any>> -> memref<32xf32, #tpu.memory_space<any>>
    %c0_i32_93 = arith.constant 0 : i32
    %195 = tpu.memref_slice %arg3[%c5_i32_90, %c0_i32_93] : memref<16x32xf32, #tpu.memory_space<vmem>> -> memref<1x32xf32, #tpu.memory_space<vmem>>
    %196 = tpu.memref_squeeze %195 : memref<1x32xf32, #tpu.memory_space<vmem>> -> memref<32xf32, #tpu.memory_space<vmem>>
    %197 = tpu.memref_slice %arg4[%c5_i32_91] : memref<16x!tpu.dma_semaphore, #tpu.memory_space<semaphore_mem>> -> memref<1x!tpu.dma_semaphore, #tpu.memory_space<semaphore_mem>>
    %198 = tpu.memref_squeeze %197 : memref<1x!tpu.dma_semaphore, #tpu.memory_space<semaphore_mem>> -> memref<!tpu.dma_semaphore, #tpu.memory_space<semaphore_mem>>
    tpu.wait_dma2 semaphore(%198 : memref<!tpu.dma_semaphore, #tpu.memory_space<semaphore_mem>>) src(%194 : memref<32xf32, #tpu.memory_space<any>>) dst(%196 : memref<32xf32, #tpu.memory_space<vmem>>)
    %c6_i32_94 = arith.constant 6 : i32
    %199 = arith.addi %0, %c6_i32_94 : i32
    %200 = arith.index_cast %199 : i32 to index
    %201 = memref.load %arg1[%200] : memref<16xi32, #tpu.memory_space<smem>>
    %c6_i32_95 = arith.constant 6 : i32
    %c6_i32_96 = arith.constant 6 : i32
    %c0_i32_97 = arith.constant 0 : i32
    %202 = tpu.memref_slice %arg2[%201, %c0_i32_97] : memref<50x32xf32, #tpu.memory_space<any>> -> memref<1x32xf32, #tpu.memory_space<any>>
    %203 = tpu.memref_squeeze %202 : memref<1x32xf32, #tpu.memory_space<any>> -> memref<32xf32, #tpu.memory_space<any>>
    %c0_i32_98 = arith.constant 0 : i32
    %204 = tpu.memref_slice %arg3[%c6_i32_95, %c0_i32_98] : memref<16x32xf32, #tpu.memory_space<vmem>> -> memref<1x32xf32, #tpu.memory_space<vmem>>
    %205 = tpu.memref_squeeze %204 : memref<1x32xf32, #tpu.memory_space<vmem>> -> memref<32xf32, #tpu.memory_space<vmem>>
    %206 = tpu.memref_slice %arg4[%c6_i32_96] : memref<16x!tpu.dma_semaphore, #tpu.memory_space<semaphore_mem>> -> memref<1x!tpu.dma_semaphore, #tpu.memory_space<semaphore_mem>>
    %207 = tpu.memref_squeeze %206 : memref<1x!tpu.dma_semaphore, #tpu.memory_space<semaphore_mem>> -> memref<!tpu.dma_semaphore, #tpu.memory_space<semaphore_mem>>
    tpu.wait_dma2 semaphore(%207 : memref<!tpu.dma_semaphore, #tpu.memory_space<semaphore_mem>>) src(%203 : memref<32xf32, #tpu.memory_space<any>>) dst(%205 : memref<32xf32, #tpu.memory_space<vmem>>)
    %c7_i32_99 = arith.constant 7 : i32
    %208 = arith.addi %0, %c7_i32_99 : i32
    %209 = arith.index_cast %208 : i32 to index
    %210 = memref.load %arg1[%209] : memref<16xi32, #tpu.memory_space<smem>>
    %c7_i32_100 = arith.constant 7 : i32
    %c7_i32_101 = arith.constant 7 : i32
    %c0_i32_102 = arith.constant 0 : i32
    %211 = tpu.memref_slice %arg2[%210, %c0_i32_102] : memref<50x32xf32, #tpu.memory_space<any>> -> memref<1x32xf32, #tpu.memory_space<any>>
    %212 = tpu.memref_squeeze %211 : memref<1x32xf32, #tpu.memory_space<any>> -> memref<32xf32, #tpu.memory_space<any>>
    %c0_i32_103 = arith.constant 0 : i32
    %213 = tpu.memref_slice %arg3[%c7_i32_100, %c0_i32_103] : memref<16x32xf32, #tpu.memory_space<vmem>> -> memref<1x32xf32, #tpu.memory_space<vmem>>
    %214 = tpu.memref_squeeze %213 : memref<1x32xf32, #tpu.memory_space<vmem>> -> memref<32xf32, #tpu.memory_space<vmem>>
    %215 = tpu.memref_slice %arg4[%c7_i32_101] : memref<16x!tpu.dma_semaphore, #tpu.memory_space<semaphore_mem>> -> memref<1x!tpu.dma_semaphore, #tpu.memory_space<semaphore_mem>>
    %216 = tpu.memref_squeeze %215 : memref<1x!tpu.dma_semaphore, #tpu.memory_space<semaphore_mem>> -> memref<!tpu.dma_semaphore, #tpu.memory_space<semaphore_mem>>
    tpu.wait_dma2 semaphore(%216 : memref<!tpu.dma_semaphore, #tpu.memory_space<semaphore_mem>>) src(%212 : memref<32xf32, #tpu.memory_space<any>>) dst(%214 : memref<32xf32, #tpu.memory_space<vmem>>)
    %c8_i32_104 = arith.constant 8 : i32
    %217 = arith.addi %0, %c8_i32_104 : i32
    %218 = arith.index_cast %217 : i32 to index
    %219 = memref.load %arg1[%218] : memref<16xi32, #tpu.memory_space<smem>>
    %c8_i32_105 = arith.constant 8 : i32
    %c8_i32_106 = arith.constant 8 : i32
    %c0_i32_107 = arith.constant 0 : i32
    %220 = tpu.memref_slice %arg2[%219, %c0_i32_107] : memref<50x32xf32, #tpu.memory_space<any>> -> memref<1x32xf32, #tpu.memory_space<any>>
    %221 = tpu.memref_squeeze %220 : memref<1x32xf32, #tpu.memory_space<any>> -> memref<32xf32, #tpu.memory_space<any>>
    %c0_i32_108 = arith.constant 0 : i32
    %222 = tpu.memref_slice %arg3[%c8_i32_105, %c0_i32_108] : memref<16x32xf32, #tpu.memory_space<vmem>> -> memref<1x32xf32, #tpu.memory_space<vmem>>
    %223 = tpu.memref_squeeze %222 : memref<1x32xf32, #tpu.memory_space<vmem>> -> memref<32xf32, #tpu.memory_space<vmem>>
    %224 = tpu.memref_slice %arg4[%c8_i32_106] : memref<16x!tpu.dma_semaphore, #tpu.memory_space<semaphore_mem>> -> memref<1x!tpu.dma_semaphore, #tpu.memory_space<semaphore_mem>>
    %225 = tpu.memref_squeeze %224 : memref<1x!tpu.dma_semaphore, #tpu.memory_space<semaphore_mem>> -> memref<!tpu.dma_semaphore, #tpu.memory_space<semaphore_mem>>
    tpu.wait_dma2 semaphore(%225 : memref<!tpu.dma_semaphore, #tpu.memory_space<semaphore_mem>>) src(%221 : memref<32xf32, #tpu.memory_space<any>>) dst(%223 : memref<32xf32, #tpu.memory_space<vmem>>)
    %c9_i32_109 = arith.constant 9 : i32
    %226 = arith.addi %0, %c9_i32_109 : i32
    %227 = arith.index_cast %226 : i32 to index
    %228 = memref.load %arg1[%227] : memref<16xi32, #tpu.memory_space<smem>>
    %c9_i32_110 = arith.constant 9 : i32
    %c9_i32_111 = arith.constant 9 : i32
    %c0_i32_112 = arith.constant 0 : i32
    %229 = tpu.memref_slice %arg2[%228, %c0_i32_112] : memref<50x32xf32, #tpu.memory_space<any>> -> memref<1x32xf32, #tpu.memory_space<any>>
    %230 = tpu.memref_squeeze %229 : memref<1x32xf32, #tpu.memory_space<any>> -> memref<32xf32, #tpu.memory_space<any>>
    %c0_i32_113 = arith.constant 0 : i32
    %231 = tpu.memref_slice %arg3[%c9_i32_110, %c0_i32_113] : memref<16x32xf32, #tpu.memory_space<vmem>> -> memref<1x32xf32, #tpu.memory_space<vmem>>
    %232 = tpu.memref_squeeze %231 : memref<1x32xf32, #tpu.memory_space<vmem>> -> memref<32xf32, #tpu.memory_space<vmem>>
    %233 = tpu.memref_slice %arg4[%c9_i32_111] : memref<16x!tpu.dma_semaphore, #tpu.memory_space<semaphore_mem>> -> memref<1x!tpu.dma_semaphore, #tpu.memory_space<semaphore_mem>>
    %234 = tpu.memref_squeeze %233 : memref<1x!tpu.dma_semaphore, #tpu.memory_space<semaphore_mem>> -> memref<!tpu.dma_semaphore, #tpu.memory_space<semaphore_mem>>
    tpu.wait_dma2 semaphore(%234 : memref<!tpu.dma_semaphore, #tpu.memory_space<semaphore_mem>>) src(%230 : memref<32xf32, #tpu.memory_space<any>>) dst(%232 : memref<32xf32, #tpu.memory_space<vmem>>)
    %c10_i32_114 = arith.constant 10 : i32
    %235 = arith.addi %0, %c10_i32_114 : i32
    %236 = arith.index_cast %235 : i32 to index
    %237 = memref.load %arg1[%236] : memref<16xi32, #tpu.memory_space<smem>>
    %c10_i32_115 = arith.constant 10 : i32
    %c10_i32_116 = arith.constant 10 : i32
    %c0_i32_117 = arith.constant 0 : i32
    %238 = tpu.memref_slice %arg2[%237, %c0_i32_117] : memref<50x32xf32, #tpu.memory_space<any>> -> memref<1x32xf32, #tpu.memory_space<any>>
    %239 = tpu.memref_squeeze %238 : memref<1x32xf32, #tpu.memory_space<any>> -> memref<32xf32, #tpu.memory_space<any>>
    %c0_i32_118 = arith.constant 0 : i32
    %240 = tpu.memref_slice %arg3[%c10_i32_115, %c0_i32_118] : memref<16x32xf32, #tpu.memory_space<vmem>> -> memref<1x32xf32, #tpu.memory_space<vmem>>
    %241 = tpu.memref_squeeze %240 : memref<1x32xf32, #tpu.memory_space<vmem>> -> memref<32xf32, #tpu.memory_space<vmem>>
    %242 = tpu.memref_slice %arg4[%c10_i32_116] : memref<16x!tpu.dma_semaphore, #tpu.memory_space<semaphore_mem>> -> memref<1x!tpu.dma_semaphore, #tpu.memory_space<semaphore_mem>>
    %243 = tpu.memref_squeeze %242 : memref<1x!tpu.dma_semaphore, #tpu.memory_space<semaphore_mem>> -> memref<!tpu.dma_semaphore, #tpu.memory_space<semaphore_mem>>
    tpu.wait_dma2 semaphore(%243 : memref<!tpu.dma_semaphore, #tpu.memory_space<semaphore_mem>>) src(%239 : memref<32xf32, #tpu.memory_space<any>>) dst(%241 : memref<32xf32, #tpu.memory_space<vmem>>)
    %c11_i32_119 = arith.constant 11 : i32
    %244 = arith.addi %0, %c11_i32_119 : i32
    %245 = arith.index_cast %244 : i32 to index
    %246 = memref.load %arg1[%245] : memref<16xi32, #tpu.memory_space<smem>>
    %c11_i32_120 = arith.constant 11 : i32
    %c11_i32_121 = arith.constant 11 : i32
    %c0_i32_122 = arith.constant 0 : i32
    %247 = tpu.memref_slice %arg2[%246, %c0_i32_122] : memref<50x32xf32, #tpu.memory_space<any>> -> memref<1x32xf32, #tpu.memory_space<any>>
    %248 = tpu.memref_squeeze %247 : memref<1x32xf32, #tpu.memory_space<any>> -> memref<32xf32, #tpu.memory_space<any>>
    %c0_i32_123 = arith.constant 0 : i32
    %249 = tpu.memref_slice %arg3[%c11_i32_120, %c0_i32_123] : memref<16x32xf32, #tpu.memory_space<vmem>> -> memref<1x32xf32, #tpu.memory_space<vmem>>
    %250 = tpu.memref_squeeze %249 : memref<1x32xf32, #tpu.memory_space<vmem>> -> memref<32xf32, #tpu.memory_space<vmem>>
    %251 = tpu.memref_slice %arg4[%c11_i32_121] : memref<16x!tpu.dma_semaphore, #tpu.memory_space<semaphore_mem>> -> memref<1x!tpu.dma_semaphore, #tpu.memory_space<semaphore_mem>>
    %252 = tpu.memref_squeeze %251 : memref<1x!tpu.dma_semaphore, #tpu.memory_space<semaphore_mem>> -> memref<!tpu.dma_semaphore, #tpu.memory_space<semaphore_mem>>
    tpu.wait_dma2 semaphore(%252 : memref<!tpu.dma_semaphore, #tpu.memory_space<semaphore_mem>>) src(%248 : memref<32xf32, #tpu.memory_space<any>>) dst(%250 : memref<32xf32, #tpu.memory_space<vmem>>)
    %c12_i32_124 = arith.constant 12 : i32
    %253 = arith.addi %0, %c12_i32_124 : i32
    %254 = arith.index_cast %253 : i32 to index
    %255 = memref.load %arg1[%254] : memref<16xi32, #tpu.memory_space<smem>>
    %c12_i32_125 = arith.constant 12 : i32
    %c12_i32_126 = arith.constant 12 : i32
    %c0_i32_127 = arith.constant 0 : i32
    %256 = tpu.memref_slice %arg2[%255, %c0_i32_127] : memref<50x32xf32, #tpu.memory_space<any>> -> memref<1x32xf32, #tpu.memory_space<any>>
    %257 = tpu.memref_squeeze %256 : memref<1x32xf32, #tpu.memory_space<any>> -> memref<32xf32, #tpu.memory_space<any>>
    %c0_i32_128 = arith.constant 0 : i32
    %258 = tpu.memref_slice %arg3[%c12_i32_125, %c0_i32_128] : memref<16x32xf32, #tpu.memory_space<vmem>> -> memref<1x32xf32, #tpu.memory_space<vmem>>
    %259 = tpu.memref_squeeze %258 : memref<1x32xf32, #tpu.memory_space<vmem>> -> memref<32xf32, #tpu.memory_space<vmem>>
    %260 = tpu.memref_slice %arg4[%c12_i32_126] : memref<16x!tpu.dma_semaphore, #tpu.memory_space<semaphore_mem>> -> memref<1x!tpu.dma_semaphore, #tpu.memory_space<semaphore_mem>>
    %261 = tpu.memref_squeeze %260 : memref<1x!tpu.dma_semaphore, #tpu.memory_space<semaphore_mem>> -> memref<!tpu.dma_semaphore, #tpu.memory_space<semaphore_mem>>
    tpu.wait_dma2 semaphore(%261 : memref<!tpu.dma_semaphore, #tpu.memory_space<semaphore_mem>>) src(%257 : memref<32xf32, #tpu.memory_space<any>>) dst(%259 : memref<32xf32, #tpu.memory_space<vmem>>)
    %c13_i32_129 = arith.constant 13 : i32
    %262 = arith.addi %0, %c13_i32_129 : i32
    %263 = arith.index_cast %262 : i32 to index
    %264 = memref.load %arg1[%263] : memref<16xi32, #tpu.memory_space<smem>>
    %c13_i32_130 = arith.constant 13 : i32
    %c13_i32_131 = arith.constant 13 : i32
    %c0_i32_132 = arith.constant 0 : i32
    %265 = tpu.memref_slice %arg2[%264, %c0_i32_132] : memref<50x32xf32, #tpu.memory_space<any>> -> memref<1x32xf32, #tpu.memory_space<any>>
    %266 = tpu.memref_squeeze %265 : memref<1x32xf32, #tpu.memory_space<any>> -> memref<32xf32, #tpu.memory_space<any>>
    %c0_i32_133 = arith.constant 0 : i32
    %267 = tpu.memref_slice %arg3[%c13_i32_130, %c0_i32_133] : memref<16x32xf32, #tpu.memory_space<vmem>> -> memref<1x32xf32, #tpu.memory_space<vmem>>
    %268 = tpu.memref_squeeze %267 : memref<1x32xf32, #tpu.memory_space<vmem>> -> memref<32xf32, #tpu.memory_space<vmem>>
    %269 = tpu.memref_slice %arg4[%c13_i32_131] : memref<16x!tpu.dma_semaphore, #tpu.memory_space<semaphore_mem>> -> memref<1x!tpu.dma_semaphore, #tpu.memory_space<semaphore_mem>>
    %270 = tpu.memref_squeeze %269 : memref<1x!tpu.dma_semaphore, #tpu.memory_space<semaphore_mem>> -> memref<!tpu.dma_semaphore, #tpu.memory_space<semaphore_mem>>
    tpu.wait_dma2 semaphore(%270 : memref<!tpu.dma_semaphore, #tpu.memory_space<semaphore_mem>>) src(%266 : memref<32xf32, #tpu.memory_space<any>>) dst(%268 : memref<32xf32, #tpu.memory_space<vmem>>)
    %c14_i32_134 = arith.constant 14 : i32
    %271 = arith.addi %0, %c14_i32_134 : i32
    %272 = arith.index_cast %271 : i32 to index
    %273 = memref.load %arg1[%272] : memref<16xi32, #tpu.memory_space<smem>>
    %c14_i32_135 = arith.constant 14 : i32
    %c14_i32_136 = arith.constant 14 : i32
    %c0_i32_137 = arith.constant 0 : i32
    %274 = tpu.memref_slice %arg2[%273, %c0_i32_137] : memref<50x32xf32, #tpu.memory_space<any>> -> memref<1x32xf32, #tpu.memory_space<any>>
    %275 = tpu.memref_squeeze %274 : memref<1x32xf32, #tpu.memory_space<any>> -> memref<32xf32, #tpu.memory_space<any>>
    %c0_i32_138 = arith.constant 0 : i32
    %276 = tpu.memref_slice %arg3[%c14_i32_135, %c0_i32_138] : memref<16x32xf32, #tpu.memory_space<vmem>> -> memref<1x32xf32, #tpu.memory_space<vmem>>
    %277 = tpu.memref_squeeze %276 : memref<1x32xf32, #tpu.memory_space<vmem>> -> memref<32xf32, #tpu.memory_space<vmem>>
    %278 = tpu.memref_slice %arg4[%c14_i32_136] : memref<16x!tpu.dma_semaphore, #tpu.memory_space<semaphore_mem>> -> memref<1x!tpu.dma_semaphore, #tpu.memory_space<semaphore_mem>>
    %279 = tpu.memref_squeeze %278 : memref<1x!tpu.dma_semaphore, #tpu.memory_space<semaphore_mem>> -> memref<!tpu.dma_semaphore, #tpu.memory_space<semaphore_mem>>
    tpu.wait_dma2 semaphore(%279 : memref<!tpu.dma_semaphore, #tpu.memory_space<semaphore_mem>>) src(%275 : memref<32xf32, #tpu.memory_space<any>>) dst(%277 : memref<32xf32, #tpu.memory_space<vmem>>)
    %c15_i32_139 = arith.constant 15 : i32
    %280 = arith.addi %0, %c15_i32_139 : i32
    %281 = arith.index_cast %280 : i32 to index
    %282 = memref.load %arg1[%281] : memref<16xi32, #tpu.memory_space<smem>>
    %c15_i32_140 = arith.constant 15 : i32
    %c15_i32_141 = arith.constant 15 : i32
    %c0_i32_142 = arith.constant 0 : i32
    %283 = tpu.memref_slice %arg2[%282, %c0_i32_142] : memref<50x32xf32, #tpu.memory_space<any>> -> memref<1x32xf32, #tpu.memory_space<any>>
    %284 = tpu.memref_squeeze %283 : memref<1x32xf32, #tpu.memory_space<any>> -> memref<32xf32, #tpu.memory_space<any>>
    %c0_i32_143 = arith.constant 0 : i32
    %285 = tpu.memref_slice %arg3[%c15_i32_140, %c0_i32_143] : memref<16x32xf32, #tpu.memory_space<vmem>> -> memref<1x32xf32, #tpu.memory_space<vmem>>
    %286 = tpu.memref_squeeze %285 : memref<1x32xf32, #tpu.memory_space<vmem>> -> memref<32xf32, #tpu.memory_space<vmem>>
    %287 = tpu.memref_slice %arg4[%c15_i32_141] : memref<16x!tpu.dma_semaphore, #tpu.memory_space<semaphore_mem>> -> memref<1x!tpu.dma_semaphore, #tpu.memory_space<semaphore_mem>>
    %288 = tpu.memref_squeeze %287 : memref<1x!tpu.dma_semaphore, #tpu.memory_space<semaphore_mem>> -> memref<!tpu.dma_semaphore, #tpu.memory_space<semaphore_mem>>
    tpu.wait_dma2 semaphore(%288 : memref<!tpu.dma_semaphore, #tpu.memory_space<semaphore_mem>>) src(%284 : memref<32xf32, #tpu.memory_space<any>>) dst(%286 : memref<32xf32, #tpu.memory_space<vmem>>)
    return
  }
  func.func @transform_1(%arg0: i32, %arg1: memref<16xi32, #tpu.memory_space<smem>>) -> (i32, i32) {
    %c0_i32 = arith.constant 0 : i32
    %c0_i32_0 = arith.constant 0 : i32
    return %arg0, %c0_i32 : i32, i32
  }
}

module attributes {stable_mosaic.version = 11 : i64} {
  func.func @_ffn_kernel(%arg0: i32, %arg1: i32, %arg2: memref<16x32xf32, #tpu.memory_space<vmem>>, %arg3: memref<32x1024xbf16, #tpu.memory_space<vmem>>, %arg4: memref<1x1024xf32, #tpu.memory_space<vmem>>, %arg5: memref<1024x32xbf16, #tpu.memory_space<vmem>>, %arg6: memref<1x32xf32, #tpu.memory_space<vmem>>, %arg7: memref<1x32xf32, #tpu.memory_space<vmem>>, %arg8: memref<1x32xf32, #tpu.memory_space<vmem>>, %arg9: memref<16x32xf32, #tpu.memory_space<vmem>>) attributes {dimension_semantics = [#tpu.dimension_semantics<parallel>, #tpu.dimension_semantics<arbitrary>], iteration_bounds = array<i64: 1, 2>, scalar_prefetch = 0 : i64, scratch_operands = 0 : i64, tpu.core_type = #tpu.core_type<tc>, window_params = [{transform_indices = @transform_0, window_bounds = array<i64: 16, 32>}, {transform_indices = @transform_1, window_bounds = array<i64: 32, 1024>}, {transform_indices = @transform_2, window_bounds = array<i64: 1, 1024>}, {transform_indices = @transform_3, window_bounds = array<i64: 1024, 32>}, {pipeline_mode = #tpu.pipeline_mode<synchronous>, transform_indices = @transform_4, window_bounds = array<i64: 1, 32>}, {pipeline_mode = #tpu.pipeline_mode<synchronous>, transform_indices = @transform_5, window_bounds = array<i64: 1, 32>}, {pipeline_mode = #tpu.pipeline_mode<synchronous>, transform_indices = @transform_6, window_bounds = array<i64: 1, 32>}, {transform_indices = @transform_7, window_bounds = array<i64: 16, 32>}]} {
    %c0_i32 = arith.constant 0 : i32
    %0 = arith.cmpi eq, %arg1, %c0_i32 : i32
    %1 = arith.extui %0 : i1 to i32
    %c0_i32_0 = arith.constant 0 : i32
    %2 = arith.cmpi ne, %1, %c0_i32_0 : i32
    scf.if %2 {
      %cst_15 = arith.constant 0.000000e+00 : f32
      %21 = vector.broadcast %cst_15 : f32 to vector<16x32xf32>
      %c0_16 = arith.constant 0 : index
      %c0_17 = arith.constant 0 : index
      %22 = vector.load %arg9[%c0_16, %c0_17] : memref<16x32xf32, #tpu.memory_space<vmem>>, vector<16x32xf32>
      tpu.vector_store %arg9[%c0_16, %c0_17], %21 {strides = array<i32>} : memref<16x32xf32, #tpu.memory_space<vmem>>, vector<16x32xf32>,
    } else {
    }
    %c0 = arith.constant 0 : index
    %c0_1 = arith.constant 0 : index
    %3 = vector.load %arg2[%c0, %c0_1] : memref<16x32xf32, #tpu.memory_space<vmem>>, vector<16x32xf32>
    %4 = arith.truncf %3 : vector<16x32xf32> to vector<16x32xbf16>
    %c0_2 = arith.constant 0 : index
    %c0_3 = arith.constant 0 : index
    %5 = vector.load %arg3[%c0_2, %c0_3] : memref<32x1024xbf16, #tpu.memory_space<vmem>>, vector<32x1024xbf16>
    %cst = arith.constant dense<0.000000e+00> : vector<16x1024xf32>
    %6 = tpu.matmul %4, %5, %cst {dimension_numbers = #tpu.dot_dimension_numbers<[1], [0], [0], [1], [0, 0, 1, 1], [], []>} : vector<16x32xbf16>, vector<32x1024xbf16>, vector<16x1024xf32> -> vector<16x1024xf32>
    %c0_4 = arith.constant 0 : index
    %c0_5 = arith.constant 0 : index
    %7 = vector.load %arg4[%c0_4, %c0_5] : memref<1x1024xf32, #tpu.memory_space<vmem>>, vector<1x1024xf32>
    %8 = vector.broadcast %7 : vector<1x1024xf32> to vector<16x1024xf32>
    %9 = arith.addf %6, %8 : vector<16x1024xf32>
    %cst_6 = arith.constant 0.000000e+00 : f32
    %10 = vector.broadcast %cst_6 : f32 to vector<16x1024xf32>
    %11 = arith.maximumf %9, %10 : vector<16x1024xf32>
    %c0_7 = arith.constant 0 : index
    %c0_8 = arith.constant 0 : index
    %12 = vector.load %arg9[%c0_7, %c0_8] : memref<16x32xf32, #tpu.memory_space<vmem>>, vector<16x32xf32>
    %13 = arith.truncf %11 : vector<16x1024xf32> to vector<16x1024xbf16>
    %c0_9 = arith.constant 0 : index
    %c0_10 = arith.constant 0 : index
    %14 = vector.load %arg5[%c0_9, %c0_10] : memref<1024x32xbf16, #tpu.memory_space<vmem>>, vector<1024x32xbf16>
    %cst_11 = arith.constant dense<0.000000e+00> : vector<16x32xf32>
    %15 = tpu.matmul %13, %14, %cst_11 {dimension_numbers = #tpu.dot_dimension_numbers<[1], [0], [0], [1], [0, 0, 1, 1], [], []>} : vector<16x1024xbf16>, vector<1024x32xbf16>, vector<16x32xf32> -> vector<16x32xf32>
    %16 = arith.addf %12, %15 : vector<16x32xf32>
    %c0_12 = arith.constant 0 : index
    %c0_13 = arith.constant 0 : index
    %17 = vector.load %arg9[%c0_12, %c0_13] : memref<16x32xf32, #tpu.memory_space<vmem>>, vector<16x32xf32>
    tpu.vector_store %arg9[%c0_12, %c0_13], %16 {strides = array<i32>} : memref<16x32xf32, #tpu.memory_space<vmem>>, vector<16x32xf32>,
    %c1_i32 = arith.constant 1 : i32
    %18 = arith.cmpi eq, %arg1, %c1_i32 : i32
    %19 = arith.extui %18 : i1 to i32
    %c0_i32_14 = arith.constant 0 : i32
    %20 = arith.cmpi ne, %19, %c0_i32_14 : i32
    scf.if %20 {
      %c0_15 = arith.constant 0 : index
      %c0_16 = arith.constant 0 : index
      %21 = vector.load %arg9[%c0_15, %c0_16] : memref<16x32xf32, #tpu.memory_space<vmem>>, vector<16x32xf32>
      %c0_17 = arith.constant 0 : index
      %c0_18 = arith.constant 0 : index
      %22 = vector.load %arg6[%c0_17, %c0_18] : memref<1x32xf32, #tpu.memory_space<vmem>>, vector<1x32xf32>
      %23 = vector.broadcast %22 : vector<1x32xf32> to vector<16x32xf32>
      %24 = arith.addf %21, %23 : vector<16x32xf32>
      %c0_19 = arith.constant 0 : index
      %c0_20 = arith.constant 0 : index
      %25 = vector.load %arg2[%c0_19, %c0_20] : memref<16x32xf32, #tpu.memory_space<vmem>>, vector<16x32xf32>
      %26 = arith.addf %24, %25 : vector<16x32xf32>
      %c0_21 = arith.constant 0 : index
      %c0_22 = arith.constant 0 : index
      %27 = vector.load %arg7[%c0_21, %c0_22] : memref<1x32xf32, #tpu.memory_space<vmem>>, vector<1x32xf32>
      %c0_23 = arith.constant 0 : index
      %c0_24 = arith.constant 0 : index
      %28 = vector.load %arg8[%c0_23, %c0_24] : memref<1x32xf32, #tpu.memory_space<vmem>>, vector<1x32xf32>
      %cst_25 = arith.constant dense<0.000000e+00> : vector<16xf32>
      %29 = vector.multi_reduction <add>, %26, %cst_25 [1] : vector<16x32xf32> to vector<16xf32>
      %30 = vector.shape_cast %29 : vector<16xf32> to vector<16x1xf32>
      %cst_26 = arith.constant 3.200000e+01 : f32
      %31 = vector.broadcast %cst_26 : f32 to vector<16x1xf32>
      %32 = arith.divf %30, %31 : vector<16x1xf32>
      %33 = vector.broadcast %32 : vector<16x1xf32> to vector<16x32xf32>
      %34 = arith.subf %26, %33 : vector<16x32xf32>
      %35 = arith.mulf %34, %34 : vector<16x32xf32>
      %cst_27 = arith.constant dense<0.000000e+00> : vector<16xf32>
      %36 = vector.multi_reduction <add>, %35, %cst_27 [1] : vector<16x32xf32> to vector<16xf32>
      %37 = vector.shape_cast %36 : vector<16xf32> to vector<16x1xf32>
      %cst_28 = arith.constant 3.200000e+01 : f32
      %38 = vector.broadcast %cst_28 : f32 to vector<16x1xf32>
      %39 = arith.divf %37, %38 : vector<16x1xf32>
      %40 = vector.broadcast %32 : vector<16x1xf32> to vector<16x32xf32>
      %41 = arith.subf %26, %40 : vector<16x32xf32>
      %cst_29 = arith.constant 9.99999974E-6 : f32
      %42 = vector.broadcast %cst_29 : f32 to vector<16x1xf32>
      %43 = arith.addf %39, %42 : vector<16x1xf32>
      %44 = math.rsqrt %43 : vector<16x1xf32>
      %45 = vector.broadcast %44 : vector<16x1xf32> to vector<16x32xf32>
      %46 = arith.mulf %41, %45 : vector<16x32xf32>
      %47 = vector.broadcast %27 : vector<1x32xf32> to vector<16x32xf32>
      %48 = arith.mulf %46, %47 : vector<16x32xf32>
      %49 = vector.broadcast %28 : vector<1x32xf32> to vector<16x32xf32>
      %50 = arith.addf %48, %49 : vector<16x32xf32>
      %c0_30 = arith.constant 0 : index
      %c0_31 = arith.constant 0 : index
      %51 = vector.load %arg9[%c0_30, %c0_31] : memref<16x32xf32, #tpu.memory_space<vmem>>, vector<16x32xf32>
      tpu.vector_store %arg9[%c0_30, %c0_31], %50 {strides = array<i32>} : memref<16x32xf32, #tpu.memory_space<vmem>>, vector<16x32xf32>,
    } else {
    }
    return
  }
  func.func @transform_0(%arg0: i32, %arg1: i32) -> (i32, i32) {
    %c0_i32 = arith.constant 0 : i32
    %c0_i32_0 = arith.constant 0 : i32
    return %arg0, %c0_i32 : i32, i32
  }
  func.func @transform_1(%arg0: i32, %arg1: i32) -> (i32, i32) {
    %c0_i32 = arith.constant 0 : i32
    %c0_i32_0 = arith.constant 0 : i32
    return %c0_i32, %arg1 : i32, i32
  }
  func.func @transform_2(%arg0: i32, %arg1: i32) -> (i32, i32) {
    %c0_i32 = arith.constant 0 : i32
    %c0_i32_0 = arith.constant 0 : i32
    return %c0_i32, %arg1 : i32, i32
  }
  func.func @transform_3(%arg0: i32, %arg1: i32) -> (i32, i32) {
    %c0_i32 = arith.constant 0 : i32
    %c0_i32_0 = arith.constant 0 : i32
    return %arg1, %c0_i32 : i32, i32
  }
  func.func @transform_4(%arg0: i32, %arg1: i32) -> (i32, i32) {
    %c0_i32 = arith.constant 0 : i32
    %c0_i32_0 = arith.constant 0 : i32
    %c0_i32_1 = arith.constant 0 : i32
    return %c0_i32, %c0_i32_0 : i32, i32
  }
  func.func @transform_5(%arg0: i32, %arg1: i32) -> (i32, i32) {
    %c0_i32 = arith.constant 0 : i32
    %c0_i32_0 = arith.constant 0 : i32
    %c0_i32_1 = arith.constant 0 : i32
    return %c0_i32, %c0_i32_0 : i32, i32
  }
  func.func @transform_6(%arg0: i32, %arg1: i32) -> (i32, i32) {
    %c0_i32 = arith.constant 0 : i32
    %c0_i32_0 = arith.constant 0 : i32
    %c0_i32_1 = arith.constant 0 : i32
    return %c0_i32, %c0_i32_0 : i32, i32
  }
  func.func @transform_7(%arg0: i32, %arg1: i32) -> (i32, i32) {
    %c0_i32 = arith.constant 0 : i32
    %c0_i32_0 = arith.constant 0 : i32
    return %arg0, %c0_i32 : i32, i32
  }
}

module attributes {stable_mosaic.version = 11 : i64} {
  func.func @_ffn_kernel(%arg0: i32, %arg1: i32, %arg2: memref<16x32xf32, #tpu.memory_space<vmem>>, %arg3: memref<32x1024xbf16, #tpu.memory_space<vmem>>, %arg4: memref<1x1024xf32, #tpu.memory_space<vmem>>, %arg5: memref<1024x32xbf16, #tpu.memory_space<vmem>>, %arg6: memref<1x32xf32, #tpu.memory_space<vmem>>, %arg7: memref<1x32xf32, #tpu.memory_space<vmem>>, %arg8: memref<1x32xf32, #tpu.memory_space<vmem>>, %arg9: memref<1x32xf32, #tpu.memory_space<vmem>>, %arg10: memref<1x32xf32, #tpu.memory_space<vmem>>, %arg11: memref<16x32xf32, #tpu.memory_space<vmem>>) attributes {dimension_semantics = [#tpu.dimension_semantics<parallel>, #tpu.dimension_semantics<arbitrary>], iteration_bounds = array<i64: 1, 2>, scalar_prefetch = 0 : i64, scratch_operands = 0 : i64, tpu.core_type = #tpu.core_type<tc>, window_params = [{transform_indices = @transform_0, window_bounds = array<i64: 16, 32>}, {transform_indices = @transform_1, window_bounds = array<i64: 32, 1024>}, {transform_indices = @transform_2, window_bounds = array<i64: 1, 1024>}, {transform_indices = @transform_3, window_bounds = array<i64: 1024, 32>}, {pipeline_mode = #tpu.pipeline_mode<synchronous>, transform_indices = @transform_4, window_bounds = array<i64: 1, 32>}, {pipeline_mode = #tpu.pipeline_mode<synchronous>, transform_indices = @transform_5, window_bounds = array<i64: 1, 32>}, {pipeline_mode = #tpu.pipeline_mode<synchronous>, transform_indices = @transform_6, window_bounds = array<i64: 1, 32>}, {pipeline_mode = #tpu.pipeline_mode<synchronous>, transform_indices = @transform_7, window_bounds = array<i64: 1, 32>}, {pipeline_mode = #tpu.pipeline_mode<synchronous>, transform_indices = @transform_8, window_bounds = array<i64: 1, 32>}, {transform_indices = @transform_9, window_bounds = array<i64: 16, 32>}]} {
    %c0_i32 = arith.constant 0 : i32
    %0 = arith.cmpi eq, %arg1, %c0_i32 : i32
    %1 = arith.extui %0 : i1 to i32
    %c0_i32_0 = arith.constant 0 : i32
    %2 = arith.cmpi ne, %1, %c0_i32_0 : i32
    scf.if %2 {
      %cst_15 = arith.constant 0.000000e+00 : f32
      %21 = vector.broadcast %cst_15 : f32 to vector<16x32xf32>
      %c0_16 = arith.constant 0 : index
      %c0_17 = arith.constant 0 : index
      %22 = vector.load %arg11[%c0_16, %c0_17] : memref<16x32xf32, #tpu.memory_space<vmem>>, vector<16x32xf32>
      tpu.vector_store %arg11[%c0_16, %c0_17], %21 {strides = array<i32>} : memref<16x32xf32, #tpu.memory_space<vmem>>, vector<16x32xf32>,
    } else {
    }
    %c0 = arith.constant 0 : index
    %c0_1 = arith.constant 0 : index
    %3 = vector.load %arg2[%c0, %c0_1] : memref<16x32xf32, #tpu.memory_space<vmem>>, vector<16x32xf32>
    %4 = arith.truncf %3 : vector<16x32xf32> to vector<16x32xbf16>
    %c0_2 = arith.constant 0 : index
    %c0_3 = arith.constant 0 : index
    %5 = vector.load %arg3[%c0_2, %c0_3] : memref<32x1024xbf16, #tpu.memory_space<vmem>>, vector<32x1024xbf16>
    %cst = arith.constant dense<0.000000e+00> : vector<16x1024xf32>
    %6 = tpu.matmul %4, %5, %cst {dimension_numbers = #tpu.dot_dimension_numbers<[1], [0], [0], [1], [0, 0, 1, 1], [], []>} : vector<16x32xbf16>, vector<32x1024xbf16>, vector<16x1024xf32> -> vector<16x1024xf32>
    %c0_4 = arith.constant 0 : index
    %c0_5 = arith.constant 0 : index
    %7 = vector.load %arg4[%c0_4, %c0_5] : memref<1x1024xf32, #tpu.memory_space<vmem>>, vector<1x1024xf32>
    %8 = vector.broadcast %7 : vector<1x1024xf32> to vector<16x1024xf32>
    %9 = arith.addf %6, %8 : vector<16x1024xf32>
    %cst_6 = arith.constant 0.000000e+00 : f32
    %10 = vector.broadcast %cst_6 : f32 to vector<16x1024xf32>
    %11 = arith.maximumf %9, %10 : vector<16x1024xf32>
    %c0_7 = arith.constant 0 : index
    %c0_8 = arith.constant 0 : index
    %12 = vector.load %arg11[%c0_7, %c0_8] : memref<16x32xf32, #tpu.memory_space<vmem>>, vector<16x32xf32>
    %13 = arith.truncf %11 : vector<16x1024xf32> to vector<16x1024xbf16>
    %c0_9 = arith.constant 0 : index
    %c0_10 = arith.constant 0 : index
    %14 = vector.load %arg5[%c0_9, %c0_10] : memref<1024x32xbf16, #tpu.memory_space<vmem>>, vector<1024x32xbf16>
    %cst_11 = arith.constant dense<0.000000e+00> : vector<16x32xf32>
    %15 = tpu.matmul %13, %14, %cst_11 {dimension_numbers = #tpu.dot_dimension_numbers<[1], [0], [0], [1], [0, 0, 1, 1], [], []>} : vector<16x1024xbf16>, vector<1024x32xbf16>, vector<16x32xf32> -> vector<16x32xf32>
    %16 = arith.addf %12, %15 : vector<16x32xf32>
    %c0_12 = arith.constant 0 : index
    %c0_13 = arith.constant 0 : index
    %17 = vector.load %arg11[%c0_12, %c0_13] : memref<16x32xf32, #tpu.memory_space<vmem>>, vector<16x32xf32>
    tpu.vector_store %arg11[%c0_12, %c0_13], %16 {strides = array<i32>} : memref<16x32xf32, #tpu.memory_space<vmem>>, vector<16x32xf32>,
    %c1_i32 = arith.constant 1 : i32
    %18 = arith.cmpi eq, %arg1, %c1_i32 : i32
    %19 = arith.extui %18 : i1 to i32
    %c0_i32_14 = arith.constant 0 : i32
    %20 = arith.cmpi ne, %19, %c0_i32_14 : i32
    scf.if %20 {
      %c0_15 = arith.constant 0 : index
      %c0_16 = arith.constant 0 : index
      %21 = vector.load %arg11[%c0_15, %c0_16] : memref<16x32xf32, #tpu.memory_space<vmem>>, vector<16x32xf32>
      %c0_17 = arith.constant 0 : index
      %c0_18 = arith.constant 0 : index
      %22 = vector.load %arg6[%c0_17, %c0_18] : memref<1x32xf32, #tpu.memory_space<vmem>>, vector<1x32xf32>
      %23 = vector.broadcast %22 : vector<1x32xf32> to vector<16x32xf32>
      %24 = arith.addf %21, %23 : vector<16x32xf32>
      %c0_19 = arith.constant 0 : index
      %c0_20 = arith.constant 0 : index
      %25 = vector.load %arg2[%c0_19, %c0_20] : memref<16x32xf32, #tpu.memory_space<vmem>>, vector<16x32xf32>
      %26 = arith.addf %24, %25 : vector<16x32xf32>
      %c0_21 = arith.constant 0 : index
      %c0_22 = arith.constant 0 : index
      %27 = vector.load %arg7[%c0_21, %c0_22] : memref<1x32xf32, #tpu.memory_space<vmem>>, vector<1x32xf32>
      %c0_23 = arith.constant 0 : index
      %c0_24 = arith.constant 0 : index
      %28 = vector.load %arg8[%c0_23, %c0_24] : memref<1x32xf32, #tpu.memory_space<vmem>>, vector<1x32xf32>
      %cst_25 = arith.constant dense<0.000000e+00> : vector<16xf32>
      %29 = vector.multi_reduction <add>, %26, %cst_25 [1] : vector<16x32xf32> to vector<16xf32>
      %30 = vector.shape_cast %29 : vector<16xf32> to vector<16x1xf32>
      %cst_26 = arith.constant 3.200000e+01 : f32
      %31 = vector.broadcast %cst_26 : f32 to vector<16x1xf32>
      %32 = arith.divf %30, %31 : vector<16x1xf32>
      %33 = vector.broadcast %32 : vector<16x1xf32> to vector<16x32xf32>
      %34 = arith.subf %26, %33 : vector<16x32xf32>
      %35 = arith.mulf %34, %34 : vector<16x32xf32>
      %cst_27 = arith.constant dense<0.000000e+00> : vector<16xf32>
      %36 = vector.multi_reduction <add>, %35, %cst_27 [1] : vector<16x32xf32> to vector<16xf32>
      %37 = vector.shape_cast %36 : vector<16xf32> to vector<16x1xf32>
      %cst_28 = arith.constant 3.200000e+01 : f32
      %38 = vector.broadcast %cst_28 : f32 to vector<16x1xf32>
      %39 = arith.divf %37, %38 : vector<16x1xf32>
      %40 = vector.broadcast %32 : vector<16x1xf32> to vector<16x32xf32>
      %41 = arith.subf %26, %40 : vector<16x32xf32>
      %cst_29 = arith.constant 9.99999974E-6 : f32
      %42 = vector.broadcast %cst_29 : f32 to vector<16x1xf32>
      %43 = arith.addf %39, %42 : vector<16x1xf32>
      %44 = math.rsqrt %43 : vector<16x1xf32>
      %45 = vector.broadcast %44 : vector<16x1xf32> to vector<16x32xf32>
      %46 = arith.mulf %41, %45 : vector<16x32xf32>
      %47 = vector.broadcast %27 : vector<1x32xf32> to vector<16x32xf32>
      %48 = arith.mulf %46, %47 : vector<16x32xf32>
      %49 = vector.broadcast %28 : vector<1x32xf32> to vector<16x32xf32>
      %50 = arith.addf %48, %49 : vector<16x32xf32>
      %c0_30 = arith.constant 0 : index
      %c0_31 = arith.constant 0 : index
      %51 = vector.load %arg9[%c0_30, %c0_31] : memref<1x32xf32, #tpu.memory_space<vmem>>, vector<1x32xf32>
      %c0_32 = arith.constant 0 : index
      %c0_33 = arith.constant 0 : index
      %52 = vector.load %arg10[%c0_32, %c0_33] : memref<1x32xf32, #tpu.memory_space<vmem>>, vector<1x32xf32>
      %cst_34 = arith.constant dense<0.000000e+00> : vector<16xf32>
      %53 = vector.multi_reduction <add>, %50, %cst_34 [1] : vector<16x32xf32> to vector<16xf32>
      %54 = vector.shape_cast %53 : vector<16xf32> to vector<16x1xf32>
      %cst_35 = arith.constant 3.200000e+01 : f32
      %55 = vector.broadcast %cst_35 : f32 to vector<16x1xf32>
      %56 = arith.divf %54, %55 : vector<16x1xf32>
      %57 = vector.broadcast %56 : vector<16x1xf32> to vector<16x32xf32>
      %58 = arith.subf %50, %57 : vector<16x32xf32>
      %59 = arith.mulf %58, %58 : vector<16x32xf32>
      %cst_36 = arith.constant dense<0.000000e+00> : vector<16xf32>
      %60 = vector.multi_reduction <add>, %59, %cst_36 [1] : vector<16x32xf32> to vector<16xf32>
      %61 = vector.shape_cast %60 : vector<16xf32> to vector<16x1xf32>
      %cst_37 = arith.constant 3.200000e+01 : f32
      %62 = vector.broadcast %cst_37 : f32 to vector<16x1xf32>
      %63 = arith.divf %61, %62 : vector<16x1xf32>
      %64 = vector.broadcast %56 : vector<16x1xf32> to vector<16x32xf32>
      %65 = arith.subf %50, %64 : vector<16x32xf32>
      %cst_38 = arith.constant 9.99999974E-6 : f32
      %66 = vector.broadcast %cst_38 : f32 to vector<16x1xf32>
      %67 = arith.addf %63, %66 : vector<16x1xf32>
      %68 = math.rsqrt %67 : vector<16x1xf32>
      %69 = vector.broadcast %68 : vector<16x1xf32> to vector<16x32xf32>
      %70 = arith.mulf %65, %69 : vector<16x32xf32>
      %71 = vector.broadcast %51 : vector<1x32xf32> to vector<16x32xf32>
      %72 = arith.mulf %70, %71 : vector<16x32xf32>
      %73 = vector.broadcast %52 : vector<1x32xf32> to vector<16x32xf32>
      %74 = arith.addf %72, %73 : vector<16x32xf32>
      %c0_39 = arith.constant 0 : index
      %c0_40 = arith.constant 0 : index
      %75 = vector.load %arg11[%c0_39, %c0_40] : memref<16x32xf32, #tpu.memory_space<vmem>>, vector<16x32xf32>
      tpu.vector_store %arg11[%c0_39, %c0_40], %74 {strides = array<i32>} : memref<16x32xf32, #tpu.memory_space<vmem>>, vector<16x32xf32>,
    } else {
    }
    return
  }
  func.func @transform_0(%arg0: i32, %arg1: i32) -> (i32, i32) {
    %c0_i32 = arith.constant 0 : i32
    %c0_i32_0 = arith.constant 0 : i32
    return %arg0, %c0_i32 : i32, i32
  }
  func.func @transform_1(%arg0: i32, %arg1: i32) -> (i32, i32) {
    %c0_i32 = arith.constant 0 : i32
    %c0_i32_0 = arith.constant 0 : i32
    return %c0_i32, %arg1 : i32, i32
  }
  func.func @transform_2(%arg0: i32, %arg1: i32) -> (i32, i32) {
    %c0_i32 = arith.constant 0 : i32
    %c0_i32_0 = arith.constant 0 : i32
    return %c0_i32, %arg1 : i32, i32
  }
  func.func @transform_3(%arg0: i32, %arg1: i32) -> (i32, i32) {
    %c0_i32 = arith.constant 0 : i32
    %c0_i32_0 = arith.constant 0 : i32
    return %arg1, %c0_i32 : i32, i32
  }
  func.func @transform_4(%arg0: i32, %arg1: i32) -> (i32, i32) {
    %c0_i32 = arith.constant 0 : i32
    %c0_i32_0 = arith.constant 0 : i32
    %c0_i32_1 = arith.constant 0 : i32
    return %c0_i32, %c0_i32_0 : i32, i32
  }
  func.func @transform_5(%arg0: i32, %arg1: i32) -> (i32, i32) {
    %c0_i32 = arith.constant 0 : i32
    %c0_i32_0 = arith.constant 0 : i32
    %c0_i32_1 = arith.constant 0 : i32
    return %c0_i32, %c0_i32_0 : i32, i32
  }
  func.func @transform_6(%arg0: i32, %arg1: i32) -> (i32, i32) {
    %c0_i32 = arith.constant 0 : i32
    %c0_i32_0 = arith.constant 0 : i32
    %c0_i32_1 = arith.constant 0 : i32
    return %c0_i32, %c0_i32_0 : i32, i32
  }
  func.func @transform_7(%arg0: i32, %arg1: i32) -> (i32, i32) {
    %c0_i32 = arith.constant 0 : i32
    %c0_i32_0 = arith.constant 0 : i32
    %c0_i32_1 = arith.constant 0 : i32
    return %c0_i32, %c0_i32_0 : i32, i32
  }
  func.func @transform_8(%arg0: i32, %arg1: i32) -> (i32, i32) {
    %c0_i32 = arith.constant 0 : i32
    %c0_i32_0 = arith.constant 0 : i32
    %c0_i32_1 = arith.constant 0 : i32
    return %c0_i32, %c0_i32_0 : i32, i32
  }
  func.func @transform_9(%arg0: i32, %arg1: i32) -> (i32, i32) {
    %c0_i32 = arith.constant 0 : i32
    %c0_i32_0 = arith.constant 0 : i32
    return %arg0, %c0_i32 : i32, i32
  }
}

module attributes {stable_mosaic.version = 11 : i64} {
  func.func @_linear_kernel(%arg0: i32, %arg1: i32, %arg2: i32, %arg3: memref<2x8x32xf32, #tpu.memory_space<vmem>>, %arg4: memref<32x50xbf16, #tpu.memory_space<vmem>>, %arg5: memref<1x50xf32, #tpu.memory_space<vmem>>, %arg6: memref<8x2x50xf32, #tpu.memory_space<vmem>>) attributes {dimension_semantics = [#tpu.dimension_semantics<parallel>, #tpu.dimension_semantics<parallel>, #tpu.dimension_semantics<arbitrary>], iteration_bounds = array<i64: 1, 1, 1>, scalar_prefetch = 0 : i64, scratch_operands = 0 : i64, tpu.core_type = #tpu.core_type<tc>, window_params = [{transform_indices = @transform_0, window_bounds = array<i64: 2, 8, 32>}, {transform_indices = @transform_1, window_bounds = array<i64: 32, 50>}, {transform_indices = @transform_2, window_bounds = array<i64: 1, 50>}, {transform_indices = @transform_3, window_bounds = array<i64: 8, 2, 50>}]} {
    %c0_i32 = arith.constant 0 : i32
    %0 = arith.cmpi eq, %arg2, %c0_i32 : i32
    %1 = arith.extui %0 : i1 to i32
    %c0_i32_0 = arith.constant 0 : i32
    %2 = arith.cmpi ne, %1, %c0_i32_0 : i32
    scf.if %2 {
      %cst_13 = arith.constant 0.000000e+00 : f32
      %16 = vector.broadcast %cst_13 : f32 to vector<8x2x50xf32>
      %c0_14 = arith.constant 0 : index
      %c0_15 = arith.constant 0 : index
      %c0_16 = arith.constant 0 : index
      %17 = vector.load %arg6[%c0_14, %c0_15, %c0_16] : memref<8x2x50xf32, #tpu.memory_space<vmem>>, vector<8x2x50xf32>
      tpu.vector_store %arg6[%c0_14, %c0_15, %c0_16], %16 {strides = array<i32>} : memref<8x2x50xf32, #tpu.memory_space<vmem>>, vector<8x2x50xf32>,
    } else {
    }
    %c0 = arith.constant 0 : index
    %c0_1 = arith.constant 0 : index
    %c0_2 = arith.constant 0 : index
    %3 = vector.load %arg3[%c0, %c0_1, %c0_2] : memref<2x8x32xf32, #tpu.memory_space<vmem>>, vector<2x8x32xf32>
    %4 = arith.truncf %3 : vector<2x8x32xf32> to vector<2x8x32xbf16>
    %5 = vector.shape_cast %4 : vector<2x8x32xbf16> to vector<16x32xbf16>
    %c0_3 = arith.constant 0 : index
    %c0_4 = arith.constant 0 : index
    %6 = vector.load %arg4[%c0_3, %c0_4] : memref<32x50xbf16, #tpu.memory_space<vmem>>, vector<32x50xbf16>
    %cst = arith.constant dense<0.000000e+00> : vector<16x50xf32>
    %7 = tpu.matmul %5, %6, %cst {dimension_numbers = #tpu.dot_dimension_numbers<[1], [0], [0], [1], [0, 0, 1, 1], [], []>} : vector<16x32xbf16>, vector<32x50xbf16>, vector<16x50xf32> -> vector<16x50xf32>
    %c0_5 = arith.constant 0 : index
    %c0_6 = arith.constant 0 : index
    %c0_7 = arith.constant 0 : index
    %8 = vector.load %arg6[%c0_5, %c0_6, %c0_7] : memref<8x2x50xf32, #tpu.memory_space<vmem>>, vector<8x2x50xf32>
    %9 = vector.shape_cast %7 : vector<16x50xf32> to vector<2x8x50xf32>
    %10 = tpu.transpose %9, [1, 0, 2] : vector<2x8x50xf32> -> vector<8x2x50xf32>
    %11 = arith.addf %8, %10 : vector<8x2x50xf32>
    %c0_8 = arith.constant 0 : index
    %c0_9 = arith.constant 0 : index
    %c0_10 = arith.constant 0 : index
    %12 = vector.load %arg6[%c0_8, %c0_9, %c0_10] : memref<8x2x50xf32, #tpu.memory_space<vmem>>, vector<8x2x50xf32>
    tpu.vector_store %arg6[%c0_8, %c0_9, %c0_10], %11 {strides = array<i32>} : memref<8x2x50xf32, #tpu.memory_space<vmem>>, vector<8x2x50xf32>,
    %c0_i32_11 = arith.constant 0 : i32
    %13 = arith.cmpi eq, %arg2, %c0_i32_11 : i32
    %14 = arith.extui %13 : i1 to i32
    %c0_i32_12 = arith.constant 0 : i32
    %15 = arith.cmpi ne, %14, %c0_i32_12 : i32
    scf.if %15 {
      %c0_13 = arith.constant 0 : index
      %c0_14 = arith.constant 0 : index
      %c0_15 = arith.constant 0 : index
      %16 = vector.load %arg6[%c0_13, %c0_14, %c0_15] : memref<8x2x50xf32, #tpu.memory_space<vmem>>, vector<8x2x50xf32>
      %c0_16 = arith.constant 0 : index
      %c0_17 = arith.constant 0 : index
      %17 = vector.load %arg5[%c0_16, %c0_17] : memref<1x50xf32, #tpu.memory_space<vmem>>, vector<1x50xf32>
      %18 = vector.shape_cast %17 : vector<1x50xf32> to vector<1x1x50xf32>
      %19 = vector.broadcast %18 : vector<1x1x50xf32> to vector<8x2x50xf32>
      %20 = arith.addf %16, %19 : vector<8x2x50xf32>
      %c0_18 = arith.constant 0 : index
      %c0_19 = arith.constant 0 : index
      %c0_20 = arith.constant 0 : index
      %21 = vector.load %arg6[%c0_18, %c0_19, %c0_20] : memref<8x2x50xf32, #tpu.memory_space<vmem>>, vector<8x2x50xf32>
      tpu.vector_store %arg6[%c0_18, %c0_19, %c0_20], %20 {strides = array<i32>} : memref<8x2x50xf32, #tpu.memory_space<vmem>>, vector<8x2x50xf32>,
    } else {
    }
    return
  }
  func.func @transform_0(%arg0: i32, %arg1: i32, %arg2: i32) -> (i32, i32, i32) {
    %c0_i32 = arith.constant 0 : i32
    %c0_i32_0 = arith.constant 0 : i32
    return %c0_i32, %arg0, %arg2 : i32, i32, i32
  }
  func.func @transform_1(%arg0: i32, %arg1: i32, %arg2: i32) -> (i32, i32) {
    %c0_i32 = arith.constant 0 : i32
    return %arg2, %arg1 : i32, i32
  }
  func.func @transform_2(%arg0: i32, %arg1: i32, %arg2: i32) -> (i32, i32) {
    %c0_i32 = arith.constant 0 : i32
    %c0_i32_0 = arith.constant 0 : i32
    return %c0_i32, %arg1 : i32, i32
  }
  func.func @transform_3(%arg0: i32, %arg1: i32, %arg2: i32) -> (i32, i32, i32) {
    %c0_i32 = arith.constant 0 : i32
    %c0_i32_0 = arith.constant 0 : i32
    return %arg0, %c0_i32, %arg1 : i32, i32, i32
  }
}

</mosaic_0001>

<bundles_post_ra>
// kernel: transformer_forward.12
= control target key start
LH: loop header
LB: loop body
LE: loop exit
PB: predicated region body
PF: predicated region fallthrough
CT: control target
= control target key end

     0   :  { %s973_s12 = smov [#allocation4]   ;;  %s1088_s0 = inlined_call_operand.vmem [shape: s32[16], index: 0, kind: input, shape index: {}]   ;;  %s1089_s1 = inlined_call_operand.vmem [shape: f32[50,32], index: 1, kind: input, shape index: {}]   ;;  %s1090_s2 = inlined_call_operand.vmem [shape: f32[16,32], index: 2, kind: output, shape index: {}]  }
   0x1   :  { %s8_s11 = sshll.u32 %s1088_s0, 4  ;;  %s9_s11 = int_to_ptr.vmem [resolvable:$true] %s8_s11 }
   0x2   :  { %11 = dma.vmem_to_smem %s9_s11, 16, %s973_s12, [#allocation3] }
   0x3   :  { %939 = dma.done.wait [#allocation3], 16 }
   0x4   :  { %940 = vsyncadd [#allocation3], 4294967280 }
   0x5   :  { %14 = sfence }
   0x6   :  { %s16_s13 = sld [smem:[#allocation4]] }
   0xc   :  { %s17_s16 = scalar_lea.vmem %s1089_s1, %s16_s13 }
   0xd   :  { %v32_v0 = vld [vmem:[%s17_s16] sm:$0x1] }
   0xe   :  { %33 = vst [vmem:[%s1090_s2] sm:$0x1] %v32_v0 }
   0xf   :  { %51 = vsyncadd [#allocation2], 16  ;;  %s880_s19 = sld [smem:[#allocation4 + $0x1]] }
  0x15   :  { %s54_s21 = scalar_lea.vmem %s1089_s1, %s880_s19 }
  0x16   :  { %v71_v1 = vld [vmem:[%s54_s21] sm:$0x1] }
  0x17   :  { %881 = vst [vmem:[%s1090_s2 + $0x1] sm:$0x1] %v71_v1 }
  0x18   :  { %90 = vsyncadd [#allocation2 + $0x1], 16  ;;  %s882_s24 = sld [smem:[#allocation4 + $0x2]] }
  0x1e   :  { %s93_s27 = scalar_lea.vmem %s1089_s1, %s882_s24 }
  0x1f   :  { %v110_v2 = vld [vmem:[%s93_s27] sm:$0x1] }
  0x20   :  { %883 = vst [vmem:[%s1090_s2 + $0x2] sm:$0x1] %v110_v2 }
  0x21   :  { %129 = vsyncadd [#allocation2 + $0x2], 16  ;;  %s884_s30 = sld [smem:[#allocation4 + $0x3]] }
  0x27   :  { %s132_s5 = scalar_lea.vmem %s1089_s1, %s884_s30 }
  0x28   :  { %v149_v3 = vld [vmem:[%s132_s5] sm:$0x1] }
  0x29   :  { %885 = vst [vmem:[%s1090_s2 + $0x3] sm:$0x1] %v149_v3 }
  0x2a   :  { %168 = vsyncadd [#allocation2 + $0x3], 16  ;;  %s886_s8 = sld [smem:[#allocation4 + $0x4]] }
  0x30   :  { %s171_s11 = scalar_lea.vmem %s1089_s1, %s886_s8 }
  0x31   :  { %v188_v4 = vld [vmem:[%s171_s11] sm:$0x1] }
  0x32   :  { %887 = vst [vmem:[%s1090_s2 + $0x4] sm:$0x1] %v188_v4 }
  0x33   :  { %207 = vsyncadd [#allocation2 + $0x4], 16  ;;  %s888_s14 = sld [smem:[#allocation4 + $0x5]] }
  0x39   :  { %s210_s17 = scalar_lea.vmem %s1089_s1, %s888_s14 }
  0x3a   :  { %v227_v5 = vld [vmem:[%s210_s17] sm:$0x1] }
  0x3b   :  { %889 = vst [vmem:[%s1090_s2 + $0x5] sm:$0x1] %v227_v5 }
  0x3c   :  { %246 = vsyncadd [#allocation2 + $0x5], 16  ;;  %s890_s20 = sld [smem:[#allocation4 + $0x6]] }
  0x42   :  { %s249_s22 = scalar_lea.vmem %s1089_s1, %s890_s20 }
  0x43   :  { %v266_v6 = vld [vmem:[%s249_s22] sm:$0x1] }
  0x44   :  { %891 = vst [vmem:[%s1090_s2 + $0x6] sm:$0x1] %v266_v6 }
  0x45   :  { %285 = vsyncadd [#allocation2 + $0x6], 16  ;;  %s892_s25 = sld [smem:[#allocation4 + $0x7]] }
  0x4b   :  { %s288_s28 = scalar_lea.vmem %s1089_s1, %s892_s25 }
  0x4c   :  { %v305_v7 = vld [vmem:[%s288_s28] sm:$0x1] }
  0x4d   :  { %893 = vst [vmem:[%s1090_s2 + $0x7] sm:$0x1] %v305_v7 }
  0x4e   :  { %324 = vsyncadd [#allocation2 + $0x7], 16  ;;  %s894_s3 = sld [smem:[#allocation4 + $0x8]] }
  0x54   :  { %s327_s6 = scalar_lea.vmem %s1089_s1, %s894_s3 }
  0x55   :  { %v344_v8 = vld [vmem:[%s327_s6] sm:$0x1] }
  0x56   :  { %895 = vst [vmem:[%s1090_s2 + $0x8] sm:$0x1] %v344_v8 }
  0x57   :  { %363 = vsyncadd [#allocation2 + $0x8], 16  ;;  %s896_s9 = sld [smem:[#allocation4 + $0x9]] }
  0x5d   :  { %s366_s12 = scalar_lea.vmem %s1089_s1, %s896_s9 }
  0x5e   :  { %v383_v9 = vld [vmem:[%s366_s12] sm:$0x1] }
  0x5f   :  { %897 = vst [vmem:[%s1090_s2 + $0x9] sm:$0x1] %v383_v9 }
  0x60   :  { %402 = vsyncadd [#allocation2 + $0x9], 16  ;;  %s898_s15 = sld [smem:[#allocation4 + $0xa]] }
  0x66   :  { %s405_s18 = scalar_lea.vmem %s1089_s1, %s898_s15 }
  0x67   :  { %v422_v10 = vld [vmem:[%s405_s18] sm:$0x1] }
  0x68   :  { %899 = vst [vmem:[%s1090_s2 + $0xa] sm:$0x1] %v422_v10 }
  0x69   :  { %441 = vsyncadd [#allocation2 + $0xa], 16  ;;  %s900_s0 = sld [smem:[#allocation4 + $0xb]] }
  0x6f   :  { %s444_s23 = scalar_lea.vmem %s1089_s1, %s900_s0 }
  0x70   :  { %v461_v11 = vld [vmem:[%s444_s23] sm:$0x1] }
  0x71   :  { %901 = vst [vmem:[%s1090_s2 + $0xb] sm:$0x1] %v461_v11 }
  0x72   :  { %480 = vsyncadd [#allocation2 + $0xb], 16  ;;  %s902_s26 = sld [smem:[#allocation4 + $0xc]] }
  0x78   :  { %s483_s29 = scalar_lea.vmem %s1089_s1, %s902_s26 }
  0x79   :  { %v500_v12 = vld [vmem:[%s483_s29] sm:$0x1] }
  0x7a   :  { %903 = vst [vmem:[%s1090_s2 + $0xc] sm:$0x1] %v500_v12 }
  0x7b   :  { %519 = vsyncadd [#allocation2 + $0xc], 16  ;;  %s904_s4 = sld [smem:[#allocation4 + $0xd]] }
  0x81   :  { %s522_s7 = scalar_lea.vmem %s1089_s1, %s904_s4 }
  0x82   :  { %v539_v13 = vld [vmem:[%s522_s7] sm:$0x1] }
  0x83   :  { %905 = vst [vmem:[%s1090_s2 + $0xd] sm:$0x1] %v539_v13 }
  0x84   :  { %558 = vsyncadd [#allocation2 + $0xd], 16  ;;  %s906_s10 = sld [smem:[#allocation4 + $0xe]] }
  0x8a   :  { %s561_s13 = scalar_lea.vmem %s1089_s1, %s906_s10 }
  0x8b   :  { %v578_v14 = vld [vmem:[%s561_s13] sm:$0x1] }
  0x8c   :  { %907 = vst [vmem:[%s1090_s2 + $0xe] sm:$0x1] %v578_v14 }
  0x8d   :  { %597 = vsyncadd [#allocation2 + $0xe], 16  ;;  %s908_s16 = sld [smem:[#allocation4 + $0xf]] }
  0x93   :  { %s600_s19 = scalar_lea.vmem %s1089_s1, %s908_s16 }
  0x94   :  { %v617_v15 = vld [vmem:[%s600_s19] sm:$0x1] }
  0x95   :  { %909 = vst [vmem:[%s1090_s2 + $0xf] sm:$0x1] %v617_v15 }
  0x96   :  { %636 = vsyncadd [#allocation2 + $0xf], 16 }
  0x97   :  { %941 = dma.done.wait [#allocation2], 16 }
  0x98   :  { %942 = vsyncadd [#allocation2], 4294967280 }
  0x99   :  { %943 = dma.done.wait [#allocation2 + $0x1], 16 }
  0x9a   :  { %944 = vsyncadd [#allocation2 + $0x1], 4294967280 }
  0x9b   :  { %945 = dma.done.wait [#allocation2 + $0x2], 16 }
  0x9c   :  { %946 = vsyncadd [#allocation2 + $0x2], 4294967280 }
  0x9d   :  { %947 = dma.done.wait [#allocation2 + $0x3], 16 }
  0x9e   :  { %948 = vsyncadd [#allocation2 + $0x3], 4294967280 }
  0x9f   :  { %949 = dma.done.wait [#allocation2 + $0x4], 16 }
  0xa0   :  { %950 = vsyncadd [#allocation2 + $0x4], 4294967280 }
  0xa1   :  { %951 = dma.done.wait [#allocation2 + $0x5], 16 }
  0xa2   :  { %952 = vsyncadd [#allocation2 + $0x5], 4294967280 }
  0xa3   :  { %953 = dma.done.wait [#allocation2 + $0x6], 16 }
  0xa4   :  { %954 = vsyncadd [#allocation2 + $0x6], 4294967280 }
  0xa5   :  { %955 = dma.done.wait [#allocation2 + $0x7], 16 }
  0xa6   :  { %956 = vsyncadd [#allocation2 + $0x7], 4294967280 }
  0xa7   :  { %957 = dma.done.wait [#allocation2 + $0x8], 16 }
  0xa8   :  { %958 = vsyncadd [#allocation2 + $0x8], 4294967280 }
  0xa9   :  { %959 = dma.done.wait [#allocation2 + $0x9], 16 }
  0xaa   :  { %960 = vsyncadd [#allocation2 + $0x9], 4294967280 }
  0xab   :  { %961 = dma.done.wait [#allocation2 + $0xa], 16 }
  0xac   :  { %962 = vsyncadd [#allocation2 + $0xa], 4294967280 }
  0xad   :  { %963 = dma.done.wait [#allocation2 + $0xb], 16 }
  0xae   :  { %964 = vsyncadd [#allocation2 + $0xb], 4294967280 }
  0xaf   :  { %965 = dma.done.wait [#allocation2 + $0xc], 16 }
  0xb0   :  { %966 = vsyncadd [#allocation2 + $0xc], 4294967280 }
  0xb1   :  { %967 = dma.done.wait [#allocation2 + $0xd], 16 }
  0xb2   :  { %968 = vsyncadd [#allocation2 + $0xd], 4294967280 }
  0xb3   :  { %969 = dma.done.wait [#allocation2 + $0xe], 16 }
  0xb4   :  { %970 = vsyncadd [#allocation2 + $0xe], 4294967280 }
  0xb5   :  { %971 = dma.done.wait [#allocation2 + $0xf], 16 }
  0xb6   :  { %972 = vsyncadd [#allocation2 + $0xf], 4294967280 }
  0xb7   :  { %689 = vsyncmov [#allocation2] }
  0xba   :  { %s690_s1 = vpop.sfrf %689 }
  0xbb   :  { %p910_p0 = scmp.ne.s32.totalorder %s690_s1, 0 }
  0xbd   :  { %694 = shalt.err (%p910_p0)  }
  0xbe   :  { %696 = vsyncmov [#allocation2 + $0x1] }
  0xc1   :  { %s697_s2 = vpop.sfrf %696 }
  0xc2   :  { %p911_p1 = scmp.ne.s32.totalorder %s697_s2, 0 }
  0xc4   :  { %701 = shalt.err (%p911_p1)  }
  0xc5   :  { %703 = vsyncmov [#allocation2 + $0x2] }
  0xc8   :  { %s704_s21 = vpop.sfrf %703 }
  0xc9   :  { %p912_p2 = scmp.ne.s32.totalorder %s704_s21, 0 }
  0xcb   :  { %708 = shalt.err (%p912_p2)  }
  0xcc   :  { %710 = vsyncmov [#allocation2 + $0x3] }
  0xcf   :  { %s711_s22 = vpop.sfrf %710 }
  0xd0   :  { %p913_p3 = scmp.ne.s32.totalorder %s711_s22, 0 }
  0xd2   :  { %715 = shalt.err (%p913_p3)  }
  0xd3   :  { %717 = vsyncmov [#allocation2 + $0x4] }
  0xd6   :  { %s718_s23 = vpop.sfrf %717 }
  0xd7   :  { %p914_p4 = scmp.ne.s32.totalorder %s718_s23, 0 }
  0xd9   :  { %722 = shalt.err (%p914_p4)  }
  0xda   :  { %724 = vsyncmov [#allocation2 + $0x5] }
  0xdd   :  { %s725_s24 = vpop.sfrf %724 }
  0xde   :  { %p915_p5 = scmp.ne.s32.totalorder %s725_s24, 0 }
  0xe0   :  { %729 = shalt.err (%p915_p5)  }
  0xe1   :  { %731 = vsyncmov [#allocation2 + $0x6] }
  0xe4   :  { %s732_s25 = vpop.sfrf %731 }
  0xe5   :  { %p916_p6 = scmp.ne.s32.totalorder %s732_s25, 0 }
  0xe7   :  { %736 = shalt.err (%p916_p6)  }
  0xe8   :  { %738 = vsyncmov [#allocation2 + $0x7] }
  0xeb   :  { %s739_s26 = vpop.sfrf %738 }
  0xec   :  { %p917_p7 = scmp.ne.s32.totalorder %s739_s26, 0 }
  0xee   :  { %743 = shalt.err (%p917_p7)  }
  0xef   :  { %745 = vsyncmov [#allocation2 + $0x8] }
  0xf2   :  { %s746_s27 = vpop.sfrf %745 }
  0xf3   :  { %p918_p8 = scmp.ne.s32.totalorder %s746_s27, 0 }
  0xf5   :  { %750 = shalt.err (%p918_p8)  }
  0xf6   :  { %752 = vsyncmov [#allocation2 + $0x9] }
  0xf9   :  { %s753_s28 = vpop.sfrf %752 }
  0xfa   :  { %p919_p9 = scmp.ne.s32.totalorder %s753_s28, 0 }
  0xfc   :  { %757 = shalt.err (%p919_p9)  }
  0xfd   :  { %759 = vsyncmov [#allocation2 + $0xa] }
 0x100   :  { %s760_s29 = vpop.sfrf %759 }
 0x101   :  { %p920_p10 = scmp.ne.s32.totalorder %s760_s29, 0 }
 0x103   :  { %764 = shalt.err (%p920_p10)  }
 0x104   :  { %766 = vsyncmov [#allocation2 + $0xb] }
 0x107   :  { %s767_s30 = vpop.sfrf %766 }
 0x108   :  { %p921_p11 = scmp.ne.s32.totalorder %s767_s30, 0 }
 0x10a   :  { %771 = shalt.err (%p921_p11)  }
 0x10b   :  { %773 = vsyncmov [#allocation2 + $0xc] }
 0x10e   :  { %s774_s3 = vpop.sfrf %773 }
 0x10f   :  { %p922_p12 = scmp.ne.s32.totalorder %s774_s3, 0 }
 0x111   :  { %778 = shalt.err (%p922_p12)  }
 0x112   :  { %780 = vsyncmov [#allocation2 + $0xd] }
 0x115   :  { %s781_s4 = vpop.sfrf %780 }
 0x116   :  { %p923_p13 = scmp.ne.s32.totalorder %s781_s4, 0 }
 0x118   :  { %785 = shalt.err (%p923_p13)  }
 0x119   :  { %787 = vsyncmov [#allocation2 + $0xe] }
 0x11c   :  { %s788_s5 = vpop.sfrf %787 }
 0x11d   :  { %p924_p0 = scmp.ne.s32.totalorder %s788_s5, 0 }
 0x11f   :  { %792 = shalt.err (%p924_p0)  }
 0x120   :  { %794 = vsyncmov [#allocation2 + $0xf] }
 0x123   :  { %s795_s6 = vpop.sfrf %794 }
 0x124   :  { %p925_p1 = scmp.ne.s32.totalorder %s795_s6, 0 }
 0x126   :  { %799 = shalt.err (%p925_p1)  }

// kernel: transformer_forward.13
= control target key start
LH: loop header
LB: loop body
LE: loop exit
PB: predicated region body
PF: predicated region fallthrough
CT: control target
= control target key end

     0   :  { %s1594_s13 = smov 0   ;;  %s1596_s14 = smov 0   ;;  %s1873_s0 = inlined_call_operand.vmem [shape: f32[2,8,32], index: 0, kind: input, shape index: {}, may-alias: {0,1}]   ;;  %s1874_s1 = inlined_call_operand.vmem [shape: f32[2,8,32], index: 1, kind: input, shape index: {}, may-alias: {0,1}]   ;;  %s1875_s2 = inlined_call_operand.vmem [shape: bf16[32,32], index: 2, kind: input, shape index: {}]   ;;  %s1876_s3 = inlined_call_operand.vmem [shape: f32[1,32], index: 3, kind: input, shape index: {}]   ;;  %s1877_s4 = inlined_call_operand.vmem [shape: bf16[32,64], index: 4, kind: input, shape index: {}]   ;;  %s1878_s5 = inlined_call_operand.vmem [shape: f32[1,64], index: 5, kind: input, shape index: {}]   ;;  %s1879_s6 = inlined_call_operand.vmem [shape: bf16[32,32], index: 6, kind: input, shape index: {}]   ;;  %s1880_s7 = inlined_call_operand.vmem [shape: f32[1,32], index: 7, kind: input, shape index: {}]   ;;  %s1881_s8 = inlined_call_operand.vmem [shape: f32[1,32], index: 8, kind: input, shape index: {}]   ;;  %s1882_s9 = inlined_call_operand.vmem [shape: f32[1,32], index: 9, kind: input, shape index: {}]   ;;  %s1883_s10 = inlined_call_operand.vmem [shape: f32[2,8,32], index: 10, kind: output, shape index: {}]  }
   0x1   :  { %s1598_s15 = smov 0  }
   0x2 LB: > { %s32_s16 = sadd.s32 1, %s1523_s14  ;;  %p1399_p0 = scmp.ge.s32.totalorder %s1527_s15, 1  ;;  %s1527_s15 = sphi %s1598_s15, %s20_s15   ;;  %s1523_s14 = sphi %s1596_s14, %s1885_s14   ;;  %s1519_s13 = sphi %s1594_s13, %s1884_s13  }
   0x3   : > { %p34_p1 = scmp.ge.s32.totalorder %s32_s16, 2  ;;  %p339_p2 = scmp.lt.s32.totalorder %s1527_s15, 3 }
   0x5   : > { %s1887_s16 = smov (%p34_p1, %s32_s16), 0  ;;  %p340_p3 = pnand %p1399_p0, %p339_p2 }
   0x6   : > { %p385_p4 = scmp.lt.s32.totalorder (!%p340_p3), %s1519_s13, 1  ;;  %s1529_s19 = smov (!%p340_p3), 104  }
   0x7   : > { %343 = sbr.rel (%p340_p3) target bundleno = 1387 (0x56b), region = 60  ;;  %s1530_s20 = smov (!%p340_p3), 120  }
   0x8   : > { %s1531_s21 = smov (!%p340_p3), 112   ;;  %s1532_s22 = smov (!%p340_p3), 96  }
   0x9   : > { %s1535_s23 = smov (!%p340_p3), 24   ;;  %s1536_s24 = smov (!%p340_p3), 16  }
   0xa   : > { %s1537_s26 = smov (!%p340_p3), 8  }
   0xc   : > { %v1443_v0 = vld [vmem:[%s1877_s4 + $0x8] sm:$0xff]  ;;  %v1442_v2 = vld [vmem:[%s1877_s4] sm:$0xff]  ;;  %s1889_s13 = smov (!%p385_p4, %s1519_s13), 1  ;;  %vm426_vm0 = vcmask 261120   ;;  %v1533_v20 = vmov 1983009808  }
   0xd   : > { %v1441_v1 = vld [vmem:[%s1875_s2 + $0x8] sm:$0xff]  ;;  %474 = vmatpush.bf16.msra.mxu1 %v1443_v0  ;;  %v1440_v3 = vld [vmem:[%s1875_s2] sm:$0xff]  ;;  %s1624_s25 = sshll.u32 %s1889_s13, 3  ;;  %v504_v21 = vunpack.c.l.s4 %v1533_v20  ;;  %v1534_v36 = vmov 1934713408   ;;  %vm513_vm1 = vcmask 1047556  }
   0xe   : > { %436 = vmatpush.bf16.msra.mxu0 %v1441_v1  ;;  %s395_s28 = scalar_lea.vmem %s1874_s1, %s1624_s25  ;;  %s391_s11 = scalar_lea.vmem %s1873_s0, %s1624_s25  ;;  %v1480_v8 = vld [vmem:[%s1878_s5] ss:$0 sm:$0xff]  ;;  %v518_v37 = vunpack.c.l.s4 %v1534_v36  ;;  %vm849_vm2 = vcmask 64512   ;;  %vm1029_vm3 = vcmask 1043456  }
   0xf   : > { %v443_v4 = vld [vmem:[%s395_s28] sm:$0xff]  ;;  %v1651_v25 = vunpack.c.0.s8 %v504_v21 }
  0x10   : > { %v444_v5 = vpack.c.bf16 %v443_v4, %v443_v4  ;;  %v1634_v6 = vld [vmem:[%s391_s11] sm:$0xff]  ;;  %v1665_v50 = vunpack.c.0.s8 %v518_v37 }
  0x11   : > { %475 = vmatpush.bf16.msra.mxu1 %v1442_v2  ;;  %v405_v7 = vpack.c.bf16 %v1634_v6, %v1634_v6  ;;  %v1481_v9 = vld [vmem:[%s1876_s3] ss:$0 sm:$0xff] }
  0x12   : > { %437 = vmatpush.bf16.msra.mxu0 %v1440_v3 }
  0x14   : > { %1420 = vmatmul.msk.bf16.vlgmr.msra.gmra.mxu1 %vm426_vm0, %v444_v5 }
  0x15   : > { %1411 = vmatmul.msk.bf16.vlgmr.msra.gmra.mxu0 %vm426_vm0, %v405_v7 }
  0x91   : > { %v477_v10 = vpop.f32.mrf.mxu1 }
  0x92   : > { %v478_v11 = vadd.f32 %v1480_v8, %v477_v10  ;;  %v439_v12 = vpop.f32.mrf.mxu0 }
  0x93   : > { %v440_v13 = vadd.f32 %v1481_v9, %v439_v12 }
  0x94   : > { %v605_v14 = vpack.c.bf16 %v478_v11, %v478_v11 }
  0x95   : > { %v481_v15 = vmul.f32 0.35355338, %v440_v13 }
  0x96   : > { %611 = vrot.lane.b32.xlu1 %v605_v14, %s1529_s19  ;;  %607 = vrot.lane.b32.xlu0 %v605_v14, %s1530_s20  ;;  %v616_v26 = vshrl.u32 %v605_v14, 16 }
  0x97   : > { %v482_v16 = vpack.c.bf16 %v481_v15, %v481_v15 }
  0x99   : > { %v479_v17 = vpop.f32.mrf.mxu1  ;;  %486 = vrot.lane.b32.xlu2 %v482_v16, %s1531_s21  ;;  %v493_v42 = vshrl.u32 %v482_v16, 16 }
  0x9a   : > { %v441_v18 = vpop.f32.mrf.mxu0 }
  0x9e   : > { %609 = vrot.lane.b32.xlu0 %v605_v14, %s1531_s21  ;;  %484 = vrot.lane.b32.xlu1 %v482_v16, %s1530_s20 }
  0xa1   : > { %488 = vrot.lane.b32.xlu2 %v482_v16, %s1529_s19 }
  0xa6   : > { %727 = vrot.lane.b32.xlu0 %v605_v14, %s1532_s22 }
  0xf3   : > { %v487_v19 = vpop.permute.xlu2 %486 }
  0xf4   : > { %v499_v28 = vshrl.u32 %v487_v19, 16 }
  0xfb   : > { %v489_v22 = vpop.permute.xlu2 %488 }
  0xfc   : > { %v498_v29 = vpack.i.b16 %v489_v22, %v487_v19  ;;  %v500_v30 = vshrl.u32 %v489_v22, 16 }
  0xfe   : > { %v501_v33 = vpack.i.b16 %v500_v30, %v499_v28  ;;  %v511_v34 = vperm.slane %v498_v29, %v1651_v25 }
 0x100   : > { %v512_v47 = vrot.slane %v511_v34, 4  ;;  %v538_v48 = vperm.slane %v501_v33, %v1651_v25 }
 0x102   : > { %v539_v60 = vrot.slane %v538_v48, 4 }
 0x108   : > { %v1647_v23 = vpop.permute.xlu1 %611  ;;  %v1649_v24 = vpop.permute.xlu0 %607 }
 0x109   : > { %v617_v27 = vshrl.u32 %v1649_v24, 16  ;;  %v615_v31 = vpack.i.b16 %v1649_v24, %v605_v14  ;;  %v623_v38 = vshrl.u32 %v1647_v23, 16 }
 0x10b   : > { %v618_v32 = vpack.i.b16 %v617_v27, %v616_v26  ;;  %v629_v35 = vperm.slane %v615_v31, %v1651_v25 }
 0x10d   : > { %v655_v39 = vperm.slane %v618_v32, %v1651_v25  ;;  %v637_v49 = vrot.slane %v629_v35, 4 }
 0x10f   : > { %v663_v55 = vrot.slane %v655_v39, 4 }
 0x110   : > { %v1659_v40 = vpop.permute.xlu0 %609  ;;  %v485_v41 = vpop.permute.xlu1 %484 }
 0x111   : > { %v621_v43 = vpack.i.b16 %v1647_v23, %v1659_v40  ;;  %v622_v44 = vshrl.u32 %v1659_v40, 16  ;;  %v492_v45 = vpack.i.b16 %v485_v41, %v482_v16  ;;  %v494_v46 = vshrl.u32 %v485_v41, 16 }
 0x113   : > { %v624_v51 = vpack.i.b16 %v623_v38, %v622_v44  ;;  %v634_v52 = vperm.slane %v621_v43, %v1651_v25  ;;  %v495_v53 = vpack.i.b16 %v494_v46, %v493_v42  ;;  %v506_v54 = vperm.slane %v492_v45, %v1651_v25 }
 0x115   : > { %v635_v56 = vrot.slane %v634_v52, 4  ;;  %v638_v57 = vsel %vm513_vm1, %v634_v52, %v637_v49  ;;  %v660_v58 = vperm.slane %v624_v51, %v1651_v25  ;;  %v514_v59 = vsel %vm513_vm1, %v512_v47, %v506_v54 }
 0x116   : > { %v646_v61 = vperm.slane %v638_v57, %v1665_v50  ;;  %v515_v62 = vrot.slane %v506_v54, 4  ;;  %v533_v63 = vperm.slane %v495_v53, %v1651_v25  ;;  %v520_v3 = vperm.slane %v514_v59, %v1665_v50 }
 0x117   : > { %v636_v0 = vsel %vm513_vm1, %v635_v56, %v629_v35  ;;  %v661_v1 = vrot.slane %v660_v58, 4  ;;  %v664_v2 = vsel %vm513_vm1, %v660_v58, %v663_v55 }
 0x118   : > { %v642_v4 = vperm.slane %v636_v0, %v1665_v50  ;;  %v649_v5 = vrot.slane %v646_v61, 4  ;;  %v672_v7 = vperm.slane %v664_v2, %v1665_v50  ;;  %v516_v8 = vsel %vm513_vm1, %v511_v34, %v515_v62 }
 0x119   : > { %v662_v9 = vsel %vm513_vm1, %v661_v1, %v655_v39  ;;  %v524_v10 = vperm.slane %v516_v8, %v1665_v50  ;;  %v540_v11 = vsel %vm513_vm1, %v539_v60, %v533_v63  ;;  %v541_v18 = vrot.slane %v533_v63, 4 }
 0x11a   : > { %v647_v12 = vrot.slane %v642_v4, 4  ;;  %v650_v13 = vsel %vm513_vm1, 0, %v649_v5  ;;  %v668_v14 = vperm.slane %v662_v9, %v1665_v50  ;;  %v675_v15 = vrot.slane %v672_v7, 4 }
 0x11b   : > { %v682_v16 = vrot.slane %v650_v13, 4  ;;  %v527_v17 = vrot.slane %v524_v10, 4  ;;  %v525_v21 = vrot.slane %v520_v3, 4  ;;  %v546_v22 = vperm.slane %v540_v11, %v1665_v50 }
 0x11c   : > { %v673_v19 = vrot.slane %v668_v14, 4  ;;  %v676_v20 = vsel %vm513_vm1, 0, %v675_v15  ;;  %v542_v28 = vsel %vm513_vm1, %v538_v48, %v541_v18  ;;  %v648_v31 = vsel %vm513_vm1, 0, %v647_v12 }
 0x11d   : > { %v701_v26 = vrot.slane %v676_v20, 4  ;;  %v528_v27 = vsel %vm513_vm1, 0, %v527_v17  ;;  %v550_v29 = vperm.slane %v542_v28, %v1665_v50  ;;  %v551_v32 = vrot.slane %v546_v22, 4 }
 0x11e   : > { %v560_v30 = vrot.slane %v528_v27, 4  ;;  %v674_v33 = vsel %vm513_vm1, 0, %v673_v19  ;;  %v677_v34 = vsel %vm513_vm1, %v649_v5, %v642_v4  ;;  %v683_v35 = vsel %vm513_vm1, %v682_v16, %v648_v31 }
 0x11f   : > { %v526_v36 = vsel %vm513_vm1, 0, %v525_v21  ;;  %v553_v37 = vrot.slane %v550_v29, 4  ;;  %v687_v38 = vperm.slane %v683_v35, %v1651_v25  ;;  %v696_v39 = vsel %vm513_vm1, %v675_v15, %v668_v14 }
 0x120   : > { %v555_v41 = vsel %vm513_vm1, %v527_v17, %v520_v3  ;;  %v681_v42 = vperm.slane %v677_v34, %v1651_v25  ;;  %v702_v43 = vsel %vm513_vm1, %v701_v26, %v674_v33  ;;  %v561_v44 = vsel %vm513_vm1, %v560_v30, %v526_v36 }
 0x121   : > { %v554_v45 = vsel %vm513_vm1, 0, %v553_v37  ;;  %v688_v46 = vrot.slane %v687_v38, 4  ;;  %v706_v47 = vperm.slane %v702_v43, %v1651_v25  ;;  %v565_v48 = vperm.slane %v561_v44, %v1651_v25 }
 0x122   : > { %v552_v49 = vsel %vm513_vm1, 0, %v551_v32  ;;  %v579_v51 = vrot.slane %v554_v45, 4  ;;  %v700_v52 = vperm.slane %v696_v39, %v1651_v25  ;;  %v559_v55 = vperm.slane %v555_v41, %v1651_v25 }
 0x123   : > { %v689_v53 = vsel %vm513_vm1, %v688_v46, %v681_v42  ;;  %v707_v54 = vrot.slane %v706_v47, 4  ;;  %v566_v56 = vrot.slane %v565_v48, 4  ;;  %v574_v58 = vsel %vm513_vm1, %v553_v37, %v546_v22 }
 0x124   : > { %v693_v57 = vperm.slane %v689_v53, %v1665_v50  ;;  %v580_v59 = vsel %vm513_vm1, %v579_v51, %v552_v49  ;;  %v578_v3 = vperm.slane %v574_v58, %v1651_v25  ;;  %v728_v51 = vpop.permute.xlu0 %727 }
 0x125   : > { %v708_v60 = vsel %vm513_vm1, %v707_v54, %v700_v52  ;;  %v567_v61 = vsel %vm513_vm1, %v566_v56, %v559_v55  ;;  %v584_v62 = vperm.slane %v580_v59, %v1651_v25 }
 0x126   : > { %v712_v63 = vperm.slane %v708_v60, %v1665_v50  ;;  %v694_v0 = vrot.slane %v693_v57, 4  ;;  %v718_v1 = vshrl.u32 %v693_v57, 16  ;;  %v571_v2 = vperm.slane %v567_v61, %v1665_v50 }
 0x127   : > { %v585_v4 = vrot.slane %v584_v62, 4 }
 0x128   : > { %v717_v5 = vpack.i.b16 %v712_v63, %v693_v57  ;;  %v719_v7 = vshrl.u32 %v712_v63, 16  ;;  %v695_v8 = vsel %vm513_vm1, 0, %v694_v0  ;;  %v713_v9 = vrot.slane %v712_v63, 4 }
 0x129   : > { %v586_v10 = vsel %vm513_vm1, %v585_v4, %v578_v3  ;;  %v724_v16 = vshrl.u32 %v695_v8, 16  ;;  %v572_v19 = vrot.slane %v571_v2, 4  ;;  %v596_v30 = vshrl.u32 %v571_v2, 16 }
 0x12a   : > { %v854_v11 = vsel %vm849_vm2, %v717_v5, 0  ;;  %v720_v12 = vpack.i.b16 %v719_v7, %v718_v1  ;;  %v714_v13 = vsel %vm513_vm1, 0, %v713_v9  ;;  %v590_v14 = vperm.slane %v586_v10, %v1665_v50 }
 0x12b   : > { %863 = vmatpush.bf16.xpose.msra.mxu2 %v854_v11  ;;  %v723_v15 = vpack.i.b16 %v714_v13, %v695_v8  ;;  %v725_v17 = vshrl.u32 %v714_v13, 16  ;;  %v573_v31 = vsel %vm513_vm1, 0, %v572_v19 }
 0x12c   : > { %v873_v18 = vsel %vm849_vm2, %v720_v12, 0  ;;  %v591_v20 = vrot.slane %v590_v14, 4  ;;  %v597_v26 = vshrl.u32 %v590_v14, 16  ;;  %v595_v29 = vpack.i.b16 %v590_v14, %v571_v2 }
 0x12d   : > { %882 = vmatpush.bf16.xpose.msra.mxu3 %v873_v18  ;;  %v892_v21 = vsel %vm849_vm2, %v723_v15, 0  ;;  %v726_v22 = vpack.i.b16 %v725_v17, %v724_v16  ;;  %v602_v35 = vshrl.u32 %v573_v31, 16  ;;  %v738_v14 = vshrl.u32 %v728_v51, 16 }
 0x12e   : > { %901 = vmatpush.bf16.xpose.msrb.mxu0 %v892_v21  ;;  %v592_v27 = vsel %vm513_vm1, 0, %v591_v20  ;;  %v598_v33 = vpack.i.b16 %v597_v26, %v596_v30 }
 0x12f   : > { %v911_v28 = vsel %vm849_vm2, %v726_v22, 0  ;;  %v603_v32 = vshrl.u32 %v592_v27, 16  ;;  %v601_v34 = vpack.i.b16 %v592_v27, %v573_v31 }
 0x130   : > { %920 = vmatpush.bf16.xpose.msrb.mxu1 %v911_v28 }
 0x131   : > { %v604_v36 = vpack.i.b16 %v603_v32, %v602_v35 }
 0x132   : > { %1421 = vmatmul.msk.bf16.vlgmr.msra.gmra.mxu2 %vm849_vm2, %v595_v29 }
 0x134   : > { %1422 = vmatmul.msk.bf16.vlgmr.msra.gmra.mxu3 %vm849_vm2, %v598_v33 }
 0x135   : > { %1423 = vmatmul.msk.bf16.vlgmr.msrb.gmra.mxu0 %vm849_vm2, %v601_v34 }
 0x137   : > { %1424 = vmatmul.msk.bf16.vlgmr.msrb.gmra.mxu1 %vm849_vm2, %v604_v36 }
 0x1b2   : > { %v903_v37 = vpop.f32.mrf.mxu0 }
 0x1b3   : > { %v932_v38 = vsel %vm849_vm2, %v903_v37, -inf }
 0x1b4   : > { %v922_v39 = vpop.f32.mrf.mxu1  ;;  %933 = vmax.xlane.f32.xlu2 %v932_v38 }
 0x1b5   : > { %v865_v41 = vpop.f32.mrf.mxu2  ;;  %v935_v46 = vsel %vm849_vm2, %v922_v39, -inf }
 0x1b6   : > { %v926_v42 = vsel %vm849_vm2, %v865_v41, -inf }
 0x1b7   : > { %v884_v43 = vpop.f32.mrf.mxu3  ;;  %927 = vmax.xlane.f32.xlu0 %v926_v42 }
 0x1b8   : > { %v929_v44 = vsel %vm849_vm2, %v884_v43, -inf }
 0x1b9   : > { %930 = vmax.xlane.f32.xlu1 %v929_v44 }
 0x1ba   : > { %v905_v45 = vpop.f32.mrf.mxu0 }
 0x1bc   : > { %v924_v47 = vpop.f32.mrf.mxu1  ;;  %936 = vmax.xlane.f32.xlu2 %v935_v46 }
 0x1bd   : > { %v867_v48 = vpop.f32.mrf.mxu2 }
 0x1bf   : > { %v886_v49 = vpop.f32.mrf.mxu3 }
 0x1cb   : > { %733 = vrot.lane.b32.xlu0 %v1647_v23, %s1532_s22 }
 0x1d2   : > { %729 = vrot.lane.b32.xlu1 %v1649_v24, %s1532_s22 }
 0x1d4   : > { %731 = vrot.lane.b32.xlu2 %v1659_v40, %s1532_s22  ;;  %s402_s22 = scalar_lea.vmem %s1883_s10, %s1624_s25 }
 0x227   : > { %v934_v52 = vpop.xlane.xlu2 %933 }
 0x228   : > { %v940_v53 = vsub.f32 %v903_v37, %v934_v52 }
 0x22a   : > { %v946_v54 = vmul.f32 1.442695, %v940_v53  ;;  %v928_v55 = vpop.xlane.xlu0 %927 }
 0x22b   : > { %v938_v56 = vsub.f32 %v865_v41, %v928_v55 }
 0x22c   : > { %1485 = vpow2.f32 %v946_v54  ;;  %v931_v57 = vpop.xlane.xlu1 %930 }
 0x22d   : > { %v942_v58 = vmul.f32 1.442695, %v938_v56  ;;  %v939_v59 = vsub.f32 %v884_v43, %v931_v57 }
 0x22f   : > { %1487 = vpow2.f32 %v942_v58  ;;  %v944_v60 = vmul.f32 1.442695, %v939_v59  ;;  %v937_v61 = vpop.xlane.xlu2 %936 }
 0x230   : > { %v941_v23 = vsub.f32 %v922_v39, %v937_v61 }
 0x231   : > { %1489 = vpow2.f32 %v944_v60 }
 0x232   : > { %v1741_v62 = vpop.eup %1485  ;;  %v948_v24 = vmul.f32 1.442695, %v941_v23 }
 0x233   : > { %v956_v40 = vsel %vm849_vm2, %v1741_v62, 0.0 }
 0x234   : > { %957 = vadd.xlane.f32.xlu2 %v956_v40  ;;  %1491 = vpow2.f32 %v948_v24 }
 0x235   : > { %v1745_v63 = vpop.eup %1487 }
 0x236   : > { %v950_v0 = vsel %vm849_vm2, %v1745_v63, 0.0 }
 0x237   : > { %v1749_v1 = vpop.eup %1489  ;;  %951 = vadd.xlane.f32.xlu1 %v950_v0  ;;  %v732_v4 = vpop.permute.xlu2 %731 }
 0x238   : > { %v953_v2 = vsel %vm849_vm2, %v1749_v1, 0.0  ;;  %v744_v9 = vshrl.u32 %v732_v4, 16 }
 0x239   : > { %954 = vadd.xlane.f32.xlu0 %v953_v2 }
 0x23a   : > { %v1753_v3 = vpop.eup %1491 }
 0x23b   : > { %v959_v8 = vsel %vm849_vm2, %v1753_v3, 0.0 }
 0x23d   : > { %v734_v5 = vpop.permute.xlu0 %733 }
 0x23e   : > { %v745_v7 = vshrl.u32 %v734_v5, 16  ;;  %v743_v10 = vpack.i.b16 %v734_v5, %v732_v4 }
 0x23f   : > { %960 = vadd.xlane.f32.xlu1 %v959_v8 }
 0x240   : > { %v746_v11 = vpack.i.b16 %v745_v7, %v744_v9  ;;  %v756_v12 = vperm.slane %v743_v10, %v1651_v25 }
 0x242   : > { %v782_v15 = vperm.slane %v746_v11, %v1651_v25  ;;  %v757_v18 = vrot.slane %v756_v12, 4 }
 0x244   : > { %v730_v13 = vpop.permute.xlu1 %729  ;;  %v783_v21 = vrot.slane %v782_v15, 4 }
 0x245   : > { %v737_v16 = vpack.i.b16 %v730_v13, %v728_v51  ;;  %v739_v17 = vshrl.u32 %v730_v13, 16 }
 0x247   : > { %v740_v19 = vpack.i.b16 %v739_v17, %v738_v14  ;;  %v751_v20 = vperm.slane %v737_v16, %v1651_v25 }
 0x249   : > { %v758_v22 = vsel %vm513_vm1, %v757_v18, %v751_v20  ;;  %v759_v26 = vrot.slane %v751_v20, 4  ;;  %v777_v27 = vperm.slane %v740_v19, %v1651_v25 }
 0x24a   : > { %v764_v28 = vperm.slane %v758_v22, %v1665_v50 }
 0x24b   : > { %v760_v29 = vsel %vm513_vm1, %v756_v12, %v759_v26  ;;  %v784_v30 = vsel %vm513_vm1, %v783_v21, %v777_v27  ;;  %v785_v31 = vrot.slane %v777_v27, 4 }
 0x24c   : > { %v768_v32 = vperm.slane %v760_v29, %v1665_v50  ;;  %v790_v33 = vperm.slane %v784_v30, %v1665_v50  ;;  %v769_v35 = vrot.slane %v764_v28, 4 }
 0x24d   : > { %v786_v34 = vsel %vm513_vm1, %v782_v15, %v785_v31 }
 0x24e   : > { %v771_v36 = vrot.slane %v768_v32, 4  ;;  %v794_v37 = vperm.slane %v786_v34, %v1665_v50  ;;  %v795_v39 = vrot.slane %v790_v33, 4  ;;  %v770_v43 = vsel %vm513_vm1, 0, %v769_v35 }
 0x250   : > { %v772_v38 = vsel %vm513_vm1, 0, %v771_v36  ;;  %v797_v41 = vrot.slane %v794_v37, 4  ;;  %v799_v46 = vsel %vm513_vm1, %v771_v36, %v764_v28  ;;  %v796_v48 = vsel %vm513_vm1, 0, %v795_v39 }
 0x251   : > { %v804_v42 = vrot.slane %v772_v38, 4  ;;  %v803_v53 = vperm.slane %v799_v46, %v1651_v25 }
 0x252   : > { %v798_v44 = vsel %vm513_vm1, 0, %v797_v41  ;;  %v818_v51 = vsel %vm513_vm1, %v797_v41, %v790_v33 }
 0x253   : > { %v823_v45 = vrot.slane %v798_v44, 4  ;;  %v805_v47 = vsel %vm513_vm1, %v804_v42, %v770_v43  ;;  %v822_v57 = vperm.slane %v818_v51, %v1651_v25 }
 0x254   : > { %v809_v49 = vperm.slane %v805_v47, %v1651_v25 }
 0x255   : > { %v824_v52 = vsel %vm513_vm1, %v823_v45, %v796_v48 }
 0x256   : > { %v810_v54 = vrot.slane %v809_v49, 4  ;;  %v828_v55 = vperm.slane %v824_v52, %v1651_v25 }
 0x258   : > { %v811_v56 = vsel %vm513_vm1, %v810_v54, %v803_v53  ;;  %v829_v58 = vrot.slane %v828_v55, 4 }
 0x259   : > { %v815_v59 = vperm.slane %v811_v56, %v1665_v50 }
 0x25a   : > { %v830_v60 = vsel %vm513_vm1, %v829_v58, %v822_v57 }
 0x25b   : > { %v834_v61 = vperm.slane %v830_v60, %v1665_v50  ;;  %v816_v23 = vrot.slane %v815_v59, 4  ;;  %v840_v24 = vshrl.u32 %v815_v59, 16 }
 0x25d   : > { %v839_v40 = vpack.i.b16 %v834_v61, %v815_v59  ;;  %v841_v0 = vshrl.u32 %v834_v61, 16  ;;  %v817_v2 = vsel %vm513_vm1, 0, %v816_v23  ;;  %v835_v4 = vrot.slane %v834_v61, 4 }
 0x25e   : > { %v846_v10 = vshrl.u32 %v817_v2, 16 }
 0x25f   : > { %v1031_v5 = vsel %vm1029_vm3, %v839_v40, 0  ;;  %v842_v7 = vpack.i.b16 %v841_v0, %v840_v24  ;;  %v836_v8 = vsel %vm513_vm1, 0, %v835_v4 }
 0x260   : > { %1040 = vmatpush.bf16.msrb.mxu2 %v1031_v5  ;;  %v845_v9 = vpack.i.b16 %v836_v8, %v817_v2  ;;  %v847_v11 = vshrl.u32 %v836_v8, 16 }
 0x261   : > { %v1050_v12 = vsel %vm1029_vm3, %v842_v7, 0 }
 0x262   : > { %1059 = vmatpush.bf16.msrb.mxu3 %v1050_v12  ;;  %v1069_v13 = vsel %vm1029_vm3, %v845_v9, 0  ;;  %v848_v14 = vpack.i.b16 %v847_v11, %v846_v10 }
 0x263   : > { %1078 = vmatpush.bf16.msra.mxu0 %v1069_v13 }
 0x264   : > { %v1088_v15 = vsel %vm1029_vm3, %v848_v14, 0 }
 0x265   : > { %1097 = vmatpush.bf16.msra.mxu1 %v1088_v15 }
 0x2a7   : > { %v958_v16 = vpop.xlane.xlu2 %957 }
 0x2a8   : > { %1493 = vrcp.f32 %v958_v16  ;;  %v1001_v26 = vand.u32 2147483647, %v958_v16  ;;  %v1003_v27 = vand.u32 2147483648, %v958_v16  ;;  %vm997_vm5 = vweird.f32 %v958_v16 }
 0x2aa   : > { %v952_v17 = vpop.xlane.xlu1 %951  ;;  %vm1002_vm6 = vcmp.eq.f32.partialorder %v1001_v26, 8.507059e+37  ;;  %v1004_v37 = vor.u32 1.1754944e-38, %v1003_v27 }
 0x2ab   : > { %1495 = vrcp.f32 %v952_v17  ;;  %v971_v35 = vand.u32 2147483647, %v952_v17  ;;  %v973_v36 = vand.u32 2147483648, %v952_v17  ;;  %vm967_vm9 = vweird.f32 %v952_v17 }
 0x2ac   : > { %v955_v18 = vpop.xlane.xlu0 %954 }
 0x2ad   : > { %1497 = vrcp.f32 %v955_v18  ;;  %v986_v42 = vand.u32 2147483647, %v955_v18  ;;  %v988_v43 = vand.u32 2147483648, %v955_v18  ;;  %vm972_vm12 = vcmp.eq.f32.partialorder %v971_v35, 8.507059e+37 }
 0x2ae   : > { %v1494_v19 = vpop.eup %1493  ;;  %v974_v49 = vor.u32 1.1754944e-38, %v973_v36  ;;  %vm982_vm13 = vweird.f32 %v955_v18 }
 0x2af   : > { %v993_v20 = vmul.f32 %v1494_v19, %v958_v16  ;;  %vm998_vm4 = vweird.f32 %v1494_v19  ;;  %v989_v54 = vor.u32 1.1754944e-38, %v988_v43  ;;  %vm987_vm15 = vcmp.eq.f32.partialorder %v986_v42, 8.507059e+37 }
 0x2b0   : > { %vm999_vm7 = vmor %vm997_vm5, %vm998_vm4 }
 0x2b1   : > { %v1496_v21 = vpop.eup %1495  ;;  %v994_v22 = vsub.f32 1.0, %v993_v20 }
 0x2b2   : > { %v963_v28 = vmul.f32 %v1496_v21, %v952_v17  ;;  %v961_v29 = vpop.xlane.xlu1 %960  ;;  %vm968_vm8 = vweird.f32 %v1496_v21 }
 0x2b3   : > { %v1498_v30 = vpop.eup %1497  ;;  %v995_v31 = vmul.f32 %v1494_v19, %v994_v22  ;;  %1499 = vrcp.f32 %v961_v29  ;;  %vm969_vm11 = vmor %vm967_vm9, %vm968_vm8  ;;  %v1016_v60 = vand.u32 2147483647, %v961_v29  ;;  %v1018_v61 = vand.u32 2147483648, %v961_v29 }
 0x2b4   : > { %v964_v32 = vsub.f32 1.0, %v963_v28  ;;  %v978_v33 = vmul.f32 %v1498_v30, %v955_v18  ;;  %vm983_vm10 = vweird.f32 %v1498_v30  ;;  %vm1012_vm4 = vweird.f32 %v961_v29 }
 0x2b5   : > { %v996_v34 = vadd.f32 %v1494_v19, %v995_v31  ;;  %vm984_vm14 = vmor %vm982_vm13, %vm983_vm10  ;;  %v1019_v4 = vor.u32 1.1754944e-38, %v1018_v61  ;;  %vm1229_vm8 = vcmask 195584  }
 0x2b6   : > { %v965_v38 = vmul.f32 %v1496_v21, %v964_v32  ;;  %v979_v39 = vsub.f32 1.0, %v978_v33 }
 0x2b7   : > { %v1000_v41 = vsel %vm999_vm7, %v1494_v19, %v996_v34  ;;  %vm1227_vm7 = vcmask 130048  }
 0x2b8   : > { %v1005_v44 = vsel %vm1002_vm6, %v1004_v37, %v1000_v41  ;;  %v966_v45 = vadd.f32 %v1496_v21, %v965_v38  ;;  %v980_v46 = vmul.f32 %v1498_v30, %v979_v39  ;;  %vm1017_vm6 = vcmp.eq.f32.partialorder %v1016_v60, 8.507059e+37 }
 0x2b9   : > { %v1500_v47 = vpop.eup %1499  ;;  %v1006_v48 = vmul.f32 %v1741_v62, %v1005_v44 }
 0x2ba   : > { %v981_v51 = vadd.f32 %v1498_v30, %v980_v46  ;;  %v1008_v52 = vmul.f32 %v1500_v47, %v961_v29  ;;  %v970_v53 = vsel %vm969_vm11, %v1496_v21, %v966_v45  ;;  %vm1013_vm3 = vweird.f32 %v1500_v47 }
 0x2bb   : > { %v1024_v55 = vpack.c.bf16 %v1006_v48, %v1006_v48  ;;  %v975_v56 = vsel %vm972_vm12, %v974_v49, %v970_v53  ;;  %vm1014_vm5 = vmor %vm1012_vm4, %vm1013_vm3 }
 0x2bc   : > { %v1009_v57 = vsub.f32 1.0, %v1008_v52  ;;  %v976_v58 = vmul.f32 %v1745_v63, %v975_v56  ;;  %v985_v59 = vsel %vm984_vm14, %v1498_v30, %v981_v51 }
 0x2bd   : > { %1427 = vmatmul.msk.bf16.vlgmr.msra.gmra.mxu0 %vm849_vm2, %v1024_v55  ;;  %v990_v62 = vsel %vm987_vm15, %v989_v54, %v985_v59 }
 0x2be   : > { %v1010_v23 = vmul.f32 %v1500_v47, %v1009_v57  ;;  %v1022_v24 = vpack.c.bf16 %v976_v58, %v976_v58  ;;  %v991_v40 = vmul.f32 %v1749_v1, %v990_v62 }
 0x2c0   : > { %v1011_v0 = vadd.f32 %v1500_v47, %v1010_v23  ;;  %1425 = vmatmul.msk.bf16.vlgmr.msrb.gmra.mxu2 %vm849_vm2, %v1022_v24  ;;  %v1023_v2 = vpack.c.bf16 %v991_v40, %v991_v40 }
 0x2c2   : > { %v1015_v5 = vsel %vm1014_vm5, %v1500_v47, %v1011_v0  ;;  %1426 = vmatmul.msk.bf16.vlgmr.msrb.gmra.mxu3 %vm849_vm2, %v1023_v2 }
 0x2c3   : > { %v1020_v63 = vsel %vm1017_vm6, %v1019_v4, %v1015_v5 }
 0x2c4   : > { %v1021_v7 = vmul.f32 %v1753_v3, %v1020_v63 }
 0x2c6   : > { %v1025_v8 = vpack.c.bf16 %v1021_v7, %v1021_v7 }
 0x2c8   : > { %1428 = vmatmul.msk.bf16.vlgmr.msra.gmra.mxu1 %vm849_vm2, %v1025_v8 }
 0x33a   : > { %v1080_v9 = vpop.f32.mrf.mxu0 }
 0x33b   : > { %v1103_v10 = vrot.slane %v1080_v9, 4 }
 0x342   : > { %v1082_v1 = vpop.f32.mrf.mxu0 }
 0x343   : > { %v1042_v11 = vpop.f32.mrf.mxu2 }
 0x344   : > { %v1105_v12 = vsel %vm513_vm1, %v1103_v10, %v1042_v11  ;;  %v1106_v13 = vrot.slane %v1042_v11, 4 }
 0x345   : > { %v1111_v14 = vperm.slane %v1105_v12, %v1651_v25  ;;  %v1061_v15 = vpop.f32.mrf.mxu3  ;;  %v1099_v16 = vpop.f32.mrf.mxu1 }
 0x346   : > { %v1107_v17 = vsel %vm513_vm1, %v1080_v9, %v1106_v13  ;;  %v1118_v18 = vrot.slane %v1061_v15, 4  ;;  %v1116_v19 = vrot.slane %v1099_v16, 4 }
 0x347   : > { %v1115_v3 = vperm.slane %v1107_v17, %v1651_v25  ;;  %v1130_v22 = vrot.slane %v1111_v14, 4 }
 0x348   : > { %v1117_v20 = vsel %vm513_vm1, %v1116_v19, %v1061_v15  ;;  %v1119_v21 = vsel %vm513_vm1, %v1099_v16, %v1118_v18  ;;  %v1444_v16 = vld [vmem:[%s1879_s6] sm:$0xff] }
 0x349   : > { %v1142_v26 = vrot.slane %v1115_v3, 4  ;;  %v1123_v27 = vperm.slane %v1117_v20, %v1651_v25  ;;  %v1127_v28 = vperm.slane %v1119_v21, %v1651_v25 }
 0x34b   : > { %v1128_v29 = vrot.slane %v1123_v27, 4  ;;  %v1131_v30 = vsel %vm513_vm1, %v1123_v27, %v1130_v22  ;;  %v1140_v31 = vrot.slane %v1127_v28, 4  ;;  %v1143_v32 = vsel %vm513_vm1, %v1127_v28, %v1142_v26  ;;  %v1044_v33 = vpop.f32.mrf.mxu2  ;;  %v1482_v26 = vld [vmem:[%s1880_s7] ss:$0 sm:$0xff] }
 0x34c   : > { %v1139_v34 = vperm.slane %v1131_v30, %v1665_v50  ;;  %v1151_v35 = vperm.slane %v1143_v32, %v1665_v50  ;;  %v1538_v32 = vmov 32.0  }
 0x34d   : > { %v1129_v36 = vsel %vm513_vm1, %v1128_v29, %v1111_v14  ;;  %v1141_v37 = vsel %vm513_vm1, %v1140_v31, %v1115_v3  ;;  %v1063_v38 = vpop.f32.mrf.mxu3  ;;  %v1101_v39 = vpop.f32.mrf.mxu1  ;;  %1501 = vrcp.f32 %v1538_v32 }
 0x34e   : > { %v1135_v41 = vperm.slane %v1129_v36, %v1665_v50  ;;  %v1147_v42 = vperm.slane %v1141_v37, %v1665_v50  ;;  %v1154_v43 = vrot.slane %v1139_v34, 4  ;;  %v1158_v44 = vrot.slane %v1151_v35, 4 }
 0x350   : > { %v1152_v45 = vrot.slane %v1135_v41, 4  ;;  %v1155_v46 = vsel %vm513_vm1, 0.0, %v1154_v43  ;;  %v1156_v47 = vrot.slane %v1147_v42, 4  ;;  %v1159_v48 = vsel %vm513_vm1, 0.0, %v1158_v44 }
 0x351   : > { %v1165_v49 = vrot.slane %v1155_v46, 4  ;;  %v1171_v51 = vsel %vm513_vm1, %v1158_v44, %v1147_v42  ;;  %v1176_v52 = vrot.slane %v1159_v48, 4  ;;  %v1160_v53 = vsel %vm513_vm1, %v1154_v43, %v1135_v41 }
 0x352   : > { %v1157_v54 = vsel %vm513_vm1, 0.0, %v1156_v47  ;;  %v1153_v55 = vsel %vm513_vm1, 0.0, %v1152_v45  ;;  %v1164_v56 = vperm.slane %v1160_v53, %v1651_v25  ;;  %v1175_v57 = vperm.slane %v1171_v51, %v1651_v25 }
 0x353   : > { %v1166_v58 = vsel %vm513_vm1, %v1165_v49, %v1153_v55  ;;  %v1177_v59 = vsel %vm513_vm1, %v1176_v52, %v1157_v54  ;;  %v1502_v33 = vpop.eup %1501  ;;  %v1483_v54 = vld [vmem:[%s1881_s8] ss:$0 sm:$0xff] }
 0x354   : > { %v1170_v60 = vperm.slane %v1166_v58, %v1651_v25  ;;  %v1181_v61 = vperm.slane %v1177_v59, %v1651_v25  ;;  %v1184_v62 = vrot.slane %v1164_v56, 4  ;;  %v1196_v23 = vrot.slane %v1175_v57, 4 }
 0x355   : > { %v1275_v34 = vmul.f32 32.0, %v1502_v33 }
 0x356   : > { %v1185_v24 = vsel %vm513_vm1, %v1170_v60, %v1184_v62  ;;  %v1197_v40 = vsel %vm513_vm1, %v1181_v61, %v1196_v23  ;;  %v1182_v0 = vrot.slane %v1170_v60, 4  ;;  %v1194_v2 = vrot.slane %v1181_v61, 4 }
 0x357   : > { %v1193_v4 = vperm.slane %v1185_v24, %v1665_v50  ;;  %v1205_v5 = vperm.slane %v1197_v40, %v1665_v50  ;;  %v1276_v35 = vsub.f32 1.0, %v1275_v34 }
 0x358   : > { %v1183_v63 = vsel %vm513_vm1, %v1182_v0, %v1164_v56  ;;  %v1195_v7 = vsel %vm513_vm1, %v1194_v2, %v1175_v57  ;;  %v1484_v56 = vld [vmem:[%s1882_s9] ss:$0 sm:$0xff] }
 0x359   : > { %v1212_v8 = vrot.slane %v1193_v4, 4  ;;  %v1210_v9 = vrot.slane %v1205_v5, 4  ;;  %v1189_v25 = vperm.slane %v1183_v63, %v1665_v50  ;;  %v1201_v10 = vperm.slane %v1195_v7, %v1665_v50  ;;  %v1445_v50 = vld [vmem:[%s1879_s6 + $0x8] sm:$0xff] }
 0x35a   : > { %1261 = vmatpush.bf16.msra.mxu2 %v1445_v50  ;;  %v1277_v36 = vmul.f32 %v1502_v33, %v1276_v35 }
 0x35b   : > { %v1213_v1 = vsel %vm513_vm1, %v1205_v5, %v1212_v8  ;;  %v1211_v11 = vsel %vm513_vm1, %v1210_v9, %v1193_v4  ;;  %v1206_v12 = vrot.slane %v1201_v10, 4  ;;  %v1208_v13 = vrot.slane %v1189_v25, 4 }
 0x35c   : > { %1223 = vrot.lane.b32.xlu1 %v1213_v1, %s1535_s23  ;;  %1219 = vrot.lane.b32.xlu2 %v1211_v11, %s1536_s24  ;;  %v1278_v37 = vadd.f32 %v1502_v33, %v1277_v36 }
 0x35d   : > { %v1209_v14 = vsel %vm513_vm1, %v1201_v10, %v1208_v13  ;;  %v1207_v15 = vsel %vm513_vm1, %v1206_v12, %v1189_v25  ;;  %vm1279_vm1 = vweird.f32 %v1502_v33 }
 0x35e   : > { %1215 = vrot.lane.b32.xlu0 %v1209_v14, %s1537_s26  ;;  %1262 = vmatpush.bf16.msra.mxu2 %v1444_v16  ;;  %v1280_v38 = vsel %vm1279_vm1, %v1502_v33, %v1278_v37 }
 0x3b6   : > { %v1220_v18 = vpop.permute.xlu2 %1219 }
 0x3ce   : > { %v1224_v3 = vpop.permute.xlu1 %1223 }
 0x3d0   : > { %v1216_v17 = vpop.permute.xlu0 %1215 }
 0x3d1   : > { %v1226_v19 = vsel %vm849_vm2, %v1207_v15, %v1216_v17 }
 0x3d2   : > { %v1228_v20 = vsel %vm1227_vm7, %v1226_v19, %v1220_v18 }
 0x3d3   : > { %v1230_v21 = vsel %vm1229_vm8, %v1228_v20, %v1224_v3 }
 0x3d4   : > { %v1231_v22 = vpack.c.bf16 %v1230_v21, %v1230_v21 }
 0x3d6   : > { %1437 = vmatmul.msk.bf16.vlgmr.msra.gmra.mxu2 %vm426_vm0, %v1231_v22 }
 0x459   : > { %v1264_v27 = vpop.f32.mrf.mxu2 }
 0x45a   : > { %v1265_v28 = vadd.f32 %v1482_v26, %v1264_v27 }
 0x45c   : > { %v1268_v29 = vadd.f32 %v1265_v28, %v1634_v6 }
 0x45e   : > { %v1271_v30 = vsel %vm426_vm0, %v1268_v29, 0.0 }
 0x45f   : > { %1272 = vadd.xlane.f32.xlu0 %v1271_v30 }
 0x461   : > { %v1266_v31 = vpop.f32.mrf.mxu2 }
 0x4d2   : > { %v1273_v39 = vpop.xlane.xlu0 %1272 }
 0x4d3   : > { %v1281_v41 = vmul.f32 %v1280_v38, %v1273_v39 }
 0x4d5   : > { %v1282_v42 = vsub.f32 %v1268_v29, %v1281_v41 }
 0x4d7   : > { %v1283_v43 = vmul.f32 %v1282_v42, %v1282_v42 }
 0x4d9   : > { %v1284_v44 = vsel %vm426_vm0, %v1283_v43, 0.0 }
 0x4da   : > { %1285 = vadd.xlane.f32.xlu2 %v1284_v44 }
 0x54d   : > { %v1286_v6 = vpop.xlane.xlu2 %1285 }
 0x54e   : > { %v1287_v45 = vmul.f32 %v1286_v6, %v1280_v38 }
 0x550   : > { %v1288_v46 = vadd.f32 1e-05, %v1287_v45 }
 0x552   : > { %1503 = vrsqrt.f32 %v1288_v46  ;;  %vm1295_vm9 = vweird.f32 %v1288_v46 }
 0x558   : > { %v1504_v47 = vpop.eup %1503 }
 0x559   : > { %v1290_v48 = vmul.f32 %v1504_v47, %v1288_v46  ;;  %vm1296_vm2 = vweird.f32 %v1504_v47 }
 0x55a   : > { %vm1297_vm10 = vmor %vm1295_vm9, %vm1296_vm2 }
 0x55b   : > { %v1291_v49 = vmul.f32 %v1504_v47, %v1290_v48 }
 0x55d   : > { %v1292_v51 = vmul.f32 0.5, %v1291_v49 }
 0x55f   : > { %v1293_v52 = vsub.f32 1.5, %v1292_v51 }
 0x561   : > { %v1294_v53 = vmul.f32 %v1504_v47, %v1293_v52 }
 0x563   : > { %v1298_v55 = vsel %vm1297_vm10, %v1504_v47, %v1294_v53 }
 0x564   : > { %v1299_v57 = vmul.f32 %v1298_v55, %v1282_v42 }
 0x566   : > { %v1303_v58 = vmul.f32 %v1483_v54, %v1299_v57 }
 0x568   : > { %v1307_v59 = vadd.f32 %v1484_v56, %v1303_v58 }
 0x56a   : > { %1308 = vst.msk [vmem:[%s402_s22] sm:$0xff] %vm426_vm0, %v1307_v59 }
 0x56b PF: > { %s20_s15 = sadd.s32 1, %s1527_s15   ;;  %s1884_s13 = smov %s1523_s14 }
 0x56c   : > { %p17_p5 = scmp.ge.s32.totalorder %s20_s15, 4   ;;  %s1885_s14 = smov %s1887_s16 }
 0x56e   :  { %19 = sbr.rel (!%p17_p5) target bundleno = 2 (0x2), region = 93 }

// kernel: transformer_forward.14
= control target key start
LH: loop header
LB: loop body
LE: loop exit
PB: predicated region body
PF: predicated region fallthrough
CT: control target
= control target key end

     0   :  { %s2046_s24 = smov 0   ;;  %s2048_s25 = smov 0   ;;  %s2330_s0 = inlined_call_operand.vmem [shape: f32[16,32], index: 0, kind: input, shape index: {}]   ;;  %s2331_s1 = inlined_call_operand.vmem [shape: bf16[32,2048], index: 1, kind: input, shape index: {}]   ;;  %s2332_s2 = inlined_call_operand.vmem [shape: f32[1,2048], index: 2, kind: input, shape index: {}]   ;;  %s2333_s3 = inlined_call_operand.vmem [shape: bf16[2048,32], index: 3, kind: input, shape index: {}]   ;;  %s2334_s4 = inlined_call_operand.vmem [shape: f32[1,32], index: 4, kind: input, shape index: {}]   ;;  %s2335_s5 = inlined_call_operand.vmem [shape: f32[1,32], index: 5, kind: input, shape index: {}]   ;;  %s2336_s6 = inlined_call_operand.vmem [shape: f32[1,32], index: 6, kind: input, shape index: {}]   ;;  %s2337_s7 = inlined_call_operand.vmem [shape: f32[16,32], index: 7, kind: output, shape index: {}]  }
   0x1   :  { %s2050_s26 = smov 0   ;;  %s2052_s27 = smov 0  }
   0x2   :  { %s2054_s28 = smov 0  }
   0x3 LB: > { %s26_s29 = sadd.s32 1, %s1998_s27  ;;  %p69_p1 = scmp.ne.s32.totalorder %s1990_s25, %s1986_s24  ;;  %s2002_s28 = sphi %s2054_s28, %s17_s28   ;;  %s1998_s27 = sphi %s2052_s27, %s2341_s27   ;;  %s1994_s26 = sphi %s2050_s26, %s2340_s26   ;;  %s1990_s25 = sphi %s2048_s25, %s2339_s25   ;;  %s1986_s24 = sphi %s2046_s24, %s2338_s24  }
   0x4   : > { %p27_p0 = scmp.ge.s32.totalorder %s26_s29, 2  ;;  %p70_p2 = scmp.eq.s32.totalorder %s2002_s28, 0 }
   0x5   : > { %s62_s8 = sadd.s32 1, %s1990_s25  ;;  %p1489_p5 = scmp.ge.s32.totalorder %s2002_s28, 2 }
   0x6   : > { %s2343_s29 = smov (%p27_p0, %s26_s29), 0  ;;  %p71_p3 = por %p70_p2, %p69_p1 }
   0x7   : > { %s59_s30 = ssub.s32 %s1998_s27, %s2343_s29  ;;  %254 = sbr.rel (%p1489_p5) target bundleno = 32 (0x20), region = 32 }
   0x8   : > { %p60_p4 = scmp.eq.s32.totalorder %s59_s30, 0 }
   0xa   : > { %s2081_s9 = scalar_select %p60_p4, %s1990_s25, %s62_s8  }
   0xc   : > { %257 = sbr.rel (!%p71_p3) target bundleno = 32 (0x20), region = 36  ;;  %s259_s10 = sand.u32 (%p71_p3), 1, %s1990_s25  }
   0xd   : > { %s1832_s11 = sshll.u32 (%p71_p3), %s1998_s27, 5  ;;  %s1490_s12 = sshll.u32 (%p71_p3), %s259_s10, 7 }
   0xe   : > { %s2089_s15 = scalar_lea.vmem (%p71_p3), %s2331_s1, %s1832_s11  ;;  %s261_s16 = scalar_lea.vmem (%p71_p3), [#allocation2], %s1490_s12 }
   0xf   : > { %v277_v0 = vld [vmem:[%s2089_s15] sm:$0xff] (%p71_p3)  ;;  %v279_v1 = vld [vmem:[%s2089_s15 + $0x8] sm:$0xff] (%p71_p3)  ;;  %v281_v2 = vld [vmem:[%s2089_s15 + $0x10] sm:$0xff] (%p71_p3) }
  0x10   : > { %278 = vst [vmem:[%s261_s16] sm:$0xff] (%p71_p3), %v277_v0  ;;  %v283_v3 = vld [vmem:[%s2089_s15 + $0x18] sm:$0xff] (%p71_p3)  ;;  %v285_v4 = vld [vmem:[%s2089_s15 + $0x40] sm:$0xff] (%p71_p3)  ;;  %v287_v5 = vld [vmem:[%s2089_s15 + $0x48] sm:$0xff] (%p71_p3) }
  0x11   : > { %280 = vst [vmem:[%s261_s16 + $0x8] sm:$0xff] %v279_v1  ;;  %v289_v6 = vld [vmem:[%s2089_s15 + $0x50] sm:$0xff]  ;;  %v291_v7 = vld [vmem:[%s2089_s15 + $0x58] sm:$0xff]  ;;  %v293_v8 = vld [vmem:[%s2089_s15 + $0x80] sm:$0xff] }
  0x12   : > { %282 = vst [vmem:[%s261_s16 + $0x10] sm:$0xff] %v281_v2  ;;  %v295_v9 = vld [vmem:[%s2089_s15 + $0x88] sm:$0xff]  ;;  %v297_v10 = vld [vmem:[%s2089_s15 + $0x90] sm:$0xff]  ;;  %v299_v11 = vld [vmem:[%s2089_s15 + $0x98] sm:$0xff] }
  0x13   : > { %284 = vst [vmem:[%s261_s16 + $0x18] sm:$0xff] %v283_v3  ;;  %v301_v12 = vld [vmem:[%s2089_s15 + $0xc0] sm:$0xff]  ;;  %v303_v13 = vld [vmem:[%s2089_s15 + $0xc8] sm:$0xff]  ;;  %v305_v14 = vld [vmem:[%s2089_s15 + $0xd0] sm:$0xff] }
  0x14   : > { %286 = vst [vmem:[%s261_s16 + $0x20] sm:$0xff] %v285_v4  ;;  %v307_v15 = vld [vmem:[%s2089_s15 + $0xd8] sm:$0xff] }
  0x15   : > { %288 = vst [vmem:[%s261_s16 + $0x28] sm:$0xff] %v287_v5 }
  0x16   : > { %290 = vst [vmem:[%s261_s16 + $0x30] sm:$0xff] %v289_v6 }
  0x17   : > { %292 = vst [vmem:[%s261_s16 + $0x38] sm:$0xff] %v291_v7 }
  0x18   : > { %294 = vst [vmem:[%s261_s16 + $0x40] sm:$0xff] %v293_v8 }
  0x19   : > { %296 = vst [vmem:[%s261_s16 + $0x48] sm:$0xff] %v295_v9 }
  0x1a   : > { %298 = vst [vmem:[%s261_s16 + $0x50] sm:$0xff] %v297_v10 }
  0x1b   : > { %300 = vst [vmem:[%s261_s16 + $0x58] sm:$0xff] %v299_v11 }
  0x1c   : > { %302 = vst [vmem:[%s261_s16 + $0x60] sm:$0xff] %v301_v12 }
  0x1d   : > { %304 = vst [vmem:[%s261_s16 + $0x68] sm:$0xff] %v303_v13 }
  0x1e   : > { %306 = vst [vmem:[%s261_s16 + $0x70] sm:$0xff] %v305_v14 }
  0x1f   : > { %308 = vst [vmem:[%s261_s16 + $0x78] sm:$0xff] %v307_v15 }
  0x20 PF: > { %p1493_p6 = scmp.ge.s32.totalorder %s2002_s28, 1  ;;  %p330_p7 = scmp.lt.s32.totalorder %s2002_s28, 3 }
  0x22   : > { %p331_p8 = pnand %p1493_p6, %p330_p7 }
  0x23   : > { %s337_s17 = sand.u32 (!%p331_p8), 1, %s1986_s24   ;;  %s1495_s18 = sshll.u32 (!%p331_p8), %s1994_s26, 3 }
  0x24   : > { %334 = sbr.rel (%p331_p8) target bundleno = 655 (0x28f), region = 67  ;;  %s1494_s19 = sshll.u32 (!%p331_p8), %s337_s17, 7 }
  0x25   : > { %p390_p9 = scmp.lt.s32.totalorder (!%p331_p8), %s1495_s18, 15  ;;  %s1496_s20 = sshll.u32 (!%p331_p8), %s1994_s26, 7 }
  0x26   : > { %p395_p10 = scmp.lt.s32.totalorder (!%p331_p8), %s1496_s20, 255  ;;  %s2123_s24 = scalar_lea.vmem (!%p331_p8), [#allocation2], %s1494_s19 }
  0x27   : > { %p1498_p11 = scmp.ne.s32.totalorder (!%p331_p8), %s1994_s26, 0 }
  0x29   : > { %s2345_s18 = smov (!%p390_p9, %s1495_s18), 15  ;;  %s2347_s20 = smov (!%p395_p10, %s1496_s20), 255 }
  0x2a   : > { %s392_s23 = scalar_lea.vmem %s2332_s2, %s2345_s18  ;;  %s1497_s30 = sshll.u32 %s2347_s20, 2 }
  0x2b   : > { %s2121_s11 = scalar_lea.vmem %s2333_s3, %s1497_s30  ;;  %410 = sbr.rel (%p1498_p11) target bundleno = 51 (0x33), region = 75 }
  0x30   : > { %vm411_vm0 = vcmask 261120   ;;  %v2004_v16 = vmov 0.0  }
  0x31   : > { %412 = vst.msk [vmem:[%s2337_s7] sm:$0xff] %vm411_vm0, %v2004_v16 }
  0x32   : > { %413 = vst.msk [vmem:[%s2337_s7 + $0x8] sm:$0xff] %vm411_vm0, %v2004_v16 }
  0x33 PF: > { %v1533_v17 = vld [vmem:[%s2123_s24 + $0x40] sm:$0xf]  ;;  %v1841_v19 = vld [vmem:[%s2123_s24 + $0x44] sm:$0xf]  ;;  %v1541_v22 = vld [vmem:[%s2123_s24 + $0x48] sm:$0xf] }
  0x34   : > { %v1845_v18 = vld [vmem:[%s2123_s24 + $0x5c] sm:$0xf0]  ;;  %v1535_v21 = vld [vmem:[%s2123_s24 + $0x60] sm:$0xf0]  ;;  %v1846_v23 = vld [vmem:[%s2123_s24 + $0x64] sm:$0xf0] }
  0x35   : > { %v1534_v20 = vor.u32 %v1845_v18, %v1533_v17  ;;  %v1538_v24 = vor.u32 %v1841_v19, %v1535_v21  ;;  %v1542_v25 = vor.u32 %v1846_v23, %v1541_v22  ;;  %v1842_v26 = vld [vmem:[%s2123_s24 + $0x4c] sm:$0xf]  ;;  %v1501_v28 = vld [vmem:[%s2123_s24] sm:$0xf]  ;;  %v1833_v31 = vld [vmem:[%s2123_s24 + $0x4] sm:$0xf] }
  0x36   : > { %v1543_v27 = vld [vmem:[%s2123_s24 + $0x68] sm:$0xf0]  ;;  %v1837_v30 = vld [vmem:[%s2123_s24 + $0x1c] sm:$0xf0]  ;;  %v1503_v32 = vld [vmem:[%s2123_s24 + $0x20] sm:$0xf0] }
  0x37   : > { %541 = vmatpush.bf16.msra.mxu0 %v1534_v20  ;;  %v1546_v29 = vor.u32 %v1842_v26, %v1543_v27  ;;  %555 = vmatpush.bf16.msra.mxu1 %v1538_v24  ;;  %v1502_v33 = vor.u32 %v1837_v30, %v1501_v28  ;;  %v1506_v34 = vor.u32 %v1833_v31, %v1503_v32  ;;  %v1509_v35 = vld [vmem:[%s2123_s24 + $0x8] sm:$0xf]  ;;  %v1834_v37 = vld [vmem:[%s2123_s24 + $0xc] sm:$0xf]  ;;  %v414_v40 = vld [vmem:[%s2330_s0] sm:$0xff]  ;;  %vm531_vm1 = vcmask 261120  }
  0x38   : > { %569 = vmatpush.bf16.msra.mxu2 %v1542_v25  ;;  %v1838_v36 = vld [vmem:[%s2123_s24 + $0x24] sm:$0xf0]  ;;  %v1511_v39 = vld [vmem:[%s2123_s24 + $0x28] sm:$0xf0]  ;;  %v1557_v44 = vld [vmem:[%s2123_s24 + $0x58] sm:$0xf] }
  0x39   : > { %583 = vmatpush.bf16.msra.mxu3 %v1546_v29  ;;  %v1510_v38 = vor.u32 %v1838_v36, %v1509_v35  ;;  %v415_v41 = vld [vmem:[%s2330_s0 + $0x8] sm:$0xff]  ;;  %v1514_v42 = vor.u32 %v1834_v37, %v1511_v39  ;;  %v1848_v45 = vld [vmem:[%s2123_s24 + $0x74] sm:$0xf0]  ;;  %v1844_v46 = vld [vmem:[%s2123_s24 + $0x5c] sm:$0xf]  ;;  %p1827_p12 = scmp.ne.s32.totalorder %s1994_s26, 1 }
  0x3a   : > { %v2154_v43 = vpack.c.bf16 %v415_v41, %v414_v40  ;;  %v1558_v47 = vor.u32 %v1848_v45, %v1557_v44  ;;  %v1559_v48 = vld [vmem:[%s2123_s24 + $0x78] sm:$0xf0]  ;;  %v1549_v49 = vld [vmem:[%s2123_s24 + $0x50] sm:$0xf]  ;;  %v1525_v53 = vld [vmem:[%s2123_s24 + $0x18] sm:$0xf] }
  0x3b   : > { %542 = vmatpush.bf16.msra.mxu0 %v1502_v33  ;;  %v1847_v50 = vld [vmem:[%s2123_s24 + $0x6c] sm:$0xf0]  ;;  %556 = vmatpush.bf16.msra.mxu1 %v1506_v34  ;;  %v1562_v51 = vor.u32 %v1844_v46, %v1559_v48  ;;  %v1840_v54 = vld [vmem:[%s2123_s24 + $0x34] sm:$0xf0]  ;;  %v1843_v55 = vld [vmem:[%s2123_s24 + $0x54] sm:$0xf] }
  0x3c   : > { %570 = vmatpush.bf16.msra.mxu2 %v1510_v38  ;;  %v1550_v52 = vor.u32 %v1847_v50, %v1549_v49  ;;  %v1526_v56 = vor.u32 %v1840_v54, %v1525_v53  ;;  %v1551_v57 = vld [vmem:[%s2123_s24 + $0x70] sm:$0xf0]  ;;  %v1836_v58 = vld [vmem:[%s2123_s24 + $0x1c] sm:$0xf]  ;;  %v1517_v62 = vld [vmem:[%s2123_s24 + $0x10] sm:$0xf] }
  0x3d   : > { %584 = vmatpush.bf16.msra.mxu3 %v1514_v42  ;;  %v1527_v59 = vld [vmem:[%s2123_s24 + $0x38] sm:$0xf0]  ;;  %v1554_v60 = vor.u32 %v1843_v55, %v1551_v57  ;;  %v1839_v63 = vld [vmem:[%s2123_s24 + $0x2c] sm:$0xf0]  ;;  %v1835_v0 = vld [vmem:[%s2123_s24 + $0x14] sm:$0xf] }
  0x3e   : > { %1563 = vmatmul.msk.bf16.vlgmr.msra.gmra.mxu0 %vm531_vm1, %v2154_v43  ;;  %v1530_v61 = vor.u32 %v1836_v58, %v1527_v59  ;;  %1564 = vmatmul.msk.bf16.vlgmr.msra.gmra.mxu1 %vm531_vm1, %v2154_v43  ;;  %v1519_v1 = vld [vmem:[%s2123_s24 + $0x30] sm:$0xf0]  ;;  %v1518_v2 = vor.u32 %v1839_v63, %v1517_v62  ;;  %v1872_v3 = vld [vmem:[%s2121_s11 + $0xb8] sm:$0xff]  ;;  %v1870_v12 = vld [vmem:[%s2121_s11 + $0xa8] sm:$0xff] }
  0x3f   : > { %1565 = vmatmul.msk.bf16.vlgmr.msra.gmra.mxu2 %vm531_vm1, %v2154_v43  ;;  %597 = vmatpush.bf16.msrb.mxu0 %v1550_v52  ;;  %v1522_v4 = vor.u32 %v1835_v0, %v1519_v1  ;;  %v1856_v5 = vld [vmem:[%s2121_s11 + $0x38] sm:$0xff]  ;;  %v1871_v8 = vld [vmem:[%s2121_s11 + $0xb0] sm:$0xff]  ;;  %v1878_v13 = vld [vmem:[%s2121_s11 + $0xe8] sm:$0xff] }
  0x40   : > { %625 = vmatpush.bf16.msrb.mxu2 %v1558_v47  ;;  %1566 = vmatmul.msk.bf16.vlgmr.msra.gmra.mxu3 %vm531_vm1, %v2154_v43  ;;  %v1880_v6 = vld [vmem:[%s2121_s11 + $0xf8] sm:$0xff]  ;;  %v1879_v9 = vld [vmem:[%s2121_s11 + $0xf0] sm:$0xff]  ;;  %v1854_v14 = vld [vmem:[%s2121_s11 + $0x28] sm:$0xff] }
  0x41   : > { %639 = vmatpush.bf16.msrb.mxu3 %v1562_v51  ;;  %611 = vmatpush.bf16.msrb.mxu1 %v1554_v60  ;;  %v1864_v7 = vld [vmem:[%s2121_s11 + $0x78] sm:$0xff]  ;;  %v1855_v10 = vld [vmem:[%s2121_s11 + $0x30] sm:$0xff]  ;;  %v1862_v15 = vld [vmem:[%s2121_s11 + $0x68] sm:$0xff] }
  0x42   : > { %v1863_v11 = vld [vmem:[%s2121_s11 + $0x70] sm:$0xff]  ;;  %v1869_v16 = vld [vmem:[%s2121_s11 + $0xa0] sm:$0xff]  ;;  %v1868_v20 = vld [vmem:[%s2121_s11 + $0x98] sm:$0xff] }
  0x43   : > { %598 = vmatpush.bf16.msrb.mxu0 %v1518_v2  ;;  %v1853_v17 = vld [vmem:[%s2121_s11 + $0x20] sm:$0xff]  ;;  %v1852_v21 = vld [vmem:[%s2121_s11 + $0x18] sm:$0xff]  ;;  %v1867_v24 = vld [vmem:[%s2121_s11 + $0x90] sm:$0xff] }
  0x44   : > { %626 = vmatpush.bf16.msrb.mxu2 %v1526_v56  ;;  %v1877_v18 = vld [vmem:[%s2121_s11 + $0xe0] sm:$0xff]  ;;  %v1876_v22 = vld [vmem:[%s2121_s11 + $0xd8] sm:$0xff]  ;;  %v1851_v25 = vld [vmem:[%s2121_s11 + $0x10] sm:$0xff] }
  0x45   : > { %640 = vmatpush.bf16.msrb.mxu3 %v1530_v61  ;;  %612 = vmatpush.bf16.msrb.mxu1 %v1522_v4  ;;  %v1861_v19 = vld [vmem:[%s2121_s11 + $0x60] sm:$0xff]  ;;  %v1860_v23 = vld [vmem:[%s2121_s11 + $0x58] sm:$0xff]  ;;  %v1875_v26 = vld [vmem:[%s2121_s11 + $0xd0] sm:$0xff] }
  0x46   : > { %v1859_v27 = vld [vmem:[%s2121_s11 + $0x50] sm:$0xff]  ;;  %v1850_v28 = vld [vmem:[%s2121_s11 + $0x8] sm:$0xff]  ;;  %v1849_v30 = vld [vmem:[%s2121_s11] sm:$0xff] }
  0x47   : > { %1185 = vmatpush.bf16.msra.mxu0 %v1856_v5  ;;  %v1858_v29 = vld [vmem:[%s2121_s11 + $0x48] sm:$0xff]  ;;  %v1857_v31 = vld [vmem:[%s2121_s11 + $0x40] sm:$0xff]  ;;  %v1888_v32 = vld [vmem:[%s2121_s11 + $0x138] sm:$0xff] }
  0x48   : > { %1213 = vmatpush.bf16.msra.mxu2 %v1872_v3  ;;  %v1896_v33 = vld [vmem:[%s2121_s11 + $0x178] sm:$0xff]  ;;  %v1866_v34 = vld [vmem:[%s2121_s11 + $0x88] sm:$0xff]  ;;  %v1887_v36 = vld [vmem:[%s2121_s11 + $0x130] sm:$0xff] }
  0x49   : > { %1227 = vmatpush.bf16.msra.mxu3 %v1880_v6  ;;  %1199 = vmatpush.bf16.msra.mxu1 %v1864_v7  ;;  %v1874_v35 = vld [vmem:[%s2121_s11 + $0xc8] sm:$0xff]  ;;  %v1895_v37 = vld [vmem:[%s2121_s11 + $0x170] sm:$0xff]  ;;  %v1865_v38 = vld [vmem:[%s2121_s11 + $0x80] sm:$0xff] }
  0x4a   : > { %v1873_v39 = vld [vmem:[%s2121_s11 + $0xc0] sm:$0xff]  ;;  %v1904_v40 = vld [vmem:[%s2121_s11 + $0x1b8] sm:$0xff]  ;;  %v1886_v42 = vld [vmem:[%s2121_s11 + $0x128] sm:$0xff] }
  0x4b   : > { %1186 = vmatpush.bf16.msra.mxu0 %v1855_v10  ;;  %v1912_v41 = vld [vmem:[%s2121_s11 + $0x1f8] sm:$0xff]  ;;  %v1903_v44 = vld [vmem:[%s2121_s11 + $0x1b0] sm:$0xff]  ;;  %v1885_v46 = vld [vmem:[%s2121_s11 + $0x120] sm:$0xff] }
  0x4c   : > { %1214 = vmatpush.bf16.msra.mxu2 %v1871_v8  ;;  %v1911_v45 = vld [vmem:[%s2121_s11 + $0x1f0] sm:$0xff]  ;;  %v1893_v47 = vld [vmem:[%s2121_s11 + $0x160] sm:$0xff]  ;;  %v1902_v48 = vld [vmem:[%s2121_s11 + $0x1a8] sm:$0xff] }
  0x4d   : > { %1228 = vmatpush.bf16.msra.mxu3 %v1879_v9  ;;  %1200 = vmatpush.bf16.msra.mxu1 %v1863_v11  ;;  %v1910_v49 = vld [vmem:[%s2121_s11 + $0x1e8] sm:$0xff]  ;;  %v1884_v50 = vld [vmem:[%s2121_s11 + $0x118] sm:$0xff]  ;;  %v1901_v52 = vld [vmem:[%s2121_s11 + $0x1a0] sm:$0xff] }
  0x4e   : > { %1567 = vmatmul.msk.bf16.vlgmr.msrb.gmra.mxu0 %vm531_vm1, %v2154_v43  ;;  %1568 = vmatmul.msk.bf16.vlgmr.msrb.gmra.mxu1 %vm531_vm1, %v2154_v43  ;;  %v1892_v51 = vld [vmem:[%s2121_s11 + $0x158] sm:$0xff]  ;;  %v1909_v53 = vld [vmem:[%s2121_s11 + $0x1e0] sm:$0xff]  ;;  %v1883_v54 = vld [vmem:[%s2121_s11 + $0x110] sm:$0xff] }
  0x4f   : > { %1187 = vmatpush.bf16.msra.mxu0 %v1854_v14  ;;  %1569 = vmatmul.msk.bf16.vlgmr.msrb.gmra.mxu2 %vm531_vm1, %v2154_v43  ;;  %v1891_v55 = vld [vmem:[%s2121_s11 + $0x150] sm:$0xff]  ;;  %v1900_v56 = vld [vmem:[%s2121_s11 + $0x198] sm:$0xff]  ;;  %v1882_v58 = vld [vmem:[%s2121_s11 + $0x108] sm:$0xff] }
  0x50   : > { %1215 = vmatpush.bf16.msra.mxu2 %v1870_v12  ;;  %1570 = vmatmul.msk.bf16.vlgmr.msrb.gmra.mxu3 %vm531_vm1, %v2154_v43  ;;  %v1894_v43 = vld [vmem:[%s2121_s11 + $0x168] sm:$0xff]  ;;  %v1908_v57 = vld [vmem:[%s2121_s11 + $0x1d8] sm:$0xff]  ;;  %v1899_v60 = vld [vmem:[%s2121_s11 + $0x190] sm:$0xff] }
  0x51   : > { %1229 = vmatpush.bf16.msra.mxu3 %v1878_v13  ;;  %1201 = vmatpush.bf16.msra.mxu1 %v1862_v15  ;;  %v1890_v59 = vld [vmem:[%s2121_s11 + $0x148] sm:$0xff]  ;;  %v1907_v61 = vld [vmem:[%s2121_s11 + $0x1d0] sm:$0xff]  ;;  %v1881_v62 = vld [vmem:[%s2121_s11 + $0x100] sm:$0xff] }
  0x52   : > { %v1889_v63 = vld [vmem:[%s2121_s11 + $0x140] sm:$0xff]  ;;  %v1898_v0 = vld [vmem:[%s2121_s11 + $0x188] sm:$0xff] }
  0x53   : > { %1188 = vmatpush.bf16.msra.mxu0 %v1853_v17  ;;  %v1906_v1 = vld [vmem:[%s2121_s11 + $0x1c8] sm:$0xff]  ;;  %v2255_v2 = vld [vmem:[%s392_s23] sm:$0xff] }
  0x54   : > { %1216 = vmatpush.bf16.msra.mxu2 %v1869_v16  ;;  %v435_v4 = vperm.slane %v2255_v2, 0  ;;  %v436_v6 = vperm.slane %v2255_v2, 1  ;;  %v1897_v7 = vld [vmem:[%s2121_s11 + $0x180] sm:$0xff] }
  0x55   : > { %1230 = vmatpush.bf16.msra.mxu3 %v1877_v18  ;;  %1202 = vmatpush.bf16.msra.mxu1 %v1861_v19  ;;  %v1905_v8 = vld [vmem:[%s2121_s11 + $0x1c0] sm:$0xff]  ;;  %v437_v18 = vperm.slane %v2255_v2, 2 }
  0x57   : > { %1189 = vmatpush.bf16.msra.mxu0 %v1852_v21 }
  0x58   : > { %1217 = vmatpush.bf16.msra.mxu2 %v1868_v20  ;;  %v438_v20 = vperm.slane %v2255_v2, 3 }
  0x59   : > { %1231 = vmatpush.bf16.msra.mxu3 %v1876_v22  ;;  %1203 = vmatpush.bf16.msra.mxu1 %v1860_v23 }
  0x5b   : > { %1190 = vmatpush.bf16.msra.mxu0 %v1851_v25 }
  0x5c   : > { %1218 = vmatpush.bf16.msra.mxu2 %v1867_v24 }
  0x5d   : > { %1232 = vmatpush.bf16.msra.mxu3 %v1875_v26  ;;  %1204 = vmatpush.bf16.msra.mxu1 %v1859_v27 }
  0x5f   : > { %1191 = vmatpush.bf16.msra.mxu0 %v1850_v28 }
  0x60   : > { %1219 = vmatpush.bf16.msra.mxu2 %v1866_v34 }
  0x61   : > { %1205 = vmatpush.bf16.msra.mxu1 %v1858_v29  ;;  %1233 = vmatpush.bf16.msra.mxu3 %v1874_v35 }
  0x63   : > { %1192 = vmatpush.bf16.msra.mxu0 %v1849_v30 }
  0x64   : > { %1220 = vmatpush.bf16.msra.mxu2 %v1865_v38 }
  0x65   : > { %1206 = vmatpush.bf16.msra.mxu1 %v1857_v31  ;;  %1234 = vmatpush.bf16.msra.mxu3 %v1873_v39 }
  0x67   : > { %1241 = vmatpush.bf16.msrb.mxu0 %v1888_v32  ;;  %v439_v32 = vperm.slane %v2255_v2, 4 }
  0x68   : > { %1269 = vmatpush.bf16.msrb.mxu2 %v1904_v40 }
  0x69   : > { %1255 = vmatpush.bf16.msrb.mxu1 %v1896_v33  ;;  %1283 = vmatpush.bf16.msrb.mxu3 %v1912_v41 }
  0x6b   : > { %1242 = vmatpush.bf16.msrb.mxu0 %v1887_v36  ;;  %v440_v36 = vperm.slane %v2255_v2, 5 }
  0x6c   : > { %1270 = vmatpush.bf16.msrb.mxu2 %v1903_v44 }
  0x6d   : > { %1256 = vmatpush.bf16.msrb.mxu1 %v1895_v37  ;;  %1284 = vmatpush.bf16.msrb.mxu3 %v1911_v45 }
  0x6f   : > { %1243 = vmatpush.bf16.msrb.mxu0 %v1886_v42 }
  0x70   : > { %1271 = vmatpush.bf16.msrb.mxu2 %v1902_v48 }
  0x71   : > { %1257 = vmatpush.bf16.msrb.mxu1 %v1894_v43  ;;  %1285 = vmatpush.bf16.msrb.mxu3 %v1910_v49 }
  0x73   : > { %1244 = vmatpush.bf16.msrb.mxu0 %v1885_v46 }
  0x74   : > { %1272 = vmatpush.bf16.msrb.mxu2 %v1901_v52  ;;  %v442_v52 = vperm.slane %v2255_v2, 7 }
  0x75   : > { %1258 = vmatpush.bf16.msrb.mxu1 %v1893_v47  ;;  %1286 = vmatpush.bf16.msrb.mxu3 %v1909_v53 }
  0x77   : > { %1245 = vmatpush.bf16.msrb.mxu0 %v1884_v50  ;;  %v441_v50 = vperm.slane %v2255_v2, 6 }
  0x78   : > { %1273 = vmatpush.bf16.msrb.mxu2 %v1900_v56 }
  0x79   : > { %1259 = vmatpush.bf16.msrb.mxu1 %v1892_v51  ;;  %1287 = vmatpush.bf16.msrb.mxu3 %v1908_v57 }
  0x7b   : > { %1246 = vmatpush.bf16.msrb.mxu0 %v1883_v54 }
  0x7c   : > { %1274 = vmatpush.bf16.msrb.mxu2 %v1899_v60 }
  0x7d   : > { %1260 = vmatpush.bf16.msrb.mxu1 %v1891_v55  ;;  %1288 = vmatpush.bf16.msrb.mxu3 %v1907_v61 }
  0x7f   : > { %1247 = vmatpush.bf16.msrb.mxu0 %v1882_v58 }
  0x80   : > { %1275 = vmatpush.bf16.msrb.mxu2 %v1898_v0 }
  0x81   : > { %1261 = vmatpush.bf16.msrb.mxu1 %v1890_v59  ;;  %1289 = vmatpush.bf16.msrb.mxu3 %v1906_v1 }
  0x83   : > { %1248 = vmatpush.bf16.msrb.mxu0 %v1881_v62 }
  0x84   : > { %1276 = vmatpush.bf16.msrb.mxu2 %v1897_v7 }
  0x85   : > { %1262 = vmatpush.bf16.msrb.mxu1 %v1889_v63  ;;  %1290 = vmatpush.bf16.msrb.mxu3 %v1905_v8 }
  0xbb   : > { %v544_v3 = vpop.f32.mrf.mxu0  ;;  %v558_v5 = vpop.f32.mrf.mxu1 }
  0xbc   : > { %v545_v9 = vadd.f32 %v544_v3, %v435_v4  ;;  %v559_v10 = vadd.f32 %v558_v5, %v436_v6 }
  0xbe   : > { %v647_v14 = vmax.f32 %v545_v9, 0.0  ;;  %v648_v17 = vmax.f32 %v559_v10, 0.0 }
  0xc2   : > { %v572_v11 = vpop.f32.mrf.mxu2 }
  0xc3   : > { %v586_v12 = vpop.f32.mrf.mxu3  ;;  %v546_v13 = vpop.f32.mrf.mxu0  ;;  %v573_v24 = vadd.f32 %v572_v11, %v437_v18 }
  0xc4   : > { %v547_v15 = vadd.f32 %v546_v13, %v435_v4  ;;  %v560_v16 = vpop.f32.mrf.mxu1  ;;  %v587_v26 = vadd.f32 %v586_v12, %v438_v20 }
  0xc5   : > { %v561_v19 = vadd.f32 %v560_v16, %v436_v6  ;;  %v649_v34 = vmax.f32 %v573_v24, 0.0 }
  0xc6   : > { %v655_v21 = vmax.f32 %v547_v15, 0.0  ;;  %v650_v37 = vmax.f32 %v587_v26, 0.0 }
  0xc7   : > { %v656_v22 = vmax.f32 %v561_v19, 0.0 }
  0xc8   : > { %v665_v23 = vpack.c.bf16 %v655_v21, %v647_v14 }
  0xc9   : > { %v666_v25 = vpack.c.bf16 %v656_v22, %v648_v17 }
  0xca   : > { %v574_v27 = vpop.f32.mrf.mxu2  ;;  %1193 = vmatmul.bf16.vlgmr.msra.gmra.mxu0 %v665_v23 }
  0xcb   : > { %v575_v28 = vadd.f32 %v574_v27, %v437_v18  ;;  %v588_v29 = vpop.f32.mrf.mxu3  ;;  %1207 = vmatmul.bf16.vlgmr.msra.gmra.mxu1 %v666_v25  ;;  %v600_v30 = vpop.f32.mrf.mxu0  ;;  %v663_v27 = vld [vmem:[%s2337_s7] sm:$0xff] }
  0xcc   : > { %v589_v31 = vadd.f32 %v588_v29, %v438_v20  ;;  %v614_v33 = vpop.f32.mrf.mxu1  ;;  %v601_v41 = vadd.f32 %v600_v30, %v439_v32 }
  0xcd   : > { %v657_v35 = vmax.f32 %v575_v28, 0.0  ;;  %v615_v42 = vadd.f32 %v614_v33, %v440_v36 }
  0xce   : > { %v658_v38 = vmax.f32 %v589_v31, 0.0  ;;  %v651_v46 = vmax.f32 %v601_v41, 0.0 }
  0xcf   : > { %v667_v39 = vpack.c.bf16 %v657_v35, %v649_v34  ;;  %v652_v49 = vmax.f32 %v615_v42, 0.0  ;;  %v664_v35 = vld [vmem:[%s2337_s7 + $0x8] sm:$0xff] }
  0xd0   : > { %v668_v40 = vpack.c.bf16 %v658_v38, %v650_v37 }
  0xd1   : > { %1221 = vmatmul.bf16.vlgmr.msra.gmra.mxu2 %v667_v39 }
  0xd2   : > { %1235 = vmatmul.bf16.vlgmr.msra.gmra.mxu3 %v668_v40  ;;  %v628_v43 = vpop.f32.mrf.mxu2 }
  0xd3   : > { %v642_v44 = vpop.f32.mrf.mxu3  ;;  %v602_v45 = vpop.f32.mrf.mxu0  ;;  %v629_v56 = vadd.f32 %v628_v43, %v441_v50 }
  0xd4   : > { %v603_v47 = vadd.f32 %v602_v45, %v439_v32  ;;  %v616_v48 = vpop.f32.mrf.mxu1  ;;  %v643_v58 = vadd.f32 %v642_v44, %v442_v52 }
  0xd5   : > { %v617_v51 = vadd.f32 %v616_v48, %v440_v36  ;;  %v653_v63 = vmax.f32 %v629_v56, 0.0 }
  0xd6   : > { %v659_v53 = vmax.f32 %v603_v47, 0.0  ;;  %v654_v1 = vmax.f32 %v643_v58, 0.0 }
  0xd7   : > { %v660_v54 = vmax.f32 %v617_v51, 0.0 }
  0xd8   : > { %v669_v55 = vpack.c.bf16 %v659_v53, %v651_v46 }
  0xd9   : > { %v670_v57 = vpack.c.bf16 %v660_v54, %v652_v49 }
  0xda   : > { %v630_v59 = vpop.f32.mrf.mxu2  ;;  %1249 = vmatmul.bf16.vlgmr.msrb.gmra.mxu0 %v669_v55 }
  0xdb   : > { %v631_v60 = vadd.f32 %v630_v59, %v441_v50  ;;  %v644_v61 = vpop.f32.mrf.mxu3  ;;  %1263 = vmatmul.bf16.vlgmr.msrb.gmra.mxu1 %v670_v57 }
  0xdc   : > { %v645_v62 = vadd.f32 %v644_v61, %v442_v52 }
  0xdd   : > { %v661_v0 = vmax.f32 %v631_v60, 0.0 }
  0xde   : > { %v662_v3 = vmax.f32 %v645_v62, 0.0 }
  0xdf   : > { %v671_v4 = vpack.c.bf16 %v661_v0, %v653_v63 }
  0xe0   : > { %v672_v5 = vpack.c.bf16 %v662_v3, %v654_v1 }
  0xe1   : > { %1277 = vmatmul.bf16.vlgmr.msrb.gmra.mxu2 %v671_v4 }
  0xe2   : > { %1291 = vmatmul.bf16.vlgmr.msrb.gmra.mxu3 %v672_v5 }
 0x147   : > { %v1194_v2 = vpop.f32.mrf.mxu0 }
 0x148   : > { %v1208_v6 = vpop.f32.mrf.mxu1 }
 0x149   : > { %v1209_v9 = vadd.f32 %v1208_v6, %v1194_v2 }
 0x14f   : > { %v1196_v7 = vpop.f32.mrf.mxu0 }
 0x150   : > { %v1210_v11 = vpop.f32.mrf.mxu1 }
 0x151   : > { %v1211_v16 = vadd.f32 %v1210_v11, %v1196_v7 }
 0x154   : > { %v1222_v8 = vpop.f32.mrf.mxu2 }
 0x155   : > { %v1236_v10 = vpop.f32.mrf.mxu3  ;;  %v1223_v12 = vadd.f32 %v1222_v8, %v1209_v9 }
 0x157   : > { %v1250_v13 = vpop.f32.mrf.mxu0  ;;  %v1237_v14 = vadd.f32 %v1236_v10, %v1223_v12 }
 0x158   : > { %v1264_v20 = vpop.f32.mrf.mxu1 }
 0x159   : > { %v1251_v18 = vadd.f32 %v1250_v13, %v1237_v14 }
 0x15b   : > { %v1265_v21 = vadd.f32 %v1264_v20, %v1251_v18 }
 0x15c   : > { %v1224_v15 = vpop.f32.mrf.mxu2 }
 0x15d   : > { %v1238_v17 = vpop.f32.mrf.mxu3  ;;  %v1225_v19 = vadd.f32 %v1224_v15, %v1211_v16 }
 0x15f   : > { %v1239_v22 = vadd.f32 %v1238_v17, %v1225_v19  ;;  %v1252_v23 = vpop.f32.mrf.mxu0 }
 0x160   : > { %v1266_v31 = vpop.f32.mrf.mxu1 }
 0x161   : > { %v1253_v28 = vadd.f32 %v1252_v23, %v1239_v22 }
 0x163   : > { %v1267_v32 = vadd.f32 %v1266_v31, %v1253_v28 }
 0x164   : > { %v1278_v24 = vpop.f32.mrf.mxu2 }
 0x165   : > { %v1279_v25 = vadd.f32 %v1278_v24, %v1265_v21  ;;  %v1292_v26 = vpop.f32.mrf.mxu3 }
 0x167   : > { %v1293_v29 = vadd.f32 %v1292_v26, %v1279_v25 }
 0x169   : > { %v1297_v30 = vadd.f32 %v1293_v29, %v663_v27 }
 0x16b   : > { %1299 = vst.msk [vmem:[%s2337_s7] sm:$0xff] %vm531_vm1, %v1297_v30 }
 0x16c   : > { %v1280_v33 = vpop.f32.mrf.mxu2 }
 0x16d   : > { %v1281_v34 = vadd.f32 %v1280_v33, %v1267_v32  ;;  %v1294_v36 = vpop.f32.mrf.mxu3 }
 0x16f   : > { %v1295_v37 = vadd.f32 %v1294_v36, %v1281_v34  ;;  %1304 = sbr.rel (%p1827_p12) target bundleno = 655 (0x28f), region = 79 }
 0x171   : > { %v1298_v38 = vadd.f32 %v1295_v37, %v664_v35 }
 0x173   : > { %1300 = vst.msk [vmem:[%s2337_s7 + $0x8] sm:$0xff] %vm531_vm1, %v1298_v38 }
 0x174   : > { %v1305_v39 = vld [vmem:[%s2337_s7] sm:$0xff]  ;;  %v1314_v46 = vld [vmem:[%s2330_s0 + $0x8] sm:$0xff]  ;;  %v2005_v50 = vmov 32.0  }
 0x175   : > { %v1955_v40 = vld [vmem:[%s2334_s4] ss:$0 sm:$0xff]  ;;  %1958 = vrcp.f32 %v2005_v50 }
 0x176   : > { %v1313_v41 = vld [vmem:[%s2330_s0] sm:$0xff]  ;;  %v1311_v43 = vadd.f32 %v1955_v40, %v1305_v39 }
 0x177   : > { %v1956_v17 = vld [vmem:[%s2335_s5] ss:$0 sm:$0xff] }
 0x178   : > { %v1315_v44 = vadd.f32 %v1313_v41, %v1311_v43  ;;  %v1957_v20 = vld [vmem:[%s2336_s6] ss:$0 sm:$0xff] }
 0x17a   : > { %v1306_v42 = vld [vmem:[%s2337_s7 + $0x8] sm:$0xff]  ;;  %v1319_v47 = vsel %vm531_vm1, %v1315_v44, 0.0 }
 0x17b   : > { %v1312_v45 = vadd.f32 %v1955_v40, %v1306_v42  ;;  %1320 = vadd.xlane.f32.xlu0 %v1319_v47  ;;  %v1959_v51 = vpop.eup %1958 }
 0x17c   : > { %v1326_v52 = vmul.f32 32.0, %v1959_v51  ;;  %vm1330_vm2 = vweird.f32 %v1959_v51 }
 0x17d   : > { %v1316_v48 = vadd.f32 %v1314_v46, %v1312_v45 }
 0x17e   : > { %v1327_v53 = vsub.f32 1.0, %v1326_v52 }
 0x17f   : > { %v1322_v49 = vsel %vm531_vm1, %v1316_v48, 0.0 }
 0x180   : > { %v1328_v54 = vmul.f32 %v1959_v51, %v1327_v53 }
 0x182   : > { %v1329_v55 = vadd.f32 %v1959_v51, %v1328_v54 }
 0x183   : > { %1323 = vadd.xlane.f32.xlu0 %v1322_v49 }
 0x184   : > { %v1331_v56 = vsel %vm1330_vm2, %v1959_v51, %v1329_v55 }
 0x1ee   : > { %v1321_v57 = vpop.xlane.xlu0 %1320 }
 0x1ef   : > { %v1332_v58 = vmul.f32 %v1331_v56, %v1321_v57 }
 0x1f1   : > { %v1334_v59 = vsub.f32 %v1315_v44, %v1332_v58 }
 0x1f3   : > { %v1336_v60 = vmul.f32 %v1334_v59, %v1334_v59 }
 0x1f5   : > { %v1338_v61 = vsel %vm531_vm1, %v1336_v60, 0.0 }
 0x1f6   : > { %1339 = vadd.xlane.f32.xlu1 %v1338_v61  ;;  %v1324_v62 = vpop.xlane.xlu0 %1323 }
 0x1f7   : > { %v1333_v63 = vmul.f32 %v1331_v56, %v1324_v62 }
 0x1f9   : > { %v1335_v0 = vsub.f32 %v1316_v48, %v1333_v63 }
 0x1fb   : > { %v1337_v1 = vmul.f32 %v1335_v0, %v1335_v0 }
 0x1fd   : > { %v1341_v3 = vsel %vm531_vm1, %v1337_v1, 0.0 }
 0x1fe   : > { %1342 = vadd.xlane.f32.xlu1 %v1341_v3 }
 0x269   : > { %v1340_v4 = vpop.xlane.xlu1 %1339 }
 0x26a   : > { %v1344_v5 = vmul.f32 %v1340_v4, %v1331_v56 }
 0x26c   : > { %v1346_v2 = vadd.f32 1e-05, %v1344_v5 }
 0x26e   : > { %1960 = vrsqrt.f32 %v1346_v2  ;;  %vm1354_vm4 = vweird.f32 %v1346_v2 }
 0x271   : > { %v1343_v6 = vpop.xlane.xlu1 %1342 }
 0x272   : > { %v1345_v7 = vmul.f32 %v1343_v6, %v1331_v56 }
 0x274   : > { %v1961_v8 = vpop.eup %1960  ;;  %v1347_v9 = vadd.f32 1e-05, %v1345_v7 }
 0x275   : > { %v1349_v10 = vmul.f32 %v1961_v8, %v1346_v2  ;;  %vm1355_vm3 = vweird.f32 %v1961_v8 }
 0x276   : > { %1962 = vrsqrt.f32 %v1347_v9  ;;  %vm1356_vm5 = vmor %vm1354_vm4, %vm1355_vm3  ;;  %vm1364_vm7 = vweird.f32 %v1347_v9 }
 0x277   : > { %v1350_v11 = vmul.f32 %v1961_v8, %v1349_v10 }
 0x279   : > { %v1351_v12 = vmul.f32 0.5, %v1350_v11 }
 0x27b   : > { %v1352_v13 = vsub.f32 1.5, %v1351_v12 }
 0x27c   : > { %v1963_v14 = vpop.eup %1962 }
 0x27d   : > { %v1353_v15 = vmul.f32 %v1961_v8, %v1352_v13  ;;  %v1359_v16 = vmul.f32 %v1963_v14, %v1347_v9  ;;  %vm1365_vm6 = vweird.f32 %v1963_v14 }
 0x27e   : > { %vm1366_vm8 = vmor %vm1364_vm7, %vm1365_vm6 }
 0x27f   : > { %v1357_v18 = vsel %vm1356_vm5, %v1961_v8, %v1353_v15  ;;  %v1360_v19 = vmul.f32 %v1963_v14, %v1359_v16 }
 0x280   : > { %v1368_v21 = vmul.f32 %v1357_v18, %v1334_v59 }
 0x281   : > { %v1361_v22 = vmul.f32 0.5, %v1360_v19 }
 0x282   : > { %v1373_v23 = vmul.f32 %v1956_v17, %v1368_v21 }
 0x283   : > { %v1362_v24 = vsub.f32 1.5, %v1361_v22 }
 0x284   : > { %v1378_v25 = vadd.f32 %v1957_v20, %v1373_v23 }
 0x285   : > { %v1363_v26 = vmul.f32 %v1963_v14, %v1362_v24 }
 0x286   : > { %1380 = vst.msk [vmem:[%s2337_s7] sm:$0xff] %vm531_vm1, %v1378_v25 }
 0x287   : > { %v1367_v27 = vsel %vm1366_vm8, %v1963_v14, %v1363_v26 }
 0x288   : > { %v1369_v28 = vmul.f32 %v1367_v27, %v1335_v0 }
 0x28a   : > { %v1374_v29 = vmul.f32 %v1956_v17, %v1369_v28 }
 0x28c   : > { %v1379_v30 = vadd.f32 %v1957_v20, %v1374_v29 }
 0x28e   : > { %1381 = vst.msk [vmem:[%s2337_s7 + $0x8] sm:$0xff] %vm531_vm1, %v1379_v30 }
 0x28f PF: > { %s17_s28 = sadd.s32 1, %s2002_s28   ;;  %s2338_s24 = smov %s1990_s25 }
 0x290   : > { %p14_p13 = scmp.ge.s32.totalorder %s17_s28, 4   ;;  %s2339_s25 = smov %s2081_s9 }
 0x291   : > { %s2340_s26 = smov %s1998_s27  ;;  %s2341_s27 = smov %s2343_s29 }
 0x292   :  { %16 = sbr.rel (!%p14_p13) target bundleno = 3 (0x3), region = 123 }

// kernel: transformer_forward.23
= control target key start
LH: loop header
LB: loop body
LE: loop exit
PB: predicated region body
PF: predicated region fallthrough
CT: control target
= control target key end

     0   :  { %s321_s0 = inlined_call_operand.vmem [shape: f32[2,8,32], index: 0, kind: input, shape index: {}]   ;;  %s322_s1 = inlined_call_operand.vmem [shape: bf16[32,50], index: 1, kind: input, shape index: {}]   ;;  %s323_s2 = inlined_call_operand.vmem [shape: f32[1,50], index: 2, kind: input, shape index: {}]   ;;  %s324_s3 = inlined_call_operand.hbm [shape: f32[8,2,50], index: 3, kind: output, shape index: {}]  }
   0x1   :  { %v209_v0 = vld [vmem:[%s322_s1 + $0x8] sm:$0xff]  ;;  %v29_v1 = vld [vmem:[%s321_s0] sm:$0xff] }
   0x2   :  { %v30_v2 = vld [vmem:[%s321_s0 + $0x8] sm:$0xff]  ;;  %v31_v3 = vpack.c.bf16 %v29_v1, %v29_v1 }
   0x3   :  { %8 = vsyncpa [#allocation3], 0  ;;  %64 = vmatpush.bf16.msra.mxu0 %v209_v0  ;;  %v208_v4 = vld [vmem:[%s322_s1] sm:$0xff]  ;;  %v32_v5 = vpack.c.bf16 %v30_v2, %v30_v2  ;;  %vm54_vm0 = vcmask 261120   ;;  %vm20_vm1 = vcmask 402432   ;;  %v243_v9 = vmov 0.0  }
   0x4   :  { %v39_v6 = vunpack.c.l.b16 %v31_v3  ;;  %21 = vst.msk [vmem:[#allocation2] sm:$0x3] %vm20_vm1, %v243_v9  ;;  %v244_v10 = vmov 1983009808   ;;  %vm81_vm2 = vcmask 1047556   ;;  %s187_s23 = sshll.u32 %s324_s3, 4  ;;  %s188_s23 = int_to_ptr.hbm [resolvable:$true] %s187_s23 }
   0x5   :  { %v40_v7 = vunpack.c.l.b16 %v32_v5  ;;  %22 = vst.msk [vmem:[#allocation2 + $0x2] sm:$0x3] %vm20_vm1, %v243_v9  ;;  %v84_v11 = vunpack.c.l.s4 %v244_v10  ;;  %v245_v15 = vmov 1934713408   ;;  %v216_v61 = vld [vmem:[%s323_s2] ss:$0 sm:$0xff] }
   0x6   :  { %23 = vst.msk [vmem:[#allocation2 + $0x4] sm:$0x3] %vm20_vm1, %v243_v9  ;;  %v106_v16 = vunpack.c.l.s4 %v245_v15  ;;  %s246_s2 = smov [#allocation2]   ;;  %s247_s3 = smov 32  }
   0x7   :  { %65 = vmatpush.bf16.msra.mxu0 %v208_v4  ;;  %v41_v8 = vpack.c.b16 %v40_v7, %v39_v6  ;;  %24 = vst.msk [vmem:[#allocation2 + $0x6] sm:$0x3] %vm20_vm1, %v243_v9  ;;  %v85_v14 = vunpack.c.0.s8 %v84_v11  ;;  %s185_s20 = sshll.u32 %s246_s2, 4  ;;  %s248_s24 = smov 2   ;;  %s186_s20 = int_to_ptr.vmem [resolvable:$true] %s185_s20 }
   0x8   :  { %25 = vst.msk [vmem:[#allocation2 + $0x8] sm:$0x3] %vm20_vm1, %v243_v9  ;;  %v107_v21 = vunpack.c.0.s8 %v106_v16 }
   0x9   :  { %26 = vst.msk [vmem:[#allocation2 + $0xa] sm:$0x3] %vm20_vm1, %v243_v9 }
   0xa   :  { %207 = vmatmul.msk.bf16.vlgmr.msra.gmra.mxu0 %vm54_vm0, %v41_v8  ;;  %27 = vst.msk [vmem:[#allocation2 + $0xc] sm:$0x3] %vm20_vm1, %v243_v9 }
   0xb   :  { %28 = vst.msk [vmem:[#allocation2 + $0xe] sm:$0x3] %vm20_vm1, %v243_v9  ;;  %v72_v32 = vld [vmem:[#allocation2] sm:$0x3] }
   0xc   :  { %v73_v42 = vld [vmem:[#allocation2 + $0x2] sm:$0x3] }
   0xd   :  { %v74_v29 = vld [vmem:[#allocation2 + $0x4] sm:$0x3] }
   0xe   :  { %v75_v34 = vld [vmem:[#allocation2 + $0x6] sm:$0x3] }
   0xf   :  { %v76_v43 = vld [vmem:[#allocation2 + $0x8] sm:$0x3] }
  0x10   :  { %v77_v54 = vld [vmem:[#allocation2 + $0xa] sm:$0x3] }
  0x11   :  { %v78_v35 = vld [vmem:[#allocation2 + $0xc] sm:$0x3] }
  0x12   :  { %v79_v48 = vld [vmem:[#allocation2 + $0xe] sm:$0x3] }
  0x87   :  { %v67_v12 = vpop.f32.mrf.mxu0 }
  0x88   :  { %v80_v13 = vrot.slane %v67_v12, 4  ;;  %v86_v18 = vperm.slane %v67_v12, %v85_v14 }
  0x8a   :  { %v82_v17 = vsel %vm81_vm2, 0.0, %v80_v13  ;;  %v103_v22 = vrot.slane %v86_v18, 4 }
  0x8b   :  { %v90_v19 = vperm.slane %v82_v17, %v85_v14 }
  0x8d   :  { %v115_v28 = vrot.slane %v90_v19, 4 }
  0x8f   :  { %v69_v20 = vpop.f32.mrf.mxu0 }
  0x90   :  { %v91_v23 = vrot.slane %v69_v20, 4  ;;  %v96_v24 = vperm.slane %v69_v20, %v85_v14 }
  0x92   :  { %v92_v25 = vsel %vm81_vm2, 0.0, %v91_v23  ;;  %v101_v26 = vrot.slane %v96_v24, 4  ;;  %v104_v27 = vsel %vm81_vm2, %v96_v24, %v103_v22 }
  0x93   :  { %v100_v30 = vperm.slane %v92_v25, %v85_v14  ;;  %v112_v31 = vperm.slane %v104_v27, %v107_v21 }
  0x94   :  { %v102_v33 = vsel %vm81_vm2, %v101_v26, %v86_v18 }
  0x95   :  { %v108_v36 = vperm.slane %v102_v33, %v107_v21  ;;  %v113_v37 = vrot.slane %v100_v30, 4  ;;  %v116_v38 = vsel %vm81_vm2, %v100_v30, %v115_v28  ;;  %v127_v39 = vrot.slane %v112_v31, 4 }
  0x96   :  { %v124_v40 = vperm.slane %v116_v38, %v107_v21  ;;  %v135_v41 = vadd.f32 %v112_v31, %v74_v29 }
  0x97   :  { %v114_v44 = vsel %vm81_vm2, %v113_v37, %v90_v19  ;;  %v125_v45 = vrot.slane %v108_v36, 4  ;;  %v128_v46 = vsel %vm81_vm2, 0.0, %v127_v39  ;;  %v133_v47 = vadd.f32 %v108_v36, %v72_v32 }
  0x98   :  { %v120_v49 = vperm.slane %v114_v44, %v107_v21  ;;  %v131_v50 = vrot.slane %v124_v40, 4  ;;  %v136_v51 = vadd.f32 %v128_v46, %v75_v34  ;;  %v139_v52 = vadd.f32 %v124_v40, %v78_v35  ;;  %144 = vst.msk [vmem:[#allocation2 + $0x4] sm:$0x3] %vm20_vm1, %v135_v41 }
  0x99   :  { %v126_v53 = vsel %vm81_vm2, 0.0, %v125_v45  ;;  %142 = vst.msk [vmem:[#allocation2] sm:$0x3] %vm20_vm1, %v133_v47 }
  0x9a   :  { %v129_v55 = vrot.slane %v120_v49, 4  ;;  %v132_v56 = vsel %vm81_vm2, 0.0, %v131_v50  ;;  %v134_v57 = vadd.f32 %v126_v53, %v73_v42  ;;  %v137_v58 = vadd.f32 %v120_v49, %v76_v43  ;;  %145 = vst.msk [vmem:[#allocation2 + $0x6] sm:$0x3] %vm20_vm1, %v136_v51 }
  0x9b   :  { %v140_v59 = vadd.f32 %v132_v56, %v79_v48  ;;  %148 = vst.msk [vmem:[#allocation2 + $0xc] sm:$0x3] %vm20_vm1, %v139_v52 }
  0x9c   :  { %v130_v60 = vsel %vm81_vm2, 0.0, %v129_v55  ;;  %143 = vst.msk [vmem:[#allocation2 + $0x2] sm:$0x3] %vm20_vm1, %v134_v57 }
  0x9d   :  { %v138_v62 = vadd.f32 %v130_v60, %v77_v54  ;;  %146 = vst.msk [vmem:[#allocation2 + $0x8] sm:$0x3] %vm20_vm1, %v137_v58 }
  0x9e   :  { %149 = vst.msk [vmem:[#allocation2 + $0xe] sm:$0x3] %vm20_vm1, %v140_v59 }
  0x9f   :  { %147 = vst.msk [vmem:[#allocation2 + $0xa] sm:$0x3] %vm20_vm1, %v138_v62  ;;  %v155_v63 = vld [vmem:[#allocation2 + $0x4] sm:$0x3] }
  0xa0   :  { %v153_v0 = vld [vmem:[#allocation2] sm:$0x3]  ;;  %v167_v1 = vadd.f32 %v216_v61, %v155_v63 }
  0xa1   :  { %v156_v2 = vld [vmem:[#allocation2 + $0x6] sm:$0x3]  ;;  %v165_v3 = vadd.f32 %v216_v61, %v153_v0 }
  0xa2   :  { %v159_v4 = vld [vmem:[#allocation2 + $0xc] sm:$0x3]  ;;  %v168_v5 = vadd.f32 %v216_v61, %v156_v2  ;;  %175 = vst.msk [vmem:[#allocation2 + $0x4] sm:$0x3] %vm20_vm1, %v167_v1 }
  0xa3   :  { %v154_v6 = vld [vmem:[#allocation2 + $0x2] sm:$0x3]  ;;  %v171_v7 = vadd.f32 %v216_v61, %v159_v4  ;;  %173 = vst.msk [vmem:[#allocation2] sm:$0x3] %vm20_vm1, %v165_v3 }
  0xa4   :  { %v157_v8 = vld [vmem:[#allocation2 + $0x8] sm:$0x3]  ;;  %v166_v9 = vadd.f32 %v216_v61, %v154_v6  ;;  %176 = vst.msk [vmem:[#allocation2 + $0x6] sm:$0x3] %vm20_vm1, %v168_v5 }
  0xa5   :  { %v160_v10 = vld [vmem:[#allocation2 + $0xe] sm:$0x3]  ;;  %v169_v11 = vadd.f32 %v216_v61, %v157_v8  ;;  %179 = vst.msk [vmem:[#allocation2 + $0xc] sm:$0x3] %vm20_vm1, %v171_v7 }
  0xa6   :  { %v158_v12 = vld [vmem:[#allocation2 + $0xa] sm:$0x3]  ;;  %v172_v13 = vadd.f32 %v216_v61, %v160_v10  ;;  %174 = vst.msk [vmem:[#allocation2 + $0x2] sm:$0x3] %vm20_vm1, %v166_v9 }
  0xa7   :  { %v170_v14 = vadd.f32 %v216_v61, %v158_v12  ;;  %177 = vst.msk [vmem:[#allocation2 + $0x8] sm:$0x3] %vm20_vm1, %v169_v11 }
  0xa8   :  { %180 = vst.msk [vmem:[#allocation2 + $0xe] sm:$0x3] %vm20_vm1, %v172_v13 }
  0xa9   :  { %178 = vst.msk [vmem:[#allocation2 + $0xa] sm:$0x3] %vm20_vm1, %v170_v14 }
  0xaa   :  { %193 = dma.vmem_to_hbm [thread:$0]  %s186_s20, 256, %s188_s23, [#allocation3], %s247_s3, %s247_s3, %s248_s24  }
  0xab   :  { %241 = dma.done.wait [#allocation3], 256  }
  0xac   :  { %242 = vsyncadd [#allocation3], 4294967040 }
  0xad   :  { %198 = vsyncpa [#allocation3], 1 }

// kernel: transformer_forward.16
= control target key start
LH: loop header
LB: loop body
LE: loop exit
PB: predicated region body
PF: predicated region fallthrough
CT: control target
= control target key end

     0   :  { %s2172_s30 = smov 0   ;;  %s2174_s10 = smov 0   ;;  %s2476_s0 = inlined_call_operand.vmem [shape: f32[16,32], index: 0, kind: input, shape index: {}]   ;;  %s2477_s1 = inlined_call_operand.vmem [shape: bf16[32,2048], index: 1, kind: input, shape index: {}]   ;;  %s2478_s2 = inlined_call_operand.vmem [shape: f32[1,2048], index: 2, kind: input, shape index: {}]   ;;  %s2479_s3 = inlined_call_operand.vmem [shape: bf16[2048,32], index: 3, kind: input, shape index: {}]   ;;  %s2480_s4 = inlined_call_operand.vmem [shape: f32[1,32], index: 4, kind: input, shape index: {}]   ;;  %s2481_s5 = inlined_call_operand.vmem [shape: f32[1,32], index: 5, kind: input, shape index: {}]   ;;  %s2482_s6 = inlined_call_operand.vmem [shape: f32[1,32], index: 6, kind: input, shape index: {}]   ;;  %s2483_s7 = inlined_call_operand.vmem [shape: f32[1,32], index: 7, kind: input, shape index: {}]   ;;  %s2484_s8 = inlined_call_operand.vmem [shape: f32[1,32], index: 8, kind: input, shape index: {}]   ;;  %s2485_s9 = inlined_call_operand.vmem [shape: f32[16,32], index: 9, kind: output, shape index: {}]  }
   0x1   :  { %s2176_s11 = smov 0   ;;  %s2178_s12 = smov 0  }
   0x2   :  { %s2180_s13 = smov 0  }
   0x3 LB: > { %s28_s14 = sadd.s32 1, %s2114_s12  ;;  %p71_p1 = scmp.ne.s32.totalorder %s2106_s10, %s2102_s30  ;;  %s2118_s13 = sphi %s2180_s13, %s19_s13   ;;  %s2114_s12 = sphi %s2178_s12, %s2489_s12   ;;  %s2110_s11 = sphi %s2176_s11, %s2488_s11   ;;  %s2106_s10 = sphi %s2174_s10, %s2487_s10   ;;  %s2102_s30 = sphi %s2172_s30, %s2486_s30  }
   0x4   : > { %p29_p0 = scmp.ge.s32.totalorder %s28_s14, 2  ;;  %p72_p2 = scmp.eq.s32.totalorder %s2118_s13, 0 }
   0x5   : > { %s64_s16 = sadd.s32 1, %s2106_s10  ;;  %p1599_p5 = scmp.ge.s32.totalorder %s2118_s13, 2 }
   0x6   : > { %s2491_s14 = smov (%p29_p0, %s28_s14), 0  ;;  %p73_p3 = por %p72_p2, %p71_p1 }
   0x7   : > { %s61_s15 = ssub.s32 %s2114_s12, %s2491_s14  ;;  %304 = sbr.rel (%p1599_p5) target bundleno = 32 (0x20), region = 40 }
   0x8   : > { %p62_p4 = scmp.eq.s32.totalorder %s61_s15, 0 }
   0xa   : > { %s2207_s17 = scalar_select %p62_p4, %s2106_s10, %s64_s16  }
   0xc   : > { %307 = sbr.rel (!%p73_p3) target bundleno = 32 (0x20), region = 44  ;;  %s309_s18 = sand.u32 (%p73_p3), 1, %s2106_s10  }
   0xd   : > { %s1942_s19 = sshll.u32 (%p73_p3), %s2114_s12, 5  ;;  %s1600_s20 = sshll.u32 (%p73_p3), %s309_s18, 7 }
   0xe   : > { %s2215_s23 = scalar_lea.vmem (%p73_p3), %s2477_s1, %s1942_s19  ;;  %s311_s24 = scalar_lea.vmem (%p73_p3), [#allocation2], %s1600_s20 }
   0xf   : > { %v327_v0 = vld [vmem:[%s2215_s23] sm:$0xff] (%p73_p3)  ;;  %v329_v1 = vld [vmem:[%s2215_s23 + $0x8] sm:$0xff] (%p73_p3)  ;;  %v331_v2 = vld [vmem:[%s2215_s23 + $0x10] sm:$0xff] (%p73_p3) }
  0x10   : > { %328 = vst [vmem:[%s311_s24] sm:$0xff] (%p73_p3), %v327_v0  ;;  %v333_v3 = vld [vmem:[%s2215_s23 + $0x18] sm:$0xff] (%p73_p3)  ;;  %v335_v4 = vld [vmem:[%s2215_s23 + $0x40] sm:$0xff] (%p73_p3)  ;;  %v337_v5 = vld [vmem:[%s2215_s23 + $0x48] sm:$0xff] (%p73_p3) }
  0x11   : > { %330 = vst [vmem:[%s311_s24 + $0x8] sm:$0xff] %v329_v1  ;;  %v339_v6 = vld [vmem:[%s2215_s23 + $0x50] sm:$0xff]  ;;  %v341_v7 = vld [vmem:[%s2215_s23 + $0x58] sm:$0xff]  ;;  %v343_v8 = vld [vmem:[%s2215_s23 + $0x80] sm:$0xff] }
  0x12   : > { %332 = vst [vmem:[%s311_s24 + $0x10] sm:$0xff] %v331_v2  ;;  %v345_v9 = vld [vmem:[%s2215_s23 + $0x88] sm:$0xff]  ;;  %v347_v10 = vld [vmem:[%s2215_s23 + $0x90] sm:$0xff]  ;;  %v349_v11 = vld [vmem:[%s2215_s23 + $0x98] sm:$0xff] }
  0x13   : > { %334 = vst [vmem:[%s311_s24 + $0x18] sm:$0xff] %v333_v3  ;;  %v351_v12 = vld [vmem:[%s2215_s23 + $0xc0] sm:$0xff]  ;;  %v353_v13 = vld [vmem:[%s2215_s23 + $0xc8] sm:$0xff]  ;;  %v355_v14 = vld [vmem:[%s2215_s23 + $0xd0] sm:$0xff] }
  0x14   : > { %336 = vst [vmem:[%s311_s24 + $0x20] sm:$0xff] %v335_v4  ;;  %v357_v15 = vld [vmem:[%s2215_s23 + $0xd8] sm:$0xff] }
  0x15   : > { %338 = vst [vmem:[%s311_s24 + $0x28] sm:$0xff] %v337_v5 }
  0x16   : > { %340 = vst [vmem:[%s311_s24 + $0x30] sm:$0xff] %v339_v6 }
  0x17   : > { %342 = vst [vmem:[%s311_s24 + $0x38] sm:$0xff] %v341_v7 }
  0x18   : > { %344 = vst [vmem:[%s311_s24 + $0x40] sm:$0xff] %v343_v8 }
  0x19   : > { %346 = vst [vmem:[%s311_s24 + $0x48] sm:$0xff] %v345_v9 }
  0x1a   : > { %348 = vst [vmem:[%s311_s24 + $0x50] sm:$0xff] %v347_v10 }
  0x1b   : > { %350 = vst [vmem:[%s311_s24 + $0x58] sm:$0xff] %v349_v11 }
  0x1c   : > { %352 = vst [vmem:[%s311_s24 + $0x60] sm:$0xff] %v351_v12 }
  0x1d   : > { %354 = vst [vmem:[%s311_s24 + $0x68] sm:$0xff] %v353_v13 }
  0x1e   : > { %356 = vst [vmem:[%s311_s24 + $0x70] sm:$0xff] %v355_v14 }
  0x1f   : > { %358 = vst [vmem:[%s311_s24 + $0x78] sm:$0xff] %v357_v15 }
  0x20 PF: > { %p1603_p6 = scmp.ge.s32.totalorder %s2118_s13, 1  ;;  %p380_p7 = scmp.lt.s32.totalorder %s2118_s13, 3 }
  0x22   : > { %p381_p8 = pnand %p1603_p6, %p380_p7 }
  0x23   : > { %s387_s25 = sand.u32 (!%p381_p8), 1, %s2102_s30   ;;  %s1605_s26 = sshll.u32 (!%p381_p8), %s2110_s11, 3 }
  0x24   : > { %384 = sbr.rel (%p381_p8) target bundleno = 923 (0x39b), region = 75  ;;  %s1604_s27 = sshll.u32 (!%p381_p8), %s387_s25, 7 }
  0x25   : > { %p444_p9 = scmp.lt.s32.totalorder (!%p381_p8), %s1605_s26, 15  ;;  %s1606_s28 = sshll.u32 (!%p381_p8), %s2110_s11, 7 }
  0x26   : > { %p449_p10 = scmp.lt.s32.totalorder (!%p381_p8), %s1606_s28, 255  ;;  %s2249_s30 = scalar_lea.vmem (!%p381_p8), [#allocation2], %s1604_s27 }
  0x27   : > { %p1608_p11 = scmp.ne.s32.totalorder (!%p381_p8), %s2110_s11, 0 }
  0x29   : > { %s2493_s26 = smov (!%p444_p9, %s1605_s26), 15  ;;  %s2495_s28 = smov (!%p449_p10, %s1606_s28), 255 }
  0x2a   : > { %s446_s16 = scalar_lea.vmem %s2478_s2, %s2493_s26  ;;  %s1607_s18 = sshll.u32 %s2495_s28, 2 }
  0x2b   : > { %s2247_s21 = scalar_lea.vmem %s2479_s3, %s1607_s18  ;;  %464 = sbr.rel (%p1608_p11) target bundleno = 51 (0x33), region = 83 }
  0x30   : > { %vm465_vm0 = vcmask 261120   ;;  %v2120_v16 = vmov 0.0  }
  0x31   : > { %466 = vst.msk [vmem:[%s2485_s9] sm:$0xff] %vm465_vm0, %v2120_v16 }
  0x32   : > { %467 = vst.msk [vmem:[%s2485_s9 + $0x8] sm:$0xff] %vm465_vm0, %v2120_v16 }
  0x33 PF: > { %v1643_v17 = vld [vmem:[%s2249_s30 + $0x40] sm:$0xf]  ;;  %v1951_v19 = vld [vmem:[%s2249_s30 + $0x44] sm:$0xf]  ;;  %v1651_v22 = vld [vmem:[%s2249_s30 + $0x48] sm:$0xf] }
  0x34   : > { %v1955_v18 = vld [vmem:[%s2249_s30 + $0x5c] sm:$0xf0]  ;;  %v1645_v21 = vld [vmem:[%s2249_s30 + $0x60] sm:$0xf0]  ;;  %v1956_v23 = vld [vmem:[%s2249_s30 + $0x64] sm:$0xf0] }
  0x35   : > { %v1644_v20 = vor.u32 %v1955_v18, %v1643_v17  ;;  %v1648_v24 = vor.u32 %v1951_v19, %v1645_v21  ;;  %v1652_v25 = vor.u32 %v1956_v23, %v1651_v22  ;;  %v1952_v26 = vld [vmem:[%s2249_s30 + $0x4c] sm:$0xf]  ;;  %v1611_v28 = vld [vmem:[%s2249_s30] sm:$0xf]  ;;  %v1943_v31 = vld [vmem:[%s2249_s30 + $0x4] sm:$0xf] }
  0x36   : > { %v1653_v27 = vld [vmem:[%s2249_s30 + $0x68] sm:$0xf0]  ;;  %v1947_v30 = vld [vmem:[%s2249_s30 + $0x1c] sm:$0xf0]  ;;  %v1613_v32 = vld [vmem:[%s2249_s30 + $0x20] sm:$0xf0] }
  0x37   : > { %595 = vmatpush.bf16.msra.mxu0 %v1644_v20  ;;  %v1656_v29 = vor.u32 %v1952_v26, %v1653_v27  ;;  %609 = vmatpush.bf16.msra.mxu1 %v1648_v24  ;;  %v1612_v33 = vor.u32 %v1947_v30, %v1611_v28  ;;  %v1616_v34 = vor.u32 %v1943_v31, %v1613_v32  ;;  %v1619_v35 = vld [vmem:[%s2249_s30 + $0x8] sm:$0xf]  ;;  %v1944_v37 = vld [vmem:[%s2249_s30 + $0xc] sm:$0xf]  ;;  %v468_v40 = vld [vmem:[%s2476_s0] sm:$0xff]  ;;  %vm585_vm1 = vcmask 261120  }
  0x38   : > { %623 = vmatpush.bf16.msra.mxu2 %v1652_v25  ;;  %v1948_v36 = vld [vmem:[%s2249_s30 + $0x24] sm:$0xf0]  ;;  %v1621_v39 = vld [vmem:[%s2249_s30 + $0x28] sm:$0xf0]  ;;  %v1667_v44 = vld [vmem:[%s2249_s30 + $0x58] sm:$0xf] }
  0x39   : > { %637 = vmatpush.bf16.msra.mxu3 %v1656_v29  ;;  %v1620_v38 = vor.u32 %v1948_v36, %v1619_v35  ;;  %v469_v41 = vld [vmem:[%s2476_s0 + $0x8] sm:$0xff]  ;;  %v1624_v42 = vor.u32 %v1944_v37, %v1621_v39  ;;  %v1958_v45 = vld [vmem:[%s2249_s30 + $0x74] sm:$0xf0]  ;;  %v1954_v46 = vld [vmem:[%s2249_s30 + $0x5c] sm:$0xf]  ;;  %p1937_p12 = scmp.ne.s32.totalorder %s2110_s11, 1 }
  0x3a   : > { %v2280_v43 = vpack.c.bf16 %v469_v41, %v468_v40  ;;  %v1668_v47 = vor.u32 %v1958_v45, %v1667_v44  ;;  %v1669_v48 = vld [vmem:[%s2249_s30 + $0x78] sm:$0xf0]  ;;  %v1659_v49 = vld [vmem:[%s2249_s30 + $0x50] sm:$0xf]  ;;  %v1635_v53 = vld [vmem:[%s2249_s30 + $0x18] sm:$0xf] }
  0x3b   : > { %596 = vmatpush.bf16.msra.mxu0 %v1612_v33  ;;  %v1957_v50 = vld [vmem:[%s2249_s30 + $0x6c] sm:$0xf0]  ;;  %610 = vmatpush.bf16.msra.mxu1 %v1616_v34  ;;  %v1672_v51 = vor.u32 %v1954_v46, %v1669_v48  ;;  %v1950_v54 = vld [vmem:[%s2249_s30 + $0x34] sm:$0xf0]  ;;  %v1953_v55 = vld [vmem:[%s2249_s30 + $0x54] sm:$0xf] }
  0x3c   : > { %624 = vmatpush.bf16.msra.mxu2 %v1620_v38  ;;  %v1660_v52 = vor.u32 %v1957_v50, %v1659_v49  ;;  %v1636_v56 = vor.u32 %v1950_v54, %v1635_v53  ;;  %v1661_v57 = vld [vmem:[%s2249_s30 + $0x70] sm:$0xf0]  ;;  %v1946_v58 = vld [vmem:[%s2249_s30 + $0x1c] sm:$0xf]  ;;  %v1627_v62 = vld [vmem:[%s2249_s30 + $0x10] sm:$0xf] }
  0x3d   : > { %638 = vmatpush.bf16.msra.mxu3 %v1624_v42  ;;  %v1637_v59 = vld [vmem:[%s2249_s30 + $0x38] sm:$0xf0]  ;;  %v1664_v60 = vor.u32 %v1953_v55, %v1661_v57  ;;  %v1949_v63 = vld [vmem:[%s2249_s30 + $0x2c] sm:$0xf0]  ;;  %v1945_v0 = vld [vmem:[%s2249_s30 + $0x14] sm:$0xf] }
  0x3e   : > { %1673 = vmatmul.msk.bf16.vlgmr.msra.gmra.mxu0 %vm585_vm1, %v2280_v43  ;;  %v1640_v61 = vor.u32 %v1946_v58, %v1637_v59  ;;  %1674 = vmatmul.msk.bf16.vlgmr.msra.gmra.mxu1 %vm585_vm1, %v2280_v43  ;;  %v1629_v1 = vld [vmem:[%s2249_s30 + $0x30] sm:$0xf0]  ;;  %v1628_v2 = vor.u32 %v1949_v63, %v1627_v62  ;;  %v1982_v3 = vld [vmem:[%s2247_s21 + $0xb8] sm:$0xff]  ;;  %v1980_v12 = vld [vmem:[%s2247_s21 + $0xa8] sm:$0xff] }
  0x3f   : > { %1675 = vmatmul.msk.bf16.vlgmr.msra.gmra.mxu2 %vm585_vm1, %v2280_v43  ;;  %651 = vmatpush.bf16.msrb.mxu0 %v1660_v52  ;;  %v1632_v4 = vor.u32 %v1945_v0, %v1629_v1  ;;  %v1966_v5 = vld [vmem:[%s2247_s21 + $0x38] sm:$0xff]  ;;  %v1981_v8 = vld [vmem:[%s2247_s21 + $0xb0] sm:$0xff]  ;;  %v1988_v13 = vld [vmem:[%s2247_s21 + $0xe8] sm:$0xff] }
  0x40   : > { %679 = vmatpush.bf16.msrb.mxu2 %v1668_v47  ;;  %1676 = vmatmul.msk.bf16.vlgmr.msra.gmra.mxu3 %vm585_vm1, %v2280_v43  ;;  %v1990_v6 = vld [vmem:[%s2247_s21 + $0xf8] sm:$0xff]  ;;  %v1989_v9 = vld [vmem:[%s2247_s21 + $0xf0] sm:$0xff]  ;;  %v1964_v14 = vld [vmem:[%s2247_s21 + $0x28] sm:$0xff] }
  0x41   : > { %693 = vmatpush.bf16.msrb.mxu3 %v1672_v51  ;;  %665 = vmatpush.bf16.msrb.mxu1 %v1664_v60  ;;  %v1974_v7 = vld [vmem:[%s2247_s21 + $0x78] sm:$0xff]  ;;  %v1965_v10 = vld [vmem:[%s2247_s21 + $0x30] sm:$0xff]  ;;  %v1972_v15 = vld [vmem:[%s2247_s21 + $0x68] sm:$0xff] }
  0x42   : > { %v1973_v11 = vld [vmem:[%s2247_s21 + $0x70] sm:$0xff]  ;;  %v1979_v16 = vld [vmem:[%s2247_s21 + $0xa0] sm:$0xff]  ;;  %v1978_v20 = vld [vmem:[%s2247_s21 + $0x98] sm:$0xff] }
  0x43   : > { %652 = vmatpush.bf16.msrb.mxu0 %v1628_v2  ;;  %v1963_v17 = vld [vmem:[%s2247_s21 + $0x20] sm:$0xff]  ;;  %v1962_v21 = vld [vmem:[%s2247_s21 + $0x18] sm:$0xff]  ;;  %v1977_v24 = vld [vmem:[%s2247_s21 + $0x90] sm:$0xff] }
  0x44   : > { %680 = vmatpush.bf16.msrb.mxu2 %v1636_v56  ;;  %v1987_v18 = vld [vmem:[%s2247_s21 + $0xe0] sm:$0xff]  ;;  %v1986_v22 = vld [vmem:[%s2247_s21 + $0xd8] sm:$0xff]  ;;  %v1961_v25 = vld [vmem:[%s2247_s21 + $0x10] sm:$0xff] }
  0x45   : > { %694 = vmatpush.bf16.msrb.mxu3 %v1640_v61  ;;  %666 = vmatpush.bf16.msrb.mxu1 %v1632_v4  ;;  %v1971_v19 = vld [vmem:[%s2247_s21 + $0x60] sm:$0xff]  ;;  %v1970_v23 = vld [vmem:[%s2247_s21 + $0x58] sm:$0xff]  ;;  %v1985_v26 = vld [vmem:[%s2247_s21 + $0xd0] sm:$0xff] }
  0x46   : > { %v1969_v27 = vld [vmem:[%s2247_s21 + $0x50] sm:$0xff]  ;;  %v1960_v28 = vld [vmem:[%s2247_s21 + $0x8] sm:$0xff]  ;;  %v1959_v30 = vld [vmem:[%s2247_s21] sm:$0xff] }
  0x47   : > { %1239 = vmatpush.bf16.msra.mxu0 %v1966_v5  ;;  %v1968_v29 = vld [vmem:[%s2247_s21 + $0x48] sm:$0xff]  ;;  %v1967_v31 = vld [vmem:[%s2247_s21 + $0x40] sm:$0xff]  ;;  %v1998_v32 = vld [vmem:[%s2247_s21 + $0x138] sm:$0xff] }
  0x48   : > { %1267 = vmatpush.bf16.msra.mxu2 %v1982_v3  ;;  %v2006_v33 = vld [vmem:[%s2247_s21 + $0x178] sm:$0xff]  ;;  %v1976_v34 = vld [vmem:[%s2247_s21 + $0x88] sm:$0xff]  ;;  %v1997_v36 = vld [vmem:[%s2247_s21 + $0x130] sm:$0xff] }
  0x49   : > { %1281 = vmatpush.bf16.msra.mxu3 %v1990_v6  ;;  %1253 = vmatpush.bf16.msra.mxu1 %v1974_v7  ;;  %v1984_v35 = vld [vmem:[%s2247_s21 + $0xc8] sm:$0xff]  ;;  %v2005_v37 = vld [vmem:[%s2247_s21 + $0x170] sm:$0xff]  ;;  %v1975_v38 = vld [vmem:[%s2247_s21 + $0x80] sm:$0xff] }
  0x4a   : > { %v1983_v39 = vld [vmem:[%s2247_s21 + $0xc0] sm:$0xff]  ;;  %v2014_v40 = vld [vmem:[%s2247_s21 + $0x1b8] sm:$0xff]  ;;  %v1996_v42 = vld [vmem:[%s2247_s21 + $0x128] sm:$0xff] }
  0x4b   : > { %1240 = vmatpush.bf16.msra.mxu0 %v1965_v10  ;;  %v2022_v41 = vld [vmem:[%s2247_s21 + $0x1f8] sm:$0xff]  ;;  %v2013_v44 = vld [vmem:[%s2247_s21 + $0x1b0] sm:$0xff]  ;;  %v1995_v46 = vld [vmem:[%s2247_s21 + $0x120] sm:$0xff] }
  0x4c   : > { %1268 = vmatpush.bf16.msra.mxu2 %v1981_v8  ;;  %v2021_v45 = vld [vmem:[%s2247_s21 + $0x1f0] sm:$0xff]  ;;  %v2003_v47 = vld [vmem:[%s2247_s21 + $0x160] sm:$0xff]  ;;  %v2012_v48 = vld [vmem:[%s2247_s21 + $0x1a8] sm:$0xff] }
  0x4d   : > { %1282 = vmatpush.bf16.msra.mxu3 %v1989_v9  ;;  %1254 = vmatpush.bf16.msra.mxu1 %v1973_v11  ;;  %v2020_v49 = vld [vmem:[%s2247_s21 + $0x1e8] sm:$0xff]  ;;  %v1994_v50 = vld [vmem:[%s2247_s21 + $0x118] sm:$0xff]  ;;  %v2011_v52 = vld [vmem:[%s2247_s21 + $0x1a0] sm:$0xff] }
  0x4e   : > { %1677 = vmatmul.msk.bf16.vlgmr.msrb.gmra.mxu0 %vm585_vm1, %v2280_v43  ;;  %1678 = vmatmul.msk.bf16.vlgmr.msrb.gmra.mxu1 %vm585_vm1, %v2280_v43  ;;  %v2002_v51 = vld [vmem:[%s2247_s21 + $0x158] sm:$0xff]  ;;  %v2019_v53 = vld [vmem:[%s2247_s21 + $0x1e0] sm:$0xff]  ;;  %v1993_v54 = vld [vmem:[%s2247_s21 + $0x110] sm:$0xff] }
  0x4f   : > { %1241 = vmatpush.bf16.msra.mxu0 %v1964_v14  ;;  %1679 = vmatmul.msk.bf16.vlgmr.msrb.gmra.mxu2 %vm585_vm1, %v2280_v43  ;;  %v2001_v55 = vld [vmem:[%s2247_s21 + $0x150] sm:$0xff]  ;;  %v2010_v56 = vld [vmem:[%s2247_s21 + $0x198] sm:$0xff]  ;;  %v1992_v58 = vld [vmem:[%s2247_s21 + $0x108] sm:$0xff] }
  0x50   : > { %1269 = vmatpush.bf16.msra.mxu2 %v1980_v12  ;;  %1680 = vmatmul.msk.bf16.vlgmr.msrb.gmra.mxu3 %vm585_vm1, %v2280_v43  ;;  %v2004_v43 = vld [vmem:[%s2247_s21 + $0x168] sm:$0xff]  ;;  %v2018_v57 = vld [vmem:[%s2247_s21 + $0x1d8] sm:$0xff]  ;;  %v2009_v60 = vld [vmem:[%s2247_s21 + $0x190] sm:$0xff] }
  0x51   : > { %1283 = vmatpush.bf16.msra.mxu3 %v1988_v13  ;;  %1255 = vmatpush.bf16.msra.mxu1 %v1972_v15  ;;  %v2000_v59 = vld [vmem:[%s2247_s21 + $0x148] sm:$0xff]  ;;  %v2017_v61 = vld [vmem:[%s2247_s21 + $0x1d0] sm:$0xff]  ;;  %v1991_v62 = vld [vmem:[%s2247_s21 + $0x100] sm:$0xff] }
  0x52   : > { %v1999_v63 = vld [vmem:[%s2247_s21 + $0x140] sm:$0xff]  ;;  %v2008_v0 = vld [vmem:[%s2247_s21 + $0x188] sm:$0xff] }
  0x53   : > { %1242 = vmatpush.bf16.msra.mxu0 %v1963_v17  ;;  %v2016_v1 = vld [vmem:[%s2247_s21 + $0x1c8] sm:$0xff]  ;;  %v2381_v2 = vld [vmem:[%s446_s16] sm:$0xff] }
  0x54   : > { %1270 = vmatpush.bf16.msra.mxu2 %v1979_v16  ;;  %v489_v4 = vperm.slane %v2381_v2, 0  ;;  %v490_v6 = vperm.slane %v2381_v2, 1  ;;  %v2007_v7 = vld [vmem:[%s2247_s21 + $0x180] sm:$0xff] }
  0x55   : > { %1284 = vmatpush.bf16.msra.mxu3 %v1987_v18  ;;  %1256 = vmatpush.bf16.msra.mxu1 %v1971_v19  ;;  %v2015_v8 = vld [vmem:[%s2247_s21 + $0x1c0] sm:$0xff]  ;;  %v491_v18 = vperm.slane %v2381_v2, 2 }
  0x57   : > { %1243 = vmatpush.bf16.msra.mxu0 %v1962_v21 }
  0x58   : > { %1271 = vmatpush.bf16.msra.mxu2 %v1978_v20  ;;  %v492_v20 = vperm.slane %v2381_v2, 3 }
  0x59   : > { %1285 = vmatpush.bf16.msra.mxu3 %v1986_v22  ;;  %1257 = vmatpush.bf16.msra.mxu1 %v1970_v23 }
  0x5b   : > { %1244 = vmatpush.bf16.msra.mxu0 %v1961_v25 }
  0x5c   : > { %1272 = vmatpush.bf16.msra.mxu2 %v1977_v24 }
  0x5d   : > { %1286 = vmatpush.bf16.msra.mxu3 %v1985_v26  ;;  %1258 = vmatpush.bf16.msra.mxu1 %v1969_v27 }
  0x5f   : > { %1245 = vmatpush.bf16.msra.mxu0 %v1960_v28 }
  0x60   : > { %1273 = vmatpush.bf16.msra.mxu2 %v1976_v34 }
  0x61   : > { %1259 = vmatpush.bf16.msra.mxu1 %v1968_v29  ;;  %1287 = vmatpush.bf16.msra.mxu3 %v1984_v35 }
  0x63   : > { %1246 = vmatpush.bf16.msra.mxu0 %v1959_v30 }
  0x64   : > { %1274 = vmatpush.bf16.msra.mxu2 %v1975_v38 }
  0x65   : > { %1260 = vmatpush.bf16.msra.mxu1 %v1967_v31  ;;  %1288 = vmatpush.bf16.msra.mxu3 %v1983_v39 }
  0x67   : > { %1295 = vmatpush.bf16.msrb.mxu0 %v1998_v32  ;;  %v493_v32 = vperm.slane %v2381_v2, 4 }
  0x68   : > { %1323 = vmatpush.bf16.msrb.mxu2 %v2014_v40 }
  0x69   : > { %1309 = vmatpush.bf16.msrb.mxu1 %v2006_v33  ;;  %1337 = vmatpush.bf16.msrb.mxu3 %v2022_v41 }
  0x6b   : > { %1296 = vmatpush.bf16.msrb.mxu0 %v1997_v36  ;;  %v494_v36 = vperm.slane %v2381_v2, 5 }
  0x6c   : > { %1324 = vmatpush.bf16.msrb.mxu2 %v2013_v44 }
  0x6d   : > { %1310 = vmatpush.bf16.msrb.mxu1 %v2005_v37  ;;  %1338 = vmatpush.bf16.msrb.mxu3 %v2021_v45 }
  0x6f   : > { %1297 = vmatpush.bf16.msrb.mxu0 %v1996_v42 }
  0x70   : > { %1325 = vmatpush.bf16.msrb.mxu2 %v2012_v48 }
  0x71   : > { %1311 = vmatpush.bf16.msrb.mxu1 %v2004_v43  ;;  %1339 = vmatpush.bf16.msrb.mxu3 %v2020_v49 }
  0x73   : > { %1298 = vmatpush.bf16.msrb.mxu0 %v1995_v46 }
  0x74   : > { %1326 = vmatpush.bf16.msrb.mxu2 %v2011_v52  ;;  %v496_v52 = vperm.slane %v2381_v2, 7 }
  0x75   : > { %1312 = vmatpush.bf16.msrb.mxu1 %v2003_v47  ;;  %1340 = vmatpush.bf16.msrb.mxu3 %v2019_v53 }
  0x77   : > { %1299 = vmatpush.bf16.msrb.mxu0 %v1994_v50  ;;  %v495_v50 = vperm.slane %v2381_v2, 6 }
  0x78   : > { %1327 = vmatpush.bf16.msrb.mxu2 %v2010_v56 }
  0x79   : > { %1313 = vmatpush.bf16.msrb.mxu1 %v2002_v51  ;;  %1341 = vmatpush.bf16.msrb.mxu3 %v2018_v57 }
  0x7b   : > { %1300 = vmatpush.bf16.msrb.mxu0 %v1993_v54 }
  0x7c   : > { %1328 = vmatpush.bf16.msrb.mxu2 %v2009_v60 }
  0x7d   : > { %1314 = vmatpush.bf16.msrb.mxu1 %v2001_v55  ;;  %1342 = vmatpush.bf16.msrb.mxu3 %v2017_v61 }
  0x7f   : > { %1301 = vmatpush.bf16.msrb.mxu0 %v1992_v58 }
  0x80   : > { %1329 = vmatpush.bf16.msrb.mxu2 %v2008_v0 }
  0x81   : > { %1315 = vmatpush.bf16.msrb.mxu1 %v2000_v59  ;;  %1343 = vmatpush.bf16.msrb.mxu3 %v2016_v1 }
  0x83   : > { %1302 = vmatpush.bf16.msrb.mxu0 %v1991_v62 }
  0x84   : > { %1330 = vmatpush.bf16.msrb.mxu2 %v2007_v7 }
  0x85   : > { %1316 = vmatpush.bf16.msrb.mxu1 %v1999_v63  ;;  %1344 = vmatpush.bf16.msrb.mxu3 %v2015_v8 }
  0xbb   : > { %v598_v3 = vpop.f32.mrf.mxu0  ;;  %v612_v5 = vpop.f32.mrf.mxu1 }
  0xbc   : > { %v599_v9 = vadd.f32 %v598_v3, %v489_v4  ;;  %v613_v10 = vadd.f32 %v612_v5, %v490_v6 }
  0xbe   : > { %v701_v14 = vmax.f32 %v599_v9, 0.0  ;;  %v702_v17 = vmax.f32 %v613_v10, 0.0 }
  0xc2   : > { %v626_v11 = vpop.f32.mrf.mxu2 }
  0xc3   : > { %v640_v12 = vpop.f32.mrf.mxu3  ;;  %v600_v13 = vpop.f32.mrf.mxu0  ;;  %v627_v24 = vadd.f32 %v626_v11, %v491_v18 }
  0xc4   : > { %v601_v15 = vadd.f32 %v600_v13, %v489_v4  ;;  %v614_v16 = vpop.f32.mrf.mxu1  ;;  %v641_v26 = vadd.f32 %v640_v12, %v492_v20 }
  0xc5   : > { %v615_v19 = vadd.f32 %v614_v16, %v490_v6  ;;  %v703_v34 = vmax.f32 %v627_v24, 0.0 }
  0xc6   : > { %v709_v21 = vmax.f32 %v601_v15, 0.0  ;;  %v704_v37 = vmax.f32 %v641_v26, 0.0 }
  0xc7   : > { %v710_v22 = vmax.f32 %v615_v19, 0.0 }
  0xc8   : > { %v719_v23 = vpack.c.bf16 %v709_v21, %v701_v14 }
  0xc9   : > { %v720_v25 = vpack.c.bf16 %v710_v22, %v702_v17 }
  0xca   : > { %v628_v27 = vpop.f32.mrf.mxu2  ;;  %1247 = vmatmul.bf16.vlgmr.msra.gmra.mxu0 %v719_v23 }
  0xcb   : > { %v629_v28 = vadd.f32 %v628_v27, %v491_v18  ;;  %v642_v29 = vpop.f32.mrf.mxu3  ;;  %1261 = vmatmul.bf16.vlgmr.msra.gmra.mxu1 %v720_v25  ;;  %v654_v30 = vpop.f32.mrf.mxu0  ;;  %v717_v27 = vld [vmem:[%s2485_s9] sm:$0xff] }
  0xcc   : > { %v643_v31 = vadd.f32 %v642_v29, %v492_v20  ;;  %v668_v33 = vpop.f32.mrf.mxu1  ;;  %v655_v41 = vadd.f32 %v654_v30, %v493_v32 }
  0xcd   : > { %v711_v35 = vmax.f32 %v629_v28, 0.0  ;;  %v669_v42 = vadd.f32 %v668_v33, %v494_v36 }
  0xce   : > { %v712_v38 = vmax.f32 %v643_v31, 0.0  ;;  %v705_v46 = vmax.f32 %v655_v41, 0.0 }
  0xcf   : > { %v721_v39 = vpack.c.bf16 %v711_v35, %v703_v34  ;;  %v706_v49 = vmax.f32 %v669_v42, 0.0  ;;  %v718_v35 = vld [vmem:[%s2485_s9 + $0x8] sm:$0xff] }
  0xd0   : > { %v722_v40 = vpack.c.bf16 %v712_v38, %v704_v37 }
  0xd1   : > { %1275 = vmatmul.bf16.vlgmr.msra.gmra.mxu2 %v721_v39 }
  0xd2   : > { %1289 = vmatmul.bf16.vlgmr.msra.gmra.mxu3 %v722_v40  ;;  %v682_v43 = vpop.f32.mrf.mxu2 }
  0xd3   : > { %v696_v44 = vpop.f32.mrf.mxu3  ;;  %v656_v45 = vpop.f32.mrf.mxu0  ;;  %v683_v56 = vadd.f32 %v682_v43, %v495_v50 }
  0xd4   : > { %v657_v47 = vadd.f32 %v656_v45, %v493_v32  ;;  %v670_v48 = vpop.f32.mrf.mxu1  ;;  %v697_v58 = vadd.f32 %v696_v44, %v496_v52 }
  0xd5   : > { %v671_v51 = vadd.f32 %v670_v48, %v494_v36  ;;  %v707_v63 = vmax.f32 %v683_v56, 0.0 }
  0xd6   : > { %v713_v53 = vmax.f32 %v657_v47, 0.0  ;;  %v708_v1 = vmax.f32 %v697_v58, 0.0 }
  0xd7   : > { %v714_v54 = vmax.f32 %v671_v51, 0.0 }
  0xd8   : > { %v723_v55 = vpack.c.bf16 %v713_v53, %v705_v46 }
  0xd9   : > { %v724_v57 = vpack.c.bf16 %v714_v54, %v706_v49 }
  0xda   : > { %v684_v59 = vpop.f32.mrf.mxu2  ;;  %1303 = vmatmul.bf16.vlgmr.msrb.gmra.mxu0 %v723_v55 }
  0xdb   : > { %v685_v60 = vadd.f32 %v684_v59, %v495_v50  ;;  %v698_v61 = vpop.f32.mrf.mxu3  ;;  %1317 = vmatmul.bf16.vlgmr.msrb.gmra.mxu1 %v724_v57 }
  0xdc   : > { %v699_v62 = vadd.f32 %v698_v61, %v496_v52 }
  0xdd   : > { %v715_v0 = vmax.f32 %v685_v60, 0.0 }
  0xde   : > { %v716_v3 = vmax.f32 %v699_v62, 0.0 }
  0xdf   : > { %v725_v4 = vpack.c.bf16 %v715_v0, %v707_v63 }
  0xe0   : > { %v726_v5 = vpack.c.bf16 %v716_v3, %v708_v1 }
  0xe1   : > { %1331 = vmatmul.bf16.vlgmr.msrb.gmra.mxu2 %v725_v4 }
  0xe2   : > { %1345 = vmatmul.bf16.vlgmr.msrb.gmra.mxu3 %v726_v5 }
 0x147   : > { %v1248_v2 = vpop.f32.mrf.mxu0 }
 0x148   : > { %v1262_v6 = vpop.f32.mrf.mxu1 }
 0x149   : > { %v1263_v9 = vadd.f32 %v1262_v6, %v1248_v2 }
 0x14f   : > { %v1250_v7 = vpop.f32.mrf.mxu0 }
 0x150   : > { %v1264_v11 = vpop.f32.mrf.mxu1 }
 0x151   : > { %v1265_v16 = vadd.f32 %v1264_v11, %v1250_v7 }
 0x154   : > { %v1276_v8 = vpop.f32.mrf.mxu2 }
 0x155   : > { %v1290_v10 = vpop.f32.mrf.mxu3  ;;  %v1277_v12 = vadd.f32 %v1276_v8, %v1263_v9 }
 0x157   : > { %v1304_v13 = vpop.f32.mrf.mxu0  ;;  %v1291_v14 = vadd.f32 %v1290_v10, %v1277_v12 }
 0x158   : > { %v1318_v20 = vpop.f32.mrf.mxu1 }
 0x159   : > { %v1305_v18 = vadd.f32 %v1304_v13, %v1291_v14 }
 0x15b   : > { %v1319_v21 = vadd.f32 %v1318_v20, %v1305_v18 }
 0x15c   : > { %v1278_v15 = vpop.f32.mrf.mxu2 }
 0x15d   : > { %v1292_v17 = vpop.f32.mrf.mxu3  ;;  %v1279_v19 = vadd.f32 %v1278_v15, %v1265_v16 }
 0x15f   : > { %v1293_v22 = vadd.f32 %v1292_v17, %v1279_v19  ;;  %v1306_v23 = vpop.f32.mrf.mxu0 }
 0x160   : > { %v1320_v31 = vpop.f32.mrf.mxu1 }
 0x161   : > { %v1307_v28 = vadd.f32 %v1306_v23, %v1293_v22 }
 0x163   : > { %v1321_v32 = vadd.f32 %v1320_v31, %v1307_v28 }
 0x164   : > { %v1332_v24 = vpop.f32.mrf.mxu2 }
 0x165   : > { %v1333_v25 = vadd.f32 %v1332_v24, %v1319_v21  ;;  %v1346_v26 = vpop.f32.mrf.mxu3 }
 0x167   : > { %v1347_v29 = vadd.f32 %v1346_v26, %v1333_v25 }
 0x169   : > { %v1351_v30 = vadd.f32 %v1347_v29, %v717_v27 }
 0x16b   : > { %1353 = vst.msk [vmem:[%s2485_s9] sm:$0xff] %vm585_vm1, %v1351_v30 }
 0x16c   : > { %v1334_v33 = vpop.f32.mrf.mxu2 }
 0x16d   : > { %v1335_v34 = vadd.f32 %v1334_v33, %v1321_v32  ;;  %v1348_v36 = vpop.f32.mrf.mxu3 }
 0x16f   : > { %v1349_v37 = vadd.f32 %v1348_v36, %v1335_v34  ;;  %1358 = sbr.rel (%p1937_p12) target bundleno = 923 (0x39b), region = 87 }
 0x171   : > { %v1352_v38 = vadd.f32 %v1349_v37, %v718_v35 }
 0x173   : > { %1354 = vst.msk [vmem:[%s2485_s9 + $0x8] sm:$0xff] %vm585_vm1, %v1352_v38 }
 0x174   : > { %v1359_v39 = vld [vmem:[%s2485_s9] sm:$0xff]  ;;  %v1368_v46 = vld [vmem:[%s2476_s0 + $0x8] sm:$0xff]  ;;  %v2121_v50 = vmov 32.0  }
 0x175   : > { %v2065_v40 = vld [vmem:[%s2480_s4] ss:$0 sm:$0xff]  ;;  %2070 = vrcp.f32 %v2121_v50 }
 0x176   : > { %v1367_v41 = vld [vmem:[%s2476_s0] sm:$0xff]  ;;  %v1365_v43 = vadd.f32 %v2065_v40, %v1359_v39 }
 0x177   : > { %v2066_v17 = vld [vmem:[%s2481_s5] ss:$0 sm:$0xff] }
 0x178   : > { %v1369_v44 = vadd.f32 %v1367_v41, %v1365_v43  ;;  %v2067_v21 = vld [vmem:[%s2482_s6] ss:$0 sm:$0xff] }
 0x17a   : > { %v1360_v42 = vld [vmem:[%s2485_s9 + $0x8] sm:$0xff]  ;;  %v1373_v47 = vsel %vm585_vm1, %v1369_v44, 0.0 }
 0x17b   : > { %v1366_v45 = vadd.f32 %v2065_v40, %v1360_v42  ;;  %1374 = vadd.xlane.f32.xlu0 %v1373_v47  ;;  %v2071_v51 = vpop.eup %2070 }
 0x17c   : > { %v1380_v52 = vmul.f32 32.0, %v2071_v51  ;;  %vm1384_vm2 = vweird.f32 %v2071_v51 }
 0x17d   : > { %v1370_v48 = vadd.f32 %v1368_v46, %v1366_v45 }
 0x17e   : > { %v1381_v53 = vsub.f32 1.0, %v1380_v52 }
 0x17f   : > { %v1376_v49 = vsel %vm585_vm1, %v1370_v48, 0.0 }
 0x180   : > { %v1382_v54 = vmul.f32 %v2071_v51, %v1381_v53 }
 0x182   : > { %v1383_v55 = vadd.f32 %v2071_v51, %v1382_v54 }
 0x183   : > { %1377 = vadd.xlane.f32.xlu0 %v1376_v49 }
 0x184   : > { %v2425_v56 = vsel %vm1384_vm2, %v2071_v51, %v1383_v55 }
 0x1ee   : > { %v1375_v57 = vpop.xlane.xlu0 %1374 }
 0x1ef   : > { %v1386_v58 = vmul.f32 %v2425_v56, %v1375_v57 }
 0x1f1   : > { %v1388_v59 = vsub.f32 %v1369_v44, %v1386_v58  ;;  %v2068_v58 = vld [vmem:[%s2483_s7] ss:$0 sm:$0xff] }
 0x1f3   : > { %v1390_v60 = vmul.f32 %v1388_v59, %v1388_v59 }
 0x1f5   : > { %v1392_v61 = vsel %vm585_vm1, %v1390_v60, 0.0 }
 0x1f6   : > { %1393 = vadd.xlane.f32.xlu1 %v1392_v61  ;;  %v1378_v62 = vpop.xlane.xlu0 %1377 }
 0x1f7   : > { %v1387_v63 = vmul.f32 %v2425_v56, %v1378_v62 }
 0x1f9   : > { %v1389_v0 = vsub.f32 %v1370_v48, %v1387_v63 }
 0x1fb   : > { %v1391_v1 = vmul.f32 %v1389_v0, %v1389_v0 }
 0x1fd   : > { %v1395_v3 = vsel %vm585_vm1, %v1391_v1, 0.0 }
 0x1fe   : > { %1396 = vadd.xlane.f32.xlu1 %v1395_v3 }
 0x269   : > { %v1394_v4 = vpop.xlane.xlu1 %1393 }
 0x26a   : > { %v1398_v5 = vmul.f32 %v1394_v4, %v2425_v56 }
 0x26c   : > { %v1400_v2 = vadd.f32 1e-05, %v1398_v5 }
 0x26e   : > { %2072 = vrsqrt.f32 %v1400_v2  ;;  %vm1408_vm4 = vweird.f32 %v1400_v2 }
 0x271   : > { %v1397_v6 = vpop.xlane.xlu1 %1396 }
 0x272   : > { %v1399_v7 = vmul.f32 %v1397_v6, %v2425_v56 }
 0x274   : > { %v2073_v8 = vpop.eup %2072  ;;  %v1401_v9 = vadd.f32 1e-05, %v1399_v7 }
 0x275   : > { %v1403_v10 = vmul.f32 %v2073_v8, %v1400_v2  ;;  %vm1409_vm3 = vweird.f32 %v2073_v8 }
 0x276   : > { %2074 = vrsqrt.f32 %v1401_v9  ;;  %vm1410_vm5 = vmor %vm1408_vm4, %vm1409_vm3  ;;  %vm1418_vm7 = vweird.f32 %v1401_v9 }
 0x277   : > { %v1404_v11 = vmul.f32 %v2073_v8, %v1403_v10 }
 0x279   : > { %v1405_v12 = vmul.f32 0.5, %v1404_v11 }
 0x27b   : > { %v1406_v13 = vsub.f32 1.5, %v1405_v12 }
 0x27c   : > { %v2075_v14 = vpop.eup %2074 }
 0x27d   : > { %v1407_v15 = vmul.f32 %v2073_v8, %v1406_v13  ;;  %v1413_v16 = vmul.f32 %v2075_v14, %v1401_v9  ;;  %vm1419_vm6 = vweird.f32 %v2075_v14 }
 0x27e   : > { %vm1420_vm8 = vmor %vm1418_vm7, %vm1419_vm6 }
 0x27f   : > { %v1414_v18 = vmul.f32 %v2075_v14, %v1413_v16  ;;  %v1411_v19 = vsel %vm1410_vm5, %v2073_v8, %v1407_v15 }
 0x280   : > { %v1422_v20 = vmul.f32 %v1411_v19, %v1388_v59 }
 0x281   : > { %v1415_v22 = vmul.f32 0.5, %v1414_v18 }
 0x282   : > { %v1427_v23 = vmul.f32 %v2066_v17, %v1422_v20 }
 0x283   : > { %v1416_v24 = vsub.f32 1.5, %v1415_v22 }
 0x284   : > { %v1432_v25 = vadd.f32 %v2067_v21, %v1427_v23 }
 0x285   : > { %v1417_v26 = vmul.f32 %v2075_v14, %v1416_v24 }
 0x286   : > { %v1436_v27 = vsel %vm585_vm1, %v1432_v25, 0.0 }
 0x287   : > { %1437 = vadd.xlane.f32.xlu2 %v1436_v27  ;;  %v1421_v28 = vsel %vm1420_vm8, %v2075_v14, %v1417_v26 }
 0x288   : > { %v1423_v29 = vmul.f32 %v1421_v28, %v1389_v0 }
 0x28a   : > { %v1428_v30 = vmul.f32 %v2066_v17, %v1423_v29 }
 0x28c   : > { %v1433_v31 = vadd.f32 %v2067_v21, %v1428_v30 }
 0x28e   : > { %v1439_v32 = vsel %vm585_vm1, %v1433_v31, 0.0 }
 0x28f   : > { %1440 = vadd.xlane.f32.xlu2 %v1439_v32 }
 0x2fa   : > { %v1438_v33 = vpop.xlane.xlu2 %1437 }
 0x2fb   : > { %v1442_v34 = vmul.f32 %v1438_v33, %v2425_v56 }
 0x2fd   : > { %v1444_v35 = vsub.f32 %v1432_v25, %v1442_v34 }
 0x2ff   : > { %v1446_v36 = vmul.f32 %v1444_v35, %v1444_v35 }
 0x301   : > { %v1448_v37 = vsel %vm585_vm1, %v1446_v36, 0.0 }
 0x302   : > { %1449 = vadd.xlane.f32.xlu0 %v1448_v37  ;;  %v1441_v38 = vpop.xlane.xlu2 %1440 }
 0x303   : > { %v1443_v39 = vmul.f32 %v1441_v38, %v2425_v56 }
 0x305   : > { %v1445_v40 = vsub.f32 %v1433_v31, %v1443_v39 }
 0x307   : > { %v1447_v41 = vmul.f32 %v1445_v40, %v1445_v40 }
 0x309   : > { %v1451_v42 = vsel %vm585_vm1, %v1447_v41, 0.0 }
 0x30a   : > { %1452 = vadd.xlane.f32.xlu1 %v1451_v42 }
 0x375   : > { %v1450_v43 = vpop.xlane.xlu0 %1449 }
 0x376   : > { %v1454_v44 = vmul.f32 %v1450_v43, %v2425_v56 }
 0x378   : > { %v1456_v45 = vadd.f32 1e-05, %v1454_v44 }
 0x37a   : > { %2076 = vrsqrt.f32 %v1456_v45  ;;  %vm1464_vm10 = vweird.f32 %v1456_v45 }
 0x37d   : > { %v1453_v46 = vpop.xlane.xlu1 %1452 }
 0x37e   : > { %v1455_v47 = vmul.f32 %v1453_v46, %v2425_v56  ;;  %v2069_v56 = vld [vmem:[%s2484_s8] ss:$0 sm:$0xff] }
 0x380   : > { %v2077_v48 = vpop.eup %2076  ;;  %v1457_v49 = vadd.f32 1e-05, %v1455_v47 }
 0x381   : > { %v1459_v50 = vmul.f32 %v2077_v48, %v1456_v45  ;;  %vm1465_vm9 = vweird.f32 %v2077_v48 }
 0x382   : > { %2078 = vrsqrt.f32 %v1457_v49  ;;  %vm1466_vm11 = vmor %vm1464_vm10, %vm1465_vm9  ;;  %vm1474_vm13 = vweird.f32 %v1457_v49 }
 0x383   : > { %v1460_v51 = vmul.f32 %v2077_v48, %v1459_v50 }
 0x385   : > { %v1461_v52 = vmul.f32 0.5, %v1460_v51 }
 0x387   : > { %v1462_v53 = vsub.f32 1.5, %v1461_v52 }
 0x388   : > { %v2079_v54 = vpop.eup %2078 }
 0x389   : > { %v1463_v55 = vmul.f32 %v2077_v48, %v1462_v53  ;;  %v1469_v57 = vmul.f32 %v2079_v54, %v1457_v49  ;;  %vm1475_vm12 = vweird.f32 %v2079_v54 }
 0x38a   : > { %vm1476_vm14 = vmor %vm1474_vm13, %vm1475_vm12 }
 0x38b   : > { %v1467_v59 = vsel %vm1466_vm11, %v2077_v48, %v1463_v55  ;;  %v1470_v60 = vmul.f32 %v2079_v54, %v1469_v57 }
 0x38c   : > { %v1478_v61 = vmul.f32 %v1467_v59, %v1444_v35 }
 0x38d   : > { %v1471_v62 = vmul.f32 0.5, %v1470_v60 }
 0x38e   : > { %v1483_v63 = vmul.f32 %v2068_v58, %v1478_v61 }
 0x38f   : > { %v1472_v0 = vsub.f32 1.5, %v1471_v62 }
 0x390   : > { %v1488_v1 = vadd.f32 %v2069_v56, %v1483_v63 }
 0x391   : > { %v1473_v3 = vmul.f32 %v2079_v54, %v1472_v0 }
 0x392   : > { %1490 = vst.msk [vmem:[%s2485_s9] sm:$0xff] %vm585_vm1, %v1488_v1 }
 0x393   : > { %v1477_v4 = vsel %vm1476_vm14, %v2079_v54, %v1473_v3 }
 0x394   : > { %v1479_v5 = vmul.f32 %v1477_v4, %v1445_v40 }
 0x396   : > { %v1484_v2 = vmul.f32 %v2068_v58, %v1479_v5 }
 0x398   : > { %v1489_v6 = vadd.f32 %v2069_v56, %v1484_v2 }
 0x39a   : > { %1491 = vst.msk [vmem:[%s2485_s9 + $0x8] sm:$0xff] %vm585_vm1, %v1489_v6 }
 0x39b PF: > { %s19_s13 = sadd.s32 1, %s2118_s13   ;;  %s2486_s30 = smov %s2106_s10 }
 0x39c   : > { %p16_p13 = scmp.ge.s32.totalorder %s19_s13, 4   ;;  %s2487_s10 = smov %s2207_s17 }
 0x39d   : > { %s2488_s11 = smov %s2114_s12  ;;  %s2489_s12 = smov %s2491_s14 }
 0x39e   :  { %18 = sbr.rel (!%p16_p13) target bundleno = 3 (0x3), region = 131 }

</bundles_post_ra>
